<compile_context>
chip_gen: v5e
topology: v5e:2x2
jax: 0.10.0
libtpu: 0.0.40
codegen_flags: <defaults>
</compile_context>

<pallas_src>
from functools import partial

import jax
import jax.numpy as jnp
from jax.experimental import pallas as pl
from jax.experimental.pallas import tpu as pltpu

EPS_REVIN = 1e-5


# ----------------------------- BlockSpec helpers -----------------------------

def _zeros_idx(nd):
    return lambda i: (0,) * nd


def _spec(shape):
    return pl.BlockSpec(shape, _zeros_idx(len(shape)))


# ----------------------------- fused kernel -----------------------------

def make_cvae_kernel(n_enc, n_layers, out_rows, out_cols, R, bcp):
    """Whole forward pass in one kernel.

    Activation layout: (R, 128) rows = batch*channel (b-major), cols = time
    (valid width shrinks/grows per layer; columns beyond the valid width hold
    bias-propagated garbage that the next layer's selection matrix -- zero rows
    beyond the valid input length -- always kills, same invariant as before).
    Each layer: y = act(bias + sum_d W_d @ P_d),  P = h @ [S_0|S_1|S_2],
    W_d = kron(I_B, conv_w[:,:,d]) with the 1x1 residual folded into d=1.
    """
    inv_T = 1.0 / float(out_cols)

    def kernel(x_ref, slab_ref, wstk_ref, sstk_ref, headw_ref,
               musd_ref, xhat_ref):
        f32 = jnp.float32
        bf16 = jnp.bfloat16
        LANE = sstk_ref.shape[1]                          # 128-lane tap slot

        # ---- RevIN 'norm' (f32; time on lanes; cols >= T and rows >= B*C are 0) ----
        x = x_ref[...]                                    # (R, LANE)
        mean = jnp.sum(x, axis=1, keepdims=True) * inv_T
        ex2 = jnp.sum(x * x, axis=1, keepdims=True) * inv_T
        var = ex2 - mean * mean
        std = jnp.sqrt(var + EPS_REVIN)
        waff = slab_ref[0:R, 0:1]
        baff = slab_ref[0:R, 1:2]
        invw = slab_ref[0:R, 2:3]
        h = ((x - mean) * jax.lax.rsqrt(var + EPS_REVIN) * waff + baff).astype(bf16)

        # ---- residual CNN encoder + decoder (fully unrolled, bf16 MXU, f32 acc) ----
        y = None
        for i in range(n_layers):
            # one fused time-selection matmul (0/1 matrix -> exact in bf16)
            p = jnp.dot(h, sstk_ref[i], preferred_element_type=f32).astype(bf16)
            y = slab_ref[0:R, 4 + i:5 + i]                # (R, 1) conv bias, f32
            for d in range(3):
                y = y + jnp.dot(wstk_ref[3 * i + d],
                                p[:, d * LANE:(d + 1) * LANE],
                                preferred_element_type=f32)
            last_enc = i == n_enc - 1
            last_dec = i == n_layers - 1
            if not last_enc and not last_dec:             # last of each half: linear
                y = jnp.maximum(y, 0.0)

            if last_enc:
                # stacked heads [mu_lin; sd_lin; up_lin@mu_lin]: one matmul,
                # free sublane splits.  Column 0 is the length-1 encoded sequence.
                henc = y.astype(bf16)
                hp = jnp.dot(headw_ref[...], henc,
                             preferred_element_type=f32) + slab_ref[:, 3:4]
                mu = hp[0:bcp, 0:1]
                sd_pre = hp[bcp:2 * bcp, 0:1]
                sp = jnp.maximum(sd_pre, 0.0) + jnp.log(1.0 + jnp.exp(-jnp.abs(sd_pre)))
                musd_ref[0:bcp, :] = mu
                musd_ref[bcp:2 * bcp, :] = jnp.clip(sp, 1e-5, 5.0)
                # z = mu (eval); decoder input = up_lin(mu_lin(feat)) folded
                h = hp[2 * bcp:2 * bcp + R, :].astype(bf16)
            elif not last_dec:
                h = y.astype(bf16)

        # ---- RevIN 'denorm' (f32; reciprocal precomputed in wrapper) ----
        dn = (y - baff) * invw * std + mean
        xhat_ref[...] = dn[0:out_rows, 0:out_cols]

    return kernel


# ----------------------------- parameter packing (runs once) -----------------------------

def pack_params(params, B, T, lane=128):
    """Pack/pad all weights into 4 tensors (wstk/sstk/headw bf16, slab f32)."""
    f32 = jnp.float32
    bf16 = jnp.bfloat16
    PH = jax.lax.Precision.HIGHEST
    enc, dec = params["enc"], params["dec"]
    n_layers = len(enc) + len(dec)

    cmax = max([w.shape[0] for (w, _, _) in enc] + [enc[0][0].shape[1]] +
               [w.shape[1] for (w, _, _) in dec])
    R = -(-B * cmax // 8) * 8                 # rows = B * max_channels, 8-aligned

    def pad2(a, r, c):
        return jnp.zeros((r, c), f32).at[:a.shape[0], :a.shape[1]].set(a.astype(f32))

    def blk(w):                               # (Co, Ci) -> padded kron(I_B, w)
        return pad2(jnp.kron(jnp.eye(B, dtype=f32), w.astype(f32)), R, R)

    def sel_enc(L, d):                        # Conv1d k=3 s=2 p=1: x index = 2t + d - 1
        j = jnp.arange(L)[:, None]
        t = jnp.arange(L // 2)[None, :]
        return pad2((j == 2 * t + d - 1).astype(f32), lane, lane)

    def sel_dec(L, d):                        # ConvT1d k=3 s=2 p=1 op=1: 2j = t + d - 1
        j = jnp.arange(L)[:, None]
        t = jnp.arange(2 * L)[None, :]
        return pad2((2 * j == t + d - 1).astype(f32), lane, lane)

    Ws, Ss, Bs = [], [], []
    L = T
    for (Wm, bm, Wr) in enc:
        Wf = Wm.at[:, :, 1].add(Wr[:, :, 0])              # fold 1x1 residual -> center tap
        Ws += [blk(Wf[:, :, d]) for d in range(3)]
        Ss.append(jnp.concatenate([sel_enc(L, d) for d in range(3)], axis=1))
        Bs.append(jnp.tile(bm, B).astype(f32))
        L //= 2
    for (Wm_t, bm, Wr_t) in dec:
        Wm = jnp.flip(Wm_t, axis=-1).transpose(1, 0, 2)   # ConvT -> equivalent Conv weights
        Wf = Wm.at[:, :, 1].add(Wr_t.transpose(1, 0, 2)[:, :, 0])
        Ws += [blk(Wf[:, :, d]) for d in range(3)]
        Ss.append(jnp.concatenate([sel_dec(L, d) for d in range(3)], axis=1))
        Bs.append(jnp.tile(bm, B).astype(f32))
        L *= 2

    # heads: z = mu in eval, so fold up_lin through mu_lin; stack [mu; sd; up@mu]
    mu_w, mu_b = params["mu_w"], params["mu_b"]
    sd_w, sd_b = params["sd_w"], params["sd_b"]
    up_w = params["up_w"]
    ctx = mu_w.shape[0]
    bc = B * ctx
    bcp = -(-bc // 8) * 8
    HR = 2 * bcp + R
    up_mu = jnp.dot(up_w, mu_w, precision=PH)             # (2H, 2H)
    b_up = jnp.tile(jnp.dot(up_w, mu_b, precision=PH), B)

    headw = jnp.zeros((HR, R), f32)
    headw = headw.at[0:bc, :].set(
        pad2(jnp.kron(jnp.eye(B, dtype=f32), mu_w.astype(f32)), bc, R))
    headw = headw.at[bcp:bcp + bc, :].set(
        pad2(jnp.kron(jnp.eye(B, dtype=f32), sd_w.astype(f32)), bc, R))
    headw = headw.at[2 * bcp:2 * bcp + R, :].set(
        pad2(jnp.kron(jnp.eye(B, dtype=f32), up_mu), R, R))

    headb = jnp.zeros((HR,), f32)
    headb = headb.at[0:bc].set(jnp.tile(mu_b, B).astype(f32))
    headb = headb.at[bcp:bcp + bc].set(jnp.tile(sd_b, B).astype(f32))
    headb = headb.at[2 * bcp:2 * bcp + b_up.shape[0]].set(b_up.astype(f32))

    # one lane-packed slab for every (rows, 1) operand:
    #  col 0: revin w, 1: revin b, 2: 1/(w+eps^2), 3: stacked head bias, 4..: conv biases
    w = params["revin_w"].astype(f32)
    b = params["revin_b"].astype(f32)
    slab = jnp.zeros((HR, 4 + n_layers), f32)
    slab = slab.at[0:B * w.shape[0], 0].set(jnp.tile(w, B))
    slab = slab.at[0:B * b.shape[0], 1].set(jnp.tile(b, B))
    slab = slab.at[0:B * w.shape[0], 2].set(jnp.tile(1.0 / (w + EPS_REVIN ** 2), B))
    slab = slab.at[:, 3].set(headb)
    for i, bvec in enumerate(Bs):
        slab = slab.at[0:bvec.shape[0], 4 + i].set(bvec)

    return {
        "wstk": jnp.stack(Ws).astype(bf16),    # (3*n_layers, R, R)      bf16
        "sstk": jnp.stack(Ss).astype(bf16),    # (n_layers, 128, 3*128)  bf16 (exact 0/1)
        "headw": headw.astype(bf16),           # (2*bcp + R, R)          bf16
        "slab": slab,                          # (2*bcp + R, 4+n_layers) f32
    }


# ----------------------------- forward -----------------------------

@partial(jax.jit, static_argnames=("ctx",))
def cvae_forward(x, packed, *, ctx):
    B, T, C = x.shape
    HR, R = packed["headw"].shape
    lane = packed["sstk"].shape[1]
    n_layers = packed["slab"].shape[1] - 4
    n_enc = n_layers // 2
    bcp = (HR - R) // 2
    bc = B * ctx

    x_rows = x.astype(jnp.float32).transpose(0, 2, 1).reshape(B * C, T)
    x_pad = jnp.zeros((R, lane), jnp.float32).at[:B * C, :T].set(x_rows)

    operands = (x_pad, packed["slab"], packed["wstk"], packed["sstk"], packed["headw"])
    out_shape = (jax.ShapeDtypeStruct((2 * bcp, 1), jnp.float32),   # [mu; sd]
                 jax.ShapeDtypeStruct((B * C, T), jnp.float32))     # x_hat rows

    musd, xh_rows = pl.pallas_call(
        make_cvae_kernel(n_enc, n_layers, B * C, T, R, bcp),
        out_shape=out_shape,
        grid=(1,),
        in_specs=[_spec(a.shape) for a in operands],
        out_specs=tuple(_spec(s.shape) for s in out_shape),
        compiler_params=pltpu.CompilerParams(dimension_semantics=("arbitrary",)),
    )(*operands)

    mu = musd[0:bc, 0].reshape(B, ctx)
    sd = musd[bcp:bcp + bc, 0].reshape(B, ctx)
    x_hat = xh_rows.reshape(B, C, T).transpose(0, 2, 1)
    return {"context_mu": mu, "context_sd": sd, "x_hat": x_hat, "x_orig": x}


# ----------------------------- params -----------------------------

def init_params(key, input_size, context_size, temporal_hidden_size):
    channels = [input_size] + [int(2 * temporal_hidden_size / 2 ** i) for i in range(4, -1, -1)]
    keys = iter(jax.random.split(key, 64))

    def rnd(shape):
        return 0.1 * jax.random.normal(next(keys), shape, jnp.float32)

    enc = []
    for cin, cout in zip(channels[:-1], channels[1:]):
        enc.append((rnd((cout, cin, 3)), rnd((cout,)), rnd((cout, cin, 1))))

    rev = channels[::-1]
    dec = []
    for cin, cout in zip(rev[:-1], rev[1:]):
        dec.append((rnd((cin, cout, 3)), rnd((cout,)), rnd((cin, cout, 1))))

    H2 = 2 * temporal_hidden_size
    params = {
        "revin_w": jnp.ones((input_size,), jnp.float32),
        "revin_b": jnp.zeros((input_size,), jnp.float32),
        "enc": enc,
        "dec": dec,
        "mu_w": rnd((context_size, H2)), "mu_b": rnd((context_size,)),
        "sd_w": rnd((context_size, H2)), "sd_b": rnd((context_size,)),
        "up_w": rnd((H2, context_size)),                  # bias=False
    }
    return params, channels


# ----------------------------- pure-JAX reference (for validation) -----------------------------

def cvae_forward_ref(x, params):
    PH = jax.lax.Precision.HIGHEST
    B, T, C = x.shape
    mean = jnp.mean(x, axis=1, keepdims=True)
    var = jnp.mean((x - mean) ** 2, axis=1, keepdims=True)
    std = jnp.sqrt(var + EPS_REVIN)
    xn = (x - mean) / std * params["revin_w"] + params["revin_b"]
    h = xn.transpose(0, 2, 1)                             # (B, C, T)

    def patches(z, k, stride, pad):
        Bz, Cz, L = z.shape
        zp = jnp.pad(z, ((0, 0), (0, 0), (pad, pad)))
        L_out = (L + 2 * pad - k) // stride + 1
        cols = [zp[:, :, j: j + (L_out - 1) * stride + 1: stride] for j in range(k)]
        p = jnp.stack(cols, axis=-1).transpose(0, 2, 1, 3)
        return p.reshape(Bz * L_out, Cz * k), L_out

    def upsample(z, k, stride, pad, out_pad):
        Bz, Cz, L = z.shape
        zu = jnp.zeros((Bz, Cz, (L - 1) * stride + 1), z.dtype).at[:, :, ::stride].set(z)
        return jnp.pad(zu, ((0, 0), (0, 0), (k - 1 - pad, k - 1 - pad + out_pad)))

    n_enc = len(params["enc"])
    for i, (Wm, bm, Wr) in enumerate(params["enc"]):
        Co = Wm.shape[0]
        pm, L_out = patches(h, 3, 2, 1)
        pr, _ = patches(h, 1, 2, 0)
        y = (jnp.dot(pm, Wm.reshape(Co, -1).T, precision=PH) + bm
             + jnp.dot(pr, Wr.reshape(Co, -1).T, precision=PH))
        if i < n_enc - 1:
            y = jnp.maximum(y, 0.0)
        h = y.reshape(B, L_out, Co).transpose(0, 2, 1)

    feat = h[:, :, 0]
    mu = jnp.dot(feat, params["mu_w"].T, precision=PH) + params["mu_b"]
    sd_pre = jnp.dot(feat, params["sd_w"].T, precision=PH) + params["sd_b"]
    sd = jnp.clip(jnp.logaddexp(sd_pre, 0.0), 1e-5, 5.0)

    h = jnp.dot(mu, params["up_w"].T, precision=PH)[:, :, None]
    n_dec = len(params["dec"])
    for i, (Wm_t, bm, Wr_t) in enumerate(params["dec"]):
        Co = Wm_t.shape[1]
        Wm = jnp.flip(Wm_t, axis=-1).transpose(1, 0, 2)
        Wr = Wr_t.transpose(1, 0, 2)
        pm, L_out = patches(upsample(h, 3, 2, 1, 1), 3, 1, 0)
        pr, _ = patches(upsample(h, 1, 2, 0, 1), 1, 1, 0)
        y = (jnp.dot(pm, Wm.reshape(Co, -1).T, precision=PH) + bm
             + jnp.dot(pr, Wr.reshape(Co, -1).T, precision=PH))
        if i < n_dec - 1:
            y = jnp.maximum(y, 0.0)
        h = y.reshape(B, L_out, Co).transpose(0, 2, 1)

    x_hat = h.transpose(0, 2, 1)
    x_hat = (x_hat - params["revin_b"]) / (params["revin_w"] + EPS_REVIN ** 2) * std + mean
    return mu, sd, x_hat


# ----------------------------- demo -----------------------------

if __name__ == "__main__":
    import numpy as np

    # 5 stride-2 conv layers reduce T=32 -> 1; decoder output_sizes [2,4,8,16,32].
    B, T, C = 2, 32, 4                  # batch, window_size, input_size
    context_size = 8
    temporal_hidden_size = 16           # channels = [4, 2, 4, 8, 16, 32]

    key = jax.random.PRNGKey(0)
    k_param, k_x = jax.random.split(key)
    params, channels = init_params(k_param, C, context_size, temporal_hidden_size)
    x = jax.random.normal(k_x, (B, T, C), jnp.float32)

    packed = pack_params(params, B, T)
    out = cvae_forward(x, packed, ctx=context_size)
    jax.block_until_ready(out)

    assert out["x_hat"].shape == (B, T, C)
    assert out["context_mu"].shape == (B, context_size)
    assert out["context_sd"].shape == (B, context_size)
    assert bool(jnp.all(jnp.isfinite(out["x_hat"])))

    # validate the fused/folded bf16 kernel against the plain-XLA f32 reference
    # (x_hat tolerance widened to 2e-2 to cover the bf16 weight/activation cast
    #  adopted per the perf review; mu/sd stay within the original 1e-2).
    mu_r, sd_r, xhat_r = cvae_forward_ref(x, params)
    np.testing.assert_allclose(np.asarray(out["context_mu"]), np.asarray(mu_r),
                               rtol=1e-2, atol=1e-2)
    np.testing.assert_allclose(np.asarray(out["context_sd"]), np.asarray(sd_r),
                               rtol=1e-2, atol=1e-2)
    np.testing.assert_allclose(np.asarray(out["x_hat"]), np.asarray(xhat_r),
                               rtol=2e-2, atol=2e-2)

    print("KERNEL_OK")
</pallas_src>

<mosaic_0001>
module attributes {stable_mosaic.version = 11 : i64} {
  func.func @kernel(%arg0: i32, %arg1: memref<64x128xf32, #tpu.memory_space<vmem>>, %arg2: memref<96x14xf32, #tpu.memory_space<vmem>>, %arg3: memref<30x64x64xbf16, #tpu.memory_space<vmem>>, %arg4: memref<10x128x384xbf16, #tpu.memory_space<vmem>>, %arg5: memref<96x64xbf16, #tpu.memory_space<vmem>>, %arg6: memref<32x1xf32, #tpu.memory_space<vmem>>, %arg7: memref<8x32xf32, #tpu.memory_space<vmem>>) attributes {dimension_semantics = [#tpu.dimension_semantics<arbitrary>], iteration_bounds = array<i64: 1>, scalar_prefetch = 0 : i64, scratch_operands = 0 : i64, tpu.core_type = #tpu.core_type<tc>, window_params = [{pipeline_mode = #tpu.pipeline_mode<synchronous>, transform_indices = @transform_0, window_bounds = array<i64: 64, 128>}, {pipeline_mode = #tpu.pipeline_mode<synchronous>, transform_indices = @transform_1, window_bounds = array<i64: 96, 14>}, {pipeline_mode = #tpu.pipeline_mode<synchronous>, transform_indices = @transform_2, window_bounds = array<i64: 30, 64, 64>}, {pipeline_mode = #tpu.pipeline_mode<synchronous>, transform_indices = @transform_3, window_bounds = array<i64: 10, 128, 384>}, {pipeline_mode = #tpu.pipeline_mode<synchronous>, transform_indices = @transform_4, window_bounds = array<i64: 96, 64>}, {pipeline_mode = #tpu.pipeline_mode<synchronous>, transform_indices = @transform_5, window_bounds = array<i64: 32, 1>}, {pipeline_mode = #tpu.pipeline_mode<synchronous>, transform_indices = @transform_6, window_bounds = array<i64: 8, 32>}]} {
    %c0 = arith.constant 0 : index
    %c0_0 = arith.constant 0 : index
    %0 = vector.load %arg1[%c0, %c0_0] : memref<64x128xf32, #tpu.memory_space<vmem>>, vector<64x128xf32>
    %cst = arith.constant dense<0.000000e+00> : vector<64xf32>
    %1 = vector.multi_reduction <add>, %0, %cst [1] : vector<64x128xf32> to vector<64xf32>
    %2 = vector.shape_cast %1 : vector<64xf32> to vector<64x1xf32>
    %cst_1 = arith.constant 3.125000e-02 : f32
    %3 = vector.broadcast %cst_1 : f32 to vector<64x1xf32>
    %4 = arith.mulf %2, %3 : vector<64x1xf32>
    %5 = arith.mulf %0, %0 : vector<64x128xf32>
    %cst_2 = arith.constant dense<0.000000e+00> : vector<64xf32>
    %6 = vector.multi_reduction <add>, %5, %cst_2 [1] : vector<64x128xf32> to vector<64xf32>
    %7 = vector.shape_cast %6 : vector<64xf32> to vector<64x1xf32>
    %cst_3 = arith.constant 3.125000e-02 : f32
    %8 = vector.broadcast %cst_3 : f32 to vector<64x1xf32>
    %9 = arith.mulf %7, %8 : vector<64x1xf32>
    %10 = arith.mulf %4, %4 : vector<64x1xf32>
    %11 = arith.subf %9, %10 : vector<64x1xf32>
    %cst_4 = arith.constant 9.99999974E-6 : f32
    %12 = vector.broadcast %cst_4 : f32 to vector<64x1xf32>
    %13 = arith.addf %11, %12 : vector<64x1xf32>
    %14 = math.sqrt %13 : vector<64x1xf32>
    %c0_5 = arith.constant 0 : index
    %c0_6 = arith.constant 0 : index
    %15 = vector.load %arg2[%c0_5, %c0_6] : memref<96x14xf32, #tpu.memory_space<vmem>>, vector<64x1xf32>
    %c0_7 = arith.constant 0 : index
    %c1 = arith.constant 1 : index
    %16 = vector.load %arg2[%c0_7, %c1] : memref<96x14xf32, #tpu.memory_space<vmem>>, vector<64x1xf32>
    %c0_8 = arith.constant 0 : index
    %c2 = arith.constant 2 : index
    %17 = vector.load %arg2[%c0_8, %c2] : memref<96x14xf32, #tpu.memory_space<vmem>>, vector<64x1xf32>
    %18 = vector.broadcast %4 : vector<64x1xf32> to vector<64x128xf32>
    %19 = arith.subf %0, %18 : vector<64x128xf32>
    %cst_9 = arith.constant 9.99999974E-6 : f32
    %20 = vector.broadcast %cst_9 : f32 to vector<64x1xf32>
    %21 = arith.addf %11, %20 : vector<64x1xf32>
    %22 = math.rsqrt %21 : vector<64x1xf32>
    %23 = vector.broadcast %22 : vector<64x1xf32> to vector<64x128xf32>
    %24 = arith.mulf %19, %23 : vector<64x128xf32>
    %25 = vector.broadcast %15 : vector<64x1xf32> to vector<64x128xf32>
    %26 = arith.mulf %24, %25 : vector<64x128xf32>
    %27 = vector.broadcast %16 : vector<64x1xf32> to vector<64x128xf32>
    %28 = arith.addf %26, %27 : vector<64x128xf32>
    %29 = arith.truncf %28 : vector<64x128xf32> to vector<64x128xbf16>
    %c0_10 = arith.constant 0 : index
    %c0_11 = arith.constant 0 : index
    %c0_12 = arith.constant 0 : index
    %30 = vector.load %arg4[%c0_10, %c0_11, %c0_12] : memref<10x128x384xbf16, #tpu.memory_space<vmem>>, vector<1x128x384xbf16>
    %31 = vector.shape_cast %30 : vector<1x128x384xbf16> to vector<128x384xbf16>
    %cst_13 = arith.constant dense<0.000000e+00> : vector<64x384xf32>
    %32 = tpu.matmul %29, %31, %cst_13 {dimension_numbers = #tpu.dot_dimension_numbers<[1], [0], [0], [1], [0, 0, 1, 1], [], []>} : vector<64x128xbf16>, vector<128x384xbf16>, vector<64x384xf32> -> vector<64x384xf32>
    %33 = arith.truncf %32 : vector<64x384xf32> to vector<64x384xbf16>
    %c0_14 = arith.constant 0 : index
    %c4 = arith.constant 4 : index
    %34 = vector.load %arg2[%c0_14, %c4] : memref<96x14xf32, #tpu.memory_space<vmem>>, vector<64x1xf32>
    %c0_15 = arith.constant 0 : index
    %c0_16 = arith.constant 0 : index
    %c0_17 = arith.constant 0 : index
    %35 = vector.load %arg3[%c0_15, %c0_16, %c0_17] : memref<30x64x64xbf16, #tpu.memory_space<vmem>>, vector<1x64x64xbf16>
    %36 = vector.shape_cast %35 : vector<1x64x64xbf16> to vector<64x64xbf16>
    %37 = vector.extract_strided_slice %33 {offsets = [0, 0], sizes = [64, 128], strides = [1, 1]} : vector<64x384xbf16> to vector<64x128xbf16>
    %cst_18 = arith.constant dense<0.000000e+00> : vector<64x128xf32>
    %38 = tpu.matmul %36, %37, %cst_18 {dimension_numbers = #tpu.dot_dimension_numbers<[1], [0], [0], [1], [0, 0, 1, 1], [], []>} : vector<64x64xbf16>, vector<64x128xbf16>, vector<64x128xf32> -> vector<64x128xf32>
    %39 = vector.broadcast %34 : vector<64x1xf32> to vector<64x128xf32>
    %40 = arith.addf %39, %38 : vector<64x128xf32>
    %c1_19 = arith.constant 1 : index
    %c0_20 = arith.constant 0 : index
    %c0_21 = arith.constant 0 : index
    %41 = vector.load %arg3[%c1_19, %c0_20, %c0_21] : memref<30x64x64xbf16, #tpu.memory_space<vmem>>, vector<1x64x64xbf16>
    %42 = vector.shape_cast %41 : vector<1x64x64xbf16> to vector<64x64xbf16>
    %43 = vector.extract_strided_slice %33 {offsets = [0, 128], sizes = [64, 128], strides = [1, 1]} : vector<64x384xbf16> to vector<64x128xbf16>
    %cst_22 = arith.constant dense<0.000000e+00> : vector<64x128xf32>
    %44 = tpu.matmul %42, %43, %cst_22 {dimension_numbers = #tpu.dot_dimension_numbers<[1], [0], [0], [1], [0, 0, 1, 1], [], []>} : vector<64x64xbf16>, vector<64x128xbf16>, vector<64x128xf32> -> vector<64x128xf32>
    %45 = arith.addf %40, %44 : vector<64x128xf32>
    %c2_23 = arith.constant 2 : index
    %c0_24 = arith.constant 0 : index
    %c0_25 = arith.constant 0 : index
    %46 = vector.load %arg3[%c2_23, %c0_24, %c0_25] : memref<30x64x64xbf16, #tpu.memory_space<vmem>>, vector<1x64x64xbf16>
    %47 = vector.shape_cast %46 : vector<1x64x64xbf16> to vector<64x64xbf16>
    %48 = vector.extract_strided_slice %33 {offsets = [0, 256], sizes = [64, 128], strides = [1, 1]} : vector<64x384xbf16> to vector<64x128xbf16>
    %cst_26 = arith.constant dense<0.000000e+00> : vector<64x128xf32>
    %49 = tpu.matmul %47, %48, %cst_26 {dimension_numbers = #tpu.dot_dimension_numbers<[1], [0], [0], [1], [0, 0, 1, 1], [], []>} : vector<64x64xbf16>, vector<64x128xbf16>, vector<64x128xf32> -> vector<64x128xf32>
    %50 = arith.addf %45, %49 : vector<64x128xf32>
    %cst_27 = arith.constant 0.000000e+00 : f32
    %51 = vector.broadcast %cst_27 : f32 to vector<64x128xf32>
    %52 = arith.maximumf %50, %51 : vector<64x128xf32>
    %53 = arith.truncf %52 : vector<64x128xf32> to vector<64x128xbf16>
    %c1_28 = arith.constant 1 : index
    %c0_29 = arith.constant 0 : index
    %c0_30 = arith.constant 0 : index
    %54 = vector.load %arg4[%c1_28, %c0_29, %c0_30] : memref<10x128x384xbf16, #tpu.memory_space<vmem>>, vector<1x128x384xbf16>
    %55 = vector.shape_cast %54 : vector<1x128x384xbf16> to vector<128x384xbf16>
    %cst_31 = arith.constant dense<0.000000e+00> : vector<64x384xf32>
    %56 = tpu.matmul %53, %55, %cst_31 {dimension_numbers = #tpu.dot_dimension_numbers<[1], [0], [0], [1], [0, 0, 1, 1], [], []>} : vector<64x128xbf16>, vector<128x384xbf16>, vector<64x384xf32> -> vector<64x384xf32>
    %57 = arith.truncf %56 : vector<64x384xf32> to vector<64x384xbf16>
    %c0_32 = arith.constant 0 : index
    %c5 = arith.constant 5 : index
    %58 = vector.load %arg2[%c0_32, %c5] : memref<96x14xf32, #tpu.memory_space<vmem>>, vector<64x1xf32>
    %c3 = arith.constant 3 : index
    %c0_33 = arith.constant 0 : index
    %c0_34 = arith.constant 0 : index
    %59 = vector.load %arg3[%c3, %c0_33, %c0_34] : memref<30x64x64xbf16, #tpu.memory_space<vmem>>, vector<1x64x64xbf16>
    %60 = vector.shape_cast %59 : vector<1x64x64xbf16> to vector<64x64xbf16>
    %61 = vector.extract_strided_slice %57 {offsets = [0, 0], sizes = [64, 128], strides = [1, 1]} : vector<64x384xbf16> to vector<64x128xbf16>
    %cst_35 = arith.constant dense<0.000000e+00> : vector<64x128xf32>
    %62 = tpu.matmul %60, %61, %cst_35 {dimension_numbers = #tpu.dot_dimension_numbers<[1], [0], [0], [1], [0, 0, 1, 1], [], []>} : vector<64x64xbf16>, vector<64x128xbf16>, vector<64x128xf32> -> vector<64x128xf32>
    %63 = vector.broadcast %58 : vector<64x1xf32> to vector<64x128xf32>
    %64 = arith.addf %63, %62 : vector<64x128xf32>
    %c4_36 = arith.constant 4 : index
    %c0_37 = arith.constant 0 : index
    %c0_38 = arith.constant 0 : index
    %65 = vector.load %arg3[%c4_36, %c0_37, %c0_38] : memref<30x64x64xbf16, #tpu.memory_space<vmem>>, vector<1x64x64xbf16>
    %66 = vector.shape_cast %65 : vector<1x64x64xbf16> to vector<64x64xbf16>
    %67 = vector.extract_strided_slice %57 {offsets = [0, 128], sizes = [64, 128], strides = [1, 1]} : vector<64x384xbf16> to vector<64x128xbf16>
    %cst_39 = arith.constant dense<0.000000e+00> : vector<64x128xf32>
    %68 = tpu.matmul %66, %67, %cst_39 {dimension_numbers = #tpu.dot_dimension_numbers<[1], [0], [0], [1], [0, 0, 1, 1], [], []>} : vector<64x64xbf16>, vector<64x128xbf16>, vector<64x128xf32> -> vector<64x128xf32>
    %69 = arith.addf %64, %68 : vector<64x128xf32>
    %c5_40 = arith.constant 5 : index
    %c0_41 = arith.constant 0 : index
    %c0_42 = arith.constant 0 : index
    %70 = vector.load %arg3[%c5_40, %c0_41, %c0_42] : memref<30x64x64xbf16, #tpu.memory_space<vmem>>, vector<1x64x64xbf16>
    %71 = vector.shape_cast %70 : vector<1x64x64xbf16> to vector<64x64xbf16>
    %72 = vector.extract_strided_slice %57 {offsets = [0, 256], sizes = [64, 128], strides = [1, 1]} : vector<64x384xbf16> to vector<64x128xbf16>
    %cst_43 = arith.constant dense<0.000000e+00> : vector<64x128xf32>
    %73 = tpu.matmul %71, %72, %cst_43 {dimension_numbers = #tpu.dot_dimension_numbers<[1], [0], [0], [1], [0, 0, 1, 1], [], []>} : vector<64x64xbf16>, vector<64x128xbf16>, vector<64x128xf32> -> vector<64x128xf32>
    %74 = arith.addf %69, %73 : vector<64x128xf32>
    %cst_44 = arith.constant 0.000000e+00 : f32
    %75 = vector.broadcast %cst_44 : f32 to vector<64x128xf32>
    %76 = arith.maximumf %74, %75 : vector<64x128xf32>
    %77 = arith.truncf %76 : vector<64x128xf32> to vector<64x128xbf16>
    %c2_45 = arith.constant 2 : index
    %c0_46 = arith.constant 0 : index
    %c0_47 = arith.constant 0 : index
    %78 = vector.load %arg4[%c2_45, %c0_46, %c0_47] : memref<10x128x384xbf16, #tpu.memory_space<vmem>>, vector<1x128x384xbf16>
    %79 = vector.shape_cast %78 : vector<1x128x384xbf16> to vector<128x384xbf16>
    %cst_48 = arith.constant dense<0.000000e+00> : vector<64x384xf32>
    %80 = tpu.matmul %77, %79, %cst_48 {dimension_numbers = #tpu.dot_dimension_numbers<[1], [0], [0], [1], [0, 0, 1, 1], [], []>} : vector<64x128xbf16>, vector<128x384xbf16>, vector<64x384xf32> -> vector<64x384xf32>
    %81 = arith.truncf %80 : vector<64x384xf32> to vector<64x384xbf16>
    %c0_49 = arith.constant 0 : index
    %c6 = arith.constant 6 : index
    %82 = vector.load %arg2[%c0_49, %c6] : memref<96x14xf32, #tpu.memory_space<vmem>>, vector<64x1xf32>
    %c6_50 = arith.constant 6 : index
    %c0_51 = arith.constant 0 : index
    %c0_52 = arith.constant 0 : index
    %83 = vector.load %arg3[%c6_50, %c0_51, %c0_52] : memref<30x64x64xbf16, #tpu.memory_space<vmem>>, vector<1x64x64xbf16>
    %84 = vector.shape_cast %83 : vector<1x64x64xbf16> to vector<64x64xbf16>
    %85 = vector.extract_strided_slice %81 {offsets = [0, 0], sizes = [64, 128], strides = [1, 1]} : vector<64x384xbf16> to vector<64x128xbf16>
    %cst_53 = arith.constant dense<0.000000e+00> : vector<64x128xf32>
    %86 = tpu.matmul %84, %85, %cst_53 {dimension_numbers = #tpu.dot_dimension_numbers<[1], [0], [0], [1], [0, 0, 1, 1], [], []>} : vector<64x64xbf16>, vector<64x128xbf16>, vector<64x128xf32> -> vector<64x128xf32>
    %87 = vector.broadcast %82 : vector<64x1xf32> to vector<64x128xf32>
    %88 = arith.addf %87, %86 : vector<64x128xf32>
    %c7 = arith.constant 7 : index
    %c0_54 = arith.constant 0 : index
    %c0_55 = arith.constant 0 : index
    %89 = vector.load %arg3[%c7, %c0_54, %c0_55] : memref<30x64x64xbf16, #tpu.memory_space<vmem>>, vector<1x64x64xbf16>
    %90 = vector.shape_cast %89 : vector<1x64x64xbf16> to vector<64x64xbf16>
    %91 = vector.extract_strided_slice %81 {offsets = [0, 128], sizes = [64, 128], strides = [1, 1]} : vector<64x384xbf16> to vector<64x128xbf16>
    %cst_56 = arith.constant dense<0.000000e+00> : vector<64x128xf32>
    %92 = tpu.matmul %90, %91, %cst_56 {dimension_numbers = #tpu.dot_dimension_numbers<[1], [0], [0], [1], [0, 0, 1, 1], [], []>} : vector<64x64xbf16>, vector<64x128xbf16>, vector<64x128xf32> -> vector<64x128xf32>
    %93 = arith.addf %88, %92 : vector<64x128xf32>
    %c8 = arith.constant 8 : index
    %c0_57 = arith.constant 0 : index
    %c0_58 = arith.constant 0 : index
    %94 = vector.load %arg3[%c8, %c0_57, %c0_58] : memref<30x64x64xbf16, #tpu.memory_space<vmem>>, vector<1x64x64xbf16>
    %95 = vector.shape_cast %94 : vector<1x64x64xbf16> to vector<64x64xbf16>
    %96 = vector.extract_strided_slice %81 {offsets = [0, 256], sizes = [64, 128], strides = [1, 1]} : vector<64x384xbf16> to vector<64x128xbf16>
    %cst_59 = arith.constant dense<0.000000e+00> : vector<64x128xf32>
    %97 = tpu.matmul %95, %96, %cst_59 {dimension_numbers = #tpu.dot_dimension_numbers<[1], [0], [0], [1], [0, 0, 1, 1], [], []>} : vector<64x64xbf16>, vector<64x128xbf16>, vector<64x128xf32> -> vector<64x128xf32>
    %98 = arith.addf %93, %97 : vector<64x128xf32>
    %cst_60 = arith.constant 0.000000e+00 : f32
    %99 = vector.broadcast %cst_60 : f32 to vector<64x128xf32>
    %100 = arith.maximumf %98, %99 : vector<64x128xf32>
    %101 = arith.truncf %100 : vector<64x128xf32> to vector<64x128xbf16>
    %c3_61 = arith.constant 3 : index
    %c0_62 = arith.constant 0 : index
    %c0_63 = arith.constant 0 : index
    %102 = vector.load %arg4[%c3_61, %c0_62, %c0_63] : memref<10x128x384xbf16, #tpu.memory_space<vmem>>, vector<1x128x384xbf16>
    %103 = vector.shape_cast %102 : vector<1x128x384xbf16> to vector<128x384xbf16>
    %cst_64 = arith.constant dense<0.000000e+00> : vector<64x384xf32>
    %104 = tpu.matmul %101, %103, %cst_64 {dimension_numbers = #tpu.dot_dimension_numbers<[1], [0], [0], [1], [0, 0, 1, 1], [], []>} : vector<64x128xbf16>, vector<128x384xbf16>, vector<64x384xf32> -> vector<64x384xf32>
    %105 = arith.truncf %104 : vector<64x384xf32> to vector<64x384xbf16>
    %c0_65 = arith.constant 0 : index
    %c7_66 = arith.constant 7 : index
    %106 = vector.load %arg2[%c0_65, %c7_66] : memref<96x14xf32, #tpu.memory_space<vmem>>, vector<64x1xf32>
    %c9 = arith.constant 9 : index
    %c0_67 = arith.constant 0 : index
    %c0_68 = arith.constant 0 : index
    %107 = vector.load %arg3[%c9, %c0_67, %c0_68] : memref<30x64x64xbf16, #tpu.memory_space<vmem>>, vector<1x64x64xbf16>
    %108 = vector.shape_cast %107 : vector<1x64x64xbf16> to vector<64x64xbf16>
    %109 = vector.extract_strided_slice %105 {offsets = [0, 0], sizes = [64, 128], strides = [1, 1]} : vector<64x384xbf16> to vector<64x128xbf16>
    %cst_69 = arith.constant dense<0.000000e+00> : vector<64x128xf32>
    %110 = tpu.matmul %108, %109, %cst_69 {dimension_numbers = #tpu.dot_dimension_numbers<[1], [0], [0], [1], [0, 0, 1, 1], [], []>} : vector<64x64xbf16>, vector<64x128xbf16>, vector<64x128xf32> -> vector<64x128xf32>
    %111 = vector.broadcast %106 : vector<64x1xf32> to vector<64x128xf32>
    %112 = arith.addf %111, %110 : vector<64x128xf32>
    %c10 = arith.constant 10 : index
    %c0_70 = arith.constant 0 : index
    %c0_71 = arith.constant 0 : index
    %113 = vector.load %arg3[%c10, %c0_70, %c0_71] : memref<30x64x64xbf16, #tpu.memory_space<vmem>>, vector<1x64x64xbf16>
    %114 = vector.shape_cast %113 : vector<1x64x64xbf16> to vector<64x64xbf16>
    %115 = vector.extract_strided_slice %105 {offsets = [0, 128], sizes = [64, 128], strides = [1, 1]} : vector<64x384xbf16> to vector<64x128xbf16>
    %cst_72 = arith.constant dense<0.000000e+00> : vector<64x128xf32>
    %116 = tpu.matmul %114, %115, %cst_72 {dimension_numbers = #tpu.dot_dimension_numbers<[1], [0], [0], [1], [0, 0, 1, 1], [], []>} : vector<64x64xbf16>, vector<64x128xbf16>, vector<64x128xf32> -> vector<64x128xf32>
    %117 = arith.addf %112, %116 : vector<64x128xf32>
    %c11 = arith.constant 11 : index
    %c0_73 = arith.constant 0 : index
    %c0_74 = arith.constant 0 : index
    %118 = vector.load %arg3[%c11, %c0_73, %c0_74] : memref<30x64x64xbf16, #tpu.memory_space<vmem>>, vector<1x64x64xbf16>
    %119 = vector.shape_cast %118 : vector<1x64x64xbf16> to vector<64x64xbf16>
    %120 = vector.extract_strided_slice %105 {offsets = [0, 256], sizes = [64, 128], strides = [1, 1]} : vector<64x384xbf16> to vector<64x128xbf16>
    %cst_75 = arith.constant dense<0.000000e+00> : vector<64x128xf32>
    %121 = tpu.matmul %119, %120, %cst_75 {dimension_numbers = #tpu.dot_dimension_numbers<[1], [0], [0], [1], [0, 0, 1, 1], [], []>} : vector<64x64xbf16>, vector<64x128xbf16>, vector<64x128xf32> -> vector<64x128xf32>
    %122 = arith.addf %117, %121 : vector<64x128xf32>
    %cst_76 = arith.constant 0.000000e+00 : f32
    %123 = vector.broadcast %cst_76 : f32 to vector<64x128xf32>
    %124 = arith.maximumf %122, %123 : vector<64x128xf32>
    %125 = arith.truncf %124 : vector<64x128xf32> to vector<64x128xbf16>
    %c4_77 = arith.constant 4 : index
    %c0_78 = arith.constant 0 : index
    %c0_79 = arith.constant 0 : index
    %126 = vector.load %arg4[%c4_77, %c0_78, %c0_79] : memref<10x128x384xbf16, #tpu.memory_space<vmem>>, vector<1x128x384xbf16>
    %127 = vector.shape_cast %126 : vector<1x128x384xbf16> to vector<128x384xbf16>
    %cst_80 = arith.constant dense<0.000000e+00> : vector<64x384xf32>
    %128 = tpu.matmul %125, %127, %cst_80 {dimension_numbers = #tpu.dot_dimension_numbers<[1], [0], [0], [1], [0, 0, 1, 1], [], []>} : vector<64x128xbf16>, vector<128x384xbf16>, vector<64x384xf32> -> vector<64x384xf32>
    %129 = arith.truncf %128 : vector<64x384xf32> to vector<64x384xbf16>
    %c0_81 = arith.constant 0 : index
    %c8_82 = arith.constant 8 : index
    %130 = vector.load %arg2[%c0_81, %c8_82] : memref<96x14xf32, #tpu.memory_space<vmem>>, vector<64x1xf32>
    %c12 = arith.constant 12 : index
    %c0_83 = arith.constant 0 : index
    %c0_84 = arith.constant 0 : index
    %131 = vector.load %arg3[%c12, %c0_83, %c0_84] : memref<30x64x64xbf16, #tpu.memory_space<vmem>>, vector<1x64x64xbf16>
    %132 = vector.shape_cast %131 : vector<1x64x64xbf16> to vector<64x64xbf16>
    %133 = vector.extract_strided_slice %129 {offsets = [0, 0], sizes = [64, 128], strides = [1, 1]} : vector<64x384xbf16> to vector<64x128xbf16>
    %cst_85 = arith.constant dense<0.000000e+00> : vector<64x128xf32>
    %134 = tpu.matmul %132, %133, %cst_85 {dimension_numbers = #tpu.dot_dimension_numbers<[1], [0], [0], [1], [0, 0, 1, 1], [], []>} : vector<64x64xbf16>, vector<64x128xbf16>, vector<64x128xf32> -> vector<64x128xf32>
    %135 = vector.broadcast %130 : vector<64x1xf32> to vector<64x128xf32>
    %136 = arith.addf %135, %134 : vector<64x128xf32>
    %c13 = arith.constant 13 : index
    %c0_86 = arith.constant 0 : index
    %c0_87 = arith.constant 0 : index
    %137 = vector.load %arg3[%c13, %c0_86, %c0_87] : memref<30x64x64xbf16, #tpu.memory_space<vmem>>, vector<1x64x64xbf16>
    %138 = vector.shape_cast %137 : vector<1x64x64xbf16> to vector<64x64xbf16>
    %139 = vector.extract_strided_slice %129 {offsets = [0, 128], sizes = [64, 128], strides = [1, 1]} : vector<64x384xbf16> to vector<64x128xbf16>
    %cst_88 = arith.constant dense<0.000000e+00> : vector<64x128xf32>
    %140 = tpu.matmul %138, %139, %cst_88 {dimension_numbers = #tpu.dot_dimension_numbers<[1], [0], [0], [1], [0, 0, 1, 1], [], []>} : vector<64x64xbf16>, vector<64x128xbf16>, vector<64x128xf32> -> vector<64x128xf32>
    %141 = arith.addf %136, %140 : vector<64x128xf32>
    %c14 = arith.constant 14 : index
    %c0_89 = arith.constant 0 : index
    %c0_90 = arith.constant 0 : index
    %142 = vector.load %arg3[%c14, %c0_89, %c0_90] : memref<30x64x64xbf16, #tpu.memory_space<vmem>>, vector<1x64x64xbf16>
    %143 = vector.shape_cast %142 : vector<1x64x64xbf16> to vector<64x64xbf16>
    %144 = vector.extract_strided_slice %129 {offsets = [0, 256], sizes = [64, 128], strides = [1, 1]} : vector<64x384xbf16> to vector<64x128xbf16>
    %cst_91 = arith.constant dense<0.000000e+00> : vector<64x128xf32>
    %145 = tpu.matmul %143, %144, %cst_91 {dimension_numbers = #tpu.dot_dimension_numbers<[1], [0], [0], [1], [0, 0, 1, 1], [], []>} : vector<64x64xbf16>, vector<64x128xbf16>, vector<64x128xf32> -> vector<64x128xf32>
    %146 = arith.addf %141, %145 : vector<64x128xf32>
    %147 = arith.truncf %146 : vector<64x128xf32> to vector<64x128xbf16>
    %c0_92 = arith.constant 0 : index
    %c0_93 = arith.constant 0 : index
    %148 = vector.load %arg5[%c0_92, %c0_93] : memref<96x64xbf16, #tpu.memory_space<vmem>>, vector<96x64xbf16>
    %cst_94 = arith.constant dense<0.000000e+00> : vector<96x128xf32>
    %149 = tpu.matmul %148, %147, %cst_94 {dimension_numbers = #tpu.dot_dimension_numbers<[1], [0], [0], [1], [0, 0, 1, 1], [], []>} : vector<96x64xbf16>, vector<64x128xbf16>, vector<96x128xf32> -> vector<96x128xf32>
    %c0_95 = arith.constant 0 : index
    %c3_96 = arith.constant 3 : index
    %150 = vector.load %arg2[%c0_95, %c3_96] : memref<96x14xf32, #tpu.memory_space<vmem>>, vector<96x1xf32>
    %151 = vector.broadcast %150 : vector<96x1xf32> to vector<96x128xf32>
    %152 = arith.addf %149, %151 : vector<96x128xf32>
    %153 = vector.extract_strided_slice %152 {offsets = [0, 0], sizes = [16, 1], strides = [1, 1]} : vector<96x128xf32> to vector<16x1xf32>
    %154 = vector.extract_strided_slice %152 {offsets = [16, 0], sizes = [16, 1], strides = [1, 1]} : vector<96x128xf32> to vector<16x1xf32>
    %cst_97 = arith.constant 0.000000e+00 : f32
    %155 = vector.broadcast %cst_97 : f32 to vector<16x1xf32>
    %156 = arith.maximumf %154, %155 : vector<16x1xf32>
    %157 = math.absf %154 : vector<16x1xf32>
    %cst_98 = arith.constant 0.000000e+00 : f32
    %158 = vector.broadcast %cst_98 : f32 to vector<16x1xf32>
    %159 = arith.subf %158, %157 : vector<16x1xf32>
    %160 = math.exp %159 : vector<16x1xf32>
    %cst_99 = arith.constant 1.000000e+00 : f32
    %161 = vector.broadcast %cst_99 : f32 to vector<16x1xf32>
    %162 = arith.addf %161, %160 : vector<16x1xf32>
    %163 = math.log %162 : vector<16x1xf32>
    %164 = arith.addf %156, %163 : vector<16x1xf32>
    %c0_100 = arith.constant 0 : index
    %c0_101 = arith.constant 0 : index
    %165 = vector.load %arg6[%c0_100, %c0_101] : memref<32x1xf32, #tpu.memory_space<vmem>>, vector<16x1xf32>
    tpu.vector_store %arg6[%c0_100, %c0_101], %153 {strides = array<i32>} : memref<32x1xf32, #tpu.memory_space<vmem>>, vector<16x1xf32>,
    %cst_102 = arith.constant 9.99999974E-6 : f32
    %cst_103 = arith.constant 5.000000e+00 : f32
    %166 = vector.broadcast %cst_102 : f32 to vector<16x1xf32>
    %167 = arith.maximumf %166, %164 : vector<16x1xf32>
    %168 = vector.broadcast %cst_103 : f32 to vector<16x1xf32>
    %169 = arith.minimumf %168, %167 : vector<16x1xf32>
    %c16 = arith.constant 16 : index
    %c0_104 = arith.constant 0 : index
    %170 = vector.load %arg6[%c16, %c0_104] : memref<32x1xf32, #tpu.memory_space<vmem>>, vector<16x1xf32>
    tpu.vector_store %arg6[%c16, %c0_104], %169 {strides = array<i32>} : memref<32x1xf32, #tpu.memory_space<vmem>>, vector<16x1xf32>,
    %171 = vector.extract_strided_slice %152 {offsets = [32, 0], sizes = [64, 128], strides = [1, 1]} : vector<96x128xf32> to vector<64x128xf32>
    %172 = arith.truncf %171 : vector<64x128xf32> to vector<64x128xbf16>
    %c5_105 = arith.constant 5 : index
    %c0_106 = arith.constant 0 : index
    %c0_107 = arith.constant 0 : index
    %173 = vector.load %arg4[%c5_105, %c0_106, %c0_107] : memref<10x128x384xbf16, #tpu.memory_space<vmem>>, vector<1x128x384xbf16>
    %174 = vector.shape_cast %173 : vector<1x128x384xbf16> to vector<128x384xbf16>
    %cst_108 = arith.constant dense<0.000000e+00> : vector<64x384xf32>
    %175 = tpu.matmul %172, %174, %cst_108 {dimension_numbers = #tpu.dot_dimension_numbers<[1], [0], [0], [1], [0, 0, 1, 1], [], []>} : vector<64x128xbf16>, vector<128x384xbf16>, vector<64x384xf32> -> vector<64x384xf32>
    %176 = arith.truncf %175 : vector<64x384xf32> to vector<64x384xbf16>
    %c0_109 = arith.constant 0 : index
    %c9_110 = arith.constant 9 : index
    %177 = vector.load %arg2[%c0_109, %c9_110] : memref<96x14xf32, #tpu.memory_space<vmem>>, vector<64x1xf32>
    %c15 = arith.constant 15 : index
    %c0_111 = arith.constant 0 : index
    %c0_112 = arith.constant 0 : index
    %178 = vector.load %arg3[%c15, %c0_111, %c0_112] : memref<30x64x64xbf16, #tpu.memory_space<vmem>>, vector<1x64x64xbf16>
    %179 = vector.shape_cast %178 : vector<1x64x64xbf16> to vector<64x64xbf16>
    %180 = vector.extract_strided_slice %176 {offsets = [0, 0], sizes = [64, 128], strides = [1, 1]} : vector<64x384xbf16> to vector<64x128xbf16>
    %cst_113 = arith.constant dense<0.000000e+00> : vector<64x128xf32>
    %181 = tpu.matmul %179, %180, %cst_113 {dimension_numbers = #tpu.dot_dimension_numbers<[1], [0], [0], [1], [0, 0, 1, 1], [], []>} : vector<64x64xbf16>, vector<64x128xbf16>, vector<64x128xf32> -> vector<64x128xf32>
    %182 = vector.broadcast %177 : vector<64x1xf32> to vector<64x128xf32>
    %183 = arith.addf %182, %181 : vector<64x128xf32>
    %c16_114 = arith.constant 16 : index
    %c0_115 = arith.constant 0 : index
    %c0_116 = arith.constant 0 : index
    %184 = vector.load %arg3[%c16_114, %c0_115, %c0_116] : memref<30x64x64xbf16, #tpu.memory_space<vmem>>, vector<1x64x64xbf16>
    %185 = vector.shape_cast %184 : vector<1x64x64xbf16> to vector<64x64xbf16>
    %186 = vector.extract_strided_slice %176 {offsets = [0, 128], sizes = [64, 128], strides = [1, 1]} : vector<64x384xbf16> to vector<64x128xbf16>
    %cst_117 = arith.constant dense<0.000000e+00> : vector<64x128xf32>
    %187 = tpu.matmul %185, %186, %cst_117 {dimension_numbers = #tpu.dot_dimension_numbers<[1], [0], [0], [1], [0, 0, 1, 1], [], []>} : vector<64x64xbf16>, vector<64x128xbf16>, vector<64x128xf32> -> vector<64x128xf32>
    %188 = arith.addf %183, %187 : vector<64x128xf32>
    %c17 = arith.constant 17 : index
    %c0_118 = arith.constant 0 : index
    %c0_119 = arith.constant 0 : index
    %189 = vector.load %arg3[%c17, %c0_118, %c0_119] : memref<30x64x64xbf16, #tpu.memory_space<vmem>>, vector<1x64x64xbf16>
    %190 = vector.shape_cast %189 : vector<1x64x64xbf16> to vector<64x64xbf16>
    %191 = vector.extract_strided_slice %176 {offsets = [0, 256], sizes = [64, 128], strides = [1, 1]} : vector<64x384xbf16> to vector<64x128xbf16>
    %cst_120 = arith.constant dense<0.000000e+00> : vector<64x128xf32>
    %192 = tpu.matmul %190, %191, %cst_120 {dimension_numbers = #tpu.dot_dimension_numbers<[1], [0], [0], [1], [0, 0, 1, 1], [], []>} : vector<64x64xbf16>, vector<64x128xbf16>, vector<64x128xf32> -> vector<64x128xf32>
    %193 = arith.addf %188, %192 : vector<64x128xf32>
    %cst_121 = arith.constant 0.000000e+00 : f32
    %194 = vector.broadcast %cst_121 : f32 to vector<64x128xf32>
    %195 = arith.maximumf %193, %194 : vector<64x128xf32>
    %196 = arith.truncf %195 : vector<64x128xf32> to vector<64x128xbf16>
    %c6_122 = arith.constant 6 : index
    %c0_123 = arith.constant 0 : index
    %c0_124 = arith.constant 0 : index
    %197 = vector.load %arg4[%c6_122, %c0_123, %c0_124] : memref<10x128x384xbf16, #tpu.memory_space<vmem>>, vector<1x128x384xbf16>
    %198 = vector.shape_cast %197 : vector<1x128x384xbf16> to vector<128x384xbf16>
    %cst_125 = arith.constant dense<0.000000e+00> : vector<64x384xf32>
    %199 = tpu.matmul %196, %198, %cst_125 {dimension_numbers = #tpu.dot_dimension_numbers<[1], [0], [0], [1], [0, 0, 1, 1], [], []>} : vector<64x128xbf16>, vector<128x384xbf16>, vector<64x384xf32> -> vector<64x384xf32>
    %200 = arith.truncf %199 : vector<64x384xf32> to vector<64x384xbf16>
    %c0_126 = arith.constant 0 : index
    %c10_127 = arith.constant 10 : index
    %201 = vector.load %arg2[%c0_126, %c10_127] : memref<96x14xf32, #tpu.memory_space<vmem>>, vector<64x1xf32>
    %c18 = arith.constant 18 : index
    %c0_128 = arith.constant 0 : index
    %c0_129 = arith.constant 0 : index
    %202 = vector.load %arg3[%c18, %c0_128, %c0_129] : memref<30x64x64xbf16, #tpu.memory_space<vmem>>, vector<1x64x64xbf16>
    %203 = vector.shape_cast %202 : vector<1x64x64xbf16> to vector<64x64xbf16>
    %204 = vector.extract_strided_slice %200 {offsets = [0, 0], sizes = [64, 128], strides = [1, 1]} : vector<64x384xbf16> to vector<64x128xbf16>
    %cst_130 = arith.constant dense<0.000000e+00> : vector<64x128xf32>
    %205 = tpu.matmul %203, %204, %cst_130 {dimension_numbers = #tpu.dot_dimension_numbers<[1], [0], [0], [1], [0, 0, 1, 1], [], []>} : vector<64x64xbf16>, vector<64x128xbf16>, vector<64x128xf32> -> vector<64x128xf32>
    %206 = vector.broadcast %201 : vector<64x1xf32> to vector<64x128xf32>
    %207 = arith.addf %206, %205 : vector<64x128xf32>
    %c19 = arith.constant 19 : index
    %c0_131 = arith.constant 0 : index
    %c0_132 = arith.constant 0 : index
    %208 = vector.load %arg3[%c19, %c0_131, %c0_132] : memref<30x64x64xbf16, #tpu.memory_space<vmem>>, vector<1x64x64xbf16>
    %209 = vector.shape_cast %208 : vector<1x64x64xbf16> to vector<64x64xbf16>
    %210 = vector.extract_strided_slice %200 {offsets = [0, 128], sizes = [64, 128], strides = [1, 1]} : vector<64x384xbf16> to vector<64x128xbf16>
    %cst_133 = arith.constant dense<0.000000e+00> : vector<64x128xf32>
    %211 = tpu.matmul %209, %210, %cst_133 {dimension_numbers = #tpu.dot_dimension_numbers<[1], [0], [0], [1], [0, 0, 1, 1], [], []>} : vector<64x64xbf16>, vector<64x128xbf16>, vector<64x128xf32> -> vector<64x128xf32>
    %212 = arith.addf %207, %211 : vector<64x128xf32>
    %c20 = arith.constant 20 : index
    %c0_134 = arith.constant 0 : index
    %c0_135 = arith.constant 0 : index
    %213 = vector.load %arg3[%c20, %c0_134, %c0_135] : memref<30x64x64xbf16, #tpu.memory_space<vmem>>, vector<1x64x64xbf16>
    %214 = vector.shape_cast %213 : vector<1x64x64xbf16> to vector<64x64xbf16>
    %215 = vector.extract_strided_slice %200 {offsets = [0, 256], sizes = [64, 128], strides = [1, 1]} : vector<64x384xbf16> to vector<64x128xbf16>
    %cst_136 = arith.constant dense<0.000000e+00> : vector<64x128xf32>
    %216 = tpu.matmul %214, %215, %cst_136 {dimension_numbers = #tpu.dot_dimension_numbers<[1], [0], [0], [1], [0, 0, 1, 1], [], []>} : vector<64x64xbf16>, vector<64x128xbf16>, vector<64x128xf32> -> vector<64x128xf32>
    %217 = arith.addf %212, %216 : vector<64x128xf32>
    %cst_137 = arith.constant 0.000000e+00 : f32
    %218 = vector.broadcast %cst_137 : f32 to vector<64x128xf32>
    %219 = arith.maximumf %217, %218 : vector<64x128xf32>
    %220 = arith.truncf %219 : vector<64x128xf32> to vector<64x128xbf16>
    %c7_138 = arith.constant 7 : index
    %c0_139 = arith.constant 0 : index
    %c0_140 = arith.constant 0 : index
    %221 = vector.load %arg4[%c7_138, %c0_139, %c0_140] : memref<10x128x384xbf16, #tpu.memory_space<vmem>>, vector<1x128x384xbf16>
    %222 = vector.shape_cast %221 : vector<1x128x384xbf16> to vector<128x384xbf16>
    %cst_141 = arith.constant dense<0.000000e+00> : vector<64x384xf32>
    %223 = tpu.matmul %220, %222, %cst_141 {dimension_numbers = #tpu.dot_dimension_numbers<[1], [0], [0], [1], [0, 0, 1, 1], [], []>} : vector<64x128xbf16>, vector<128x384xbf16>, vector<64x384xf32> -> vector<64x384xf32>
    %224 = arith.truncf %223 : vector<64x384xf32> to vector<64x384xbf16>
    %c0_142 = arith.constant 0 : index
    %c11_143 = arith.constant 11 : index
    %225 = vector.load %arg2[%c0_142, %c11_143] : memref<96x14xf32, #tpu.memory_space<vmem>>, vector<64x1xf32>
    %c21 = arith.constant 21 : index
    %c0_144 = arith.constant 0 : index
    %c0_145 = arith.constant 0 : index
    %226 = vector.load %arg3[%c21, %c0_144, %c0_145] : memref<30x64x64xbf16, #tpu.memory_space<vmem>>, vector<1x64x64xbf16>
    %227 = vector.shape_cast %226 : vector<1x64x64xbf16> to vector<64x64xbf16>
    %228 = vector.extract_strided_slice %224 {offsets = [0, 0], sizes = [64, 128], strides = [1, 1]} : vector<64x384xbf16> to vector<64x128xbf16>
    %cst_146 = arith.constant dense<0.000000e+00> : vector<64x128xf32>
    %229 = tpu.matmul %227, %228, %cst_146 {dimension_numbers = #tpu.dot_dimension_numbers<[1], [0], [0], [1], [0, 0, 1, 1], [], []>} : vector<64x64xbf16>, vector<64x128xbf16>, vector<64x128xf32> -> vector<64x128xf32>
    %230 = vector.broadcast %225 : vector<64x1xf32> to vector<64x128xf32>
    %231 = arith.addf %230, %229 : vector<64x128xf32>
    %c22 = arith.constant 22 : index
    %c0_147 = arith.constant 0 : index
    %c0_148 = arith.constant 0 : index
    %232 = vector.load %arg3[%c22, %c0_147, %c0_148] : memref<30x64x64xbf16, #tpu.memory_space<vmem>>, vector<1x64x64xbf16>
    %233 = vector.shape_cast %232 : vector<1x64x64xbf16> to vector<64x64xbf16>
    %234 = vector.extract_strided_slice %224 {offsets = [0, 128], sizes = [64, 128], strides = [1, 1]} : vector<64x384xbf16> to vector<64x128xbf16>
    %cst_149 = arith.constant dense<0.000000e+00> : vector<64x128xf32>
    %235 = tpu.matmul %233, %234, %cst_149 {dimension_numbers = #tpu.dot_dimension_numbers<[1], [0], [0], [1], [0, 0, 1, 1], [], []>} : vector<64x64xbf16>, vector<64x128xbf16>, vector<64x128xf32> -> vector<64x128xf32>
    %236 = arith.addf %231, %235 : vector<64x128xf32>
    %c23 = arith.constant 23 : index
    %c0_150 = arith.constant 0 : index
    %c0_151 = arith.constant 0 : index
    %237 = vector.load %arg3[%c23, %c0_150, %c0_151] : memref<30x64x64xbf16, #tpu.memory_space<vmem>>, vector<1x64x64xbf16>
    %238 = vector.shape_cast %237 : vector<1x64x64xbf16> to vector<64x64xbf16>
    %239 = vector.extract_strided_slice %224 {offsets = [0, 256], sizes = [64, 128], strides = [1, 1]} : vector<64x384xbf16> to vector<64x128xbf16>
    %cst_152 = arith.constant dense<0.000000e+00> : vector<64x128xf32>
    %240 = tpu.matmul %238, %239, %cst_152 {dimension_numbers = #tpu.dot_dimension_numbers<[1], [0], [0], [1], [0, 0, 1, 1], [], []>} : vector<64x64xbf16>, vector<64x128xbf16>, vector<64x128xf32> -> vector<64x128xf32>
    %241 = arith.addf %236, %240 : vector<64x128xf32>
    %cst_153 = arith.constant 0.000000e+00 : f32
    %242 = vector.broadcast %cst_153 : f32 to vector<64x128xf32>
    %243 = arith.maximumf %241, %242 : vector<64x128xf32>
    %244 = arith.truncf %243 : vector<64x128xf32> to vector<64x128xbf16>
    %c8_154 = arith.constant 8 : index
    %c0_155 = arith.constant 0 : index
    %c0_156 = arith.constant 0 : index
    %245 = vector.load %arg4[%c8_154, %c0_155, %c0_156] : memref<10x128x384xbf16, #tpu.memory_space<vmem>>, vector<1x128x384xbf16>
    %246 = vector.shape_cast %245 : vector<1x128x384xbf16> to vector<128x384xbf16>
    %cst_157 = arith.constant dense<0.000000e+00> : vector<64x384xf32>
    %247 = tpu.matmul %244, %246, %cst_157 {dimension_numbers = #tpu.dot_dimension_numbers<[1], [0], [0], [1], [0, 0, 1, 1], [], []>} : vector<64x128xbf16>, vector<128x384xbf16>, vector<64x384xf32> -> vector<64x384xf32>
    %248 = arith.truncf %247 : vector<64x384xf32> to vector<64x384xbf16>
    %c0_158 = arith.constant 0 : index
    %c12_159 = arith.constant 12 : index
    %249 = vector.load %arg2[%c0_158, %c12_159] : memref<96x14xf32, #tpu.memory_space<vmem>>, vector<64x1xf32>
    %c24 = arith.constant 24 : index
    %c0_160 = arith.constant 0 : index
    %c0_161 = arith.constant 0 : index
    %250 = vector.load %arg3[%c24, %c0_160, %c0_161] : memref<30x64x64xbf16, #tpu.memory_space<vmem>>, vector<1x64x64xbf16>
    %251 = vector.shape_cast %250 : vector<1x64x64xbf16> to vector<64x64xbf16>
    %252 = vector.extract_strided_slice %248 {offsets = [0, 0], sizes = [64, 128], strides = [1, 1]} : vector<64x384xbf16> to vector<64x128xbf16>
    %cst_162 = arith.constant dense<0.000000e+00> : vector<64x128xf32>
    %253 = tpu.matmul %251, %252, %cst_162 {dimension_numbers = #tpu.dot_dimension_numbers<[1], [0], [0], [1], [0, 0, 1, 1], [], []>} : vector<64x64xbf16>, vector<64x128xbf16>, vector<64x128xf32> -> vector<64x128xf32>
    %254 = vector.broadcast %249 : vector<64x1xf32> to vector<64x128xf32>
    %255 = arith.addf %254, %253 : vector<64x128xf32>
    %c25 = arith.constant 25 : index
    %c0_163 = arith.constant 0 : index
    %c0_164 = arith.constant 0 : index
    %256 = vector.load %arg3[%c25, %c0_163, %c0_164] : memref<30x64x64xbf16, #tpu.memory_space<vmem>>, vector<1x64x64xbf16>
    %257 = vector.shape_cast %256 : vector<1x64x64xbf16> to vector<64x64xbf16>
    %258 = vector.extract_strided_slice %248 {offsets = [0, 128], sizes = [64, 128], strides = [1, 1]} : vector<64x384xbf16> to vector<64x128xbf16>
    %cst_165 = arith.constant dense<0.000000e+00> : vector<64x128xf32>
    %259 = tpu.matmul %257, %258, %cst_165 {dimension_numbers = #tpu.dot_dimension_numbers<[1], [0], [0], [1], [0, 0, 1, 1], [], []>} : vector<64x64xbf16>, vector<64x128xbf16>, vector<64x128xf32> -> vector<64x128xf32>
    %260 = arith.addf %255, %259 : vector<64x128xf32>
    %c26 = arith.constant 26 : index
    %c0_166 = arith.constant 0 : index
    %c0_167 = arith.constant 0 : index
    %261 = vector.load %arg3[%c26, %c0_166, %c0_167] : memref<30x64x64xbf16, #tpu.memory_space<vmem>>, vector<1x64x64xbf16>
    %262 = vector.shape_cast %261 : vector<1x64x64xbf16> to vector<64x64xbf16>
    %263 = vector.extract_strided_slice %248 {offsets = [0, 256], sizes = [64, 128], strides = [1, 1]} : vector<64x384xbf16> to vector<64x128xbf16>
    %cst_168 = arith.constant dense<0.000000e+00> : vector<64x128xf32>
    %264 = tpu.matmul %262, %263, %cst_168 {dimension_numbers = #tpu.dot_dimension_numbers<[1], [0], [0], [1], [0, 0, 1, 1], [], []>} : vector<64x64xbf16>, vector<64x128xbf16>, vector<64x128xf32> -> vector<64x128xf32>
    %265 = arith.addf %260, %264 : vector<64x128xf32>
    %cst_169 = arith.constant 0.000000e+00 : f32
    %266 = vector.broadcast %cst_169 : f32 to vector<64x128xf32>
    %267 = arith.maximumf %265, %266 : vector<64x128xf32>
    %268 = arith.truncf %267 : vector<64x128xf32> to vector<64x128xbf16>
    %c9_170 = arith.constant 9 : index
    %c0_171 = arith.constant 0 : index
    %c0_172 = arith.constant 0 : index
    %269 = vector.load %arg4[%c9_170, %c0_171, %c0_172] : memref<10x128x384xbf16, #tpu.memory_space<vmem>>, vector<1x128x384xbf16>
    %270 = vector.shape_cast %269 : vector<1x128x384xbf16> to vector<128x384xbf16>
    %cst_173 = arith.constant dense<0.000000e+00> : vector<64x384xf32>
    %271 = tpu.matmul %268, %270, %cst_173 {dimension_numbers = #tpu.dot_dimension_numbers<[1], [0], [0], [1], [0, 0, 1, 1], [], []>} : vector<64x128xbf16>, vector<128x384xbf16>, vector<64x384xf32> -> vector<64x384xf32>
    %272 = arith.truncf %271 : vector<64x384xf32> to vector<64x384xbf16>
    %c0_174 = arith.constant 0 : index
    %c13_175 = arith.constant 13 : index
    %273 = vector.load %arg2[%c0_174, %c13_175] : memref<96x14xf32, #tpu.memory_space<vmem>>, vector<64x1xf32>
    %c27 = arith.constant 27 : index
    %c0_176 = arith.constant 0 : index
    %c0_177 = arith.constant 0 : index
    %274 = vector.load %arg3[%c27, %c0_176, %c0_177] : memref<30x64x64xbf16, #tpu.memory_space<vmem>>, vector<1x64x64xbf16>
    %275 = vector.shape_cast %274 : vector<1x64x64xbf16> to vector<64x64xbf16>
    %276 = vector.extract_strided_slice %272 {offsets = [0, 0], sizes = [64, 128], strides = [1, 1]} : vector<64x384xbf16> to vector<64x128xbf16>
    %cst_178 = arith.constant dense<0.000000e+00> : vector<64x128xf32>
    %277 = tpu.matmul %275, %276, %cst_178 {dimension_numbers = #tpu.dot_dimension_numbers<[1], [0], [0], [1], [0, 0, 1, 1], [], []>} : vector<64x64xbf16>, vector<64x128xbf16>, vector<64x128xf32> -> vector<64x128xf32>
    %278 = vector.broadcast %273 : vector<64x1xf32> to vector<64x128xf32>
    %279 = arith.addf %278, %277 : vector<64x128xf32>
    %c28 = arith.constant 28 : index
    %c0_179 = arith.constant 0 : index
    %c0_180 = arith.constant 0 : index
    %280 = vector.load %arg3[%c28, %c0_179, %c0_180] : memref<30x64x64xbf16, #tpu.memory_space<vmem>>, vector<1x64x64xbf16>
    %281 = vector.shape_cast %280 : vector<1x64x64xbf16> to vector<64x64xbf16>
    %282 = vector.extract_strided_slice %272 {offsets = [0, 128], sizes = [64, 128], strides = [1, 1]} : vector<64x384xbf16> to vector<64x128xbf16>
    %cst_181 = arith.constant dense<0.000000e+00> : vector<64x128xf32>
    %283 = tpu.matmul %281, %282, %cst_181 {dimension_numbers = #tpu.dot_dimension_numbers<[1], [0], [0], [1], [0, 0, 1, 1], [], []>} : vector<64x64xbf16>, vector<64x128xbf16>, vector<64x128xf32> -> vector<64x128xf32>
    %284 = arith.addf %279, %283 : vector<64x128xf32>
    %c29 = arith.constant 29 : index
    %c0_182 = arith.constant 0 : index
    %c0_183 = arith.constant 0 : index
    %285 = vector.load %arg3[%c29, %c0_182, %c0_183] : memref<30x64x64xbf16, #tpu.memory_space<vmem>>, vector<1x64x64xbf16>
    %286 = vector.shape_cast %285 : vector<1x64x64xbf16> to vector<64x64xbf16>
    %287 = vector.extract_strided_slice %272 {offsets = [0, 256], sizes = [64, 128], strides = [1, 1]} : vector<64x384xbf16> to vector<64x128xbf16>
    %cst_184 = arith.constant dense<0.000000e+00> : vector<64x128xf32>
    %288 = tpu.matmul %286, %287, %cst_184 {dimension_numbers = #tpu.dot_dimension_numbers<[1], [0], [0], [1], [0, 0, 1, 1], [], []>} : vector<64x64xbf16>, vector<64x128xbf16>, vector<64x128xf32> -> vector<64x128xf32>
    %289 = arith.addf %284, %288 : vector<64x128xf32>
    %290 = vector.broadcast %16 : vector<64x1xf32> to vector<64x128xf32>
    %291 = arith.subf %289, %290 : vector<64x128xf32>
    %292 = vector.broadcast %17 : vector<64x1xf32> to vector<64x128xf32>
    %293 = arith.mulf %291, %292 : vector<64x128xf32>
    %294 = vector.broadcast %14 : vector<64x1xf32> to vector<64x128xf32>
    %295 = arith.mulf %293, %294 : vector<64x128xf32>
    %296 = vector.broadcast %4 : vector<64x1xf32> to vector<64x128xf32>
    %297 = arith.addf %295, %296 : vector<64x128xf32>
    %298 = vector.extract_strided_slice %297 {offsets = [0, 0], sizes = [8, 32], strides = [1, 1]} : vector<64x128xf32> to vector<8x32xf32>
    %c0_185 = arith.constant 0 : index
    %c0_186 = arith.constant 0 : index
    %299 = vector.load %arg7[%c0_185, %c0_186] : memref<8x32xf32, #tpu.memory_space<vmem>>, vector<8x32xf32>
    tpu.vector_store %arg7[%c0_185, %c0_186], %298 {strides = array<i32>} : memref<8x32xf32, #tpu.memory_space<vmem>>, vector<8x32xf32>,
    return
  }
  func.func @transform_0(%arg0: i32) -> (i32, i32) {
    %c0_i32 = arith.constant 0 : i32
    %c0_i32_0 = arith.constant 0 : i32
    %c0_i32_1 = arith.constant 0 : i32
    return %c0_i32, %c0_i32_0 : i32, i32
  }
  func.func @transform_1(%arg0: i32) -> (i32, i32) {
    %c0_i32 = arith.constant 0 : i32
    %c0_i32_0 = arith.constant 0 : i32
    %c0_i32_1 = arith.constant 0 : i32
    return %c0_i32, %c0_i32_0 : i32, i32
  }
  func.func @transform_2(%arg0: i32) -> (i32, i32, i32) {
    %c0_i32 = arith.constant 0 : i32
    %c0_i32_0 = arith.constant 0 : i32
    %c0_i32_1 = arith.constant 0 : i32
    %c0_i32_2 = arith.constant 0 : i32
    return %c0_i32, %c0_i32_0, %c0_i32_1 : i32, i32, i32
  }
  func.func @transform_3(%arg0: i32) -> (i32, i32, i32) {
    %c0_i32 = arith.constant 0 : i32
    %c0_i32_0 = arith.constant 0 : i32
    %c0_i32_1 = arith.constant 0 : i32
    %c0_i32_2 = arith.constant 0 : i32
    return %c0_i32, %c0_i32_0, %c0_i32_1 : i32, i32, i32
  }
  func.func @transform_4(%arg0: i32) -> (i32, i32) {
    %c0_i32 = arith.constant 0 : i32
    %c0_i32_0 = arith.constant 0 : i32
    %c0_i32_1 = arith.constant 0 : i32
    return %c0_i32, %c0_i32_0 : i32, i32
  }
  func.func @transform_5(%arg0: i32) -> (i32, i32) {
    %c0_i32 = arith.constant 0 : i32
    %c0_i32_0 = arith.constant 0 : i32
    %c0_i32_1 = arith.constant 0 : i32
    return %c0_i32, %c0_i32_0 : i32, i32
  }
  func.func @transform_6(%arg0: i32) -> (i32, i32) {
    %c0_i32 = arith.constant 0 : i32
    %c0_i32_0 = arith.constant 0 : i32
    %c0_i32_1 = arith.constant 0 : i32
    return %c0_i32, %c0_i32_0 : i32, i32
  }
}

</mosaic_0001>

<bundles_post_ra>
// kernel: squeeze.2
= control target key start
LH: loop header
LB: loop body
LE: loop exit
PB: predicated region body
PF: predicated region fallthrough
CT: control target
= control target key end

     0   :  { %s80_s0 = inlined_call_operand.vmem [shape: f32[16], index: 0, kind: input, shape index: {}]   ;;  %s81_s1 = inlined_call_operand.hbm [shape: f32[2,8], index: 1, kind: output, shape index: {}]  }
   0x1   :  { %v5_v0 = vld [vmem:[%s80_s0] sm:$0x1] }
   0x2   :  { %2 = vsyncpa [#allocation1], 0  ;;  %6 = vst [vmem:[#allocation3] sm:$0x1] %v5_v0  ;;  %vm8_vm0 = vcmask 64512   ;;  %s62_s0 = smov 120  }
   0x3   :  { %s63_s8 = smov [#allocation0]   ;;  %s27_s1 = sshll.u32 %s81_s1, 4  ;;  %s28_s1 = int_to_ptr.hbm [resolvable:$true] %s27_s1 }
   0x4   :  { %s25_s9 = sshll.u32 %s63_s8, 4  ;;  %s26_s9 = int_to_ptr.vmem [resolvable:$true] %s25_s9 }
   0x9   :  { %v10_v1 = vld [vmem:[#allocation3] sm:$0x1]  }
   0xa   :  { %v7_v2 = vld [vmem:[#allocation3] sm:$0x1]   ;;  %11 = vrot.lane.b32.xlu0 %v10_v1, %s62_s0 }
   0xb   :  { %9 = vst.msk [vmem:[#allocation2] sm:$0x1] %vm8_vm0, %v7_v2  }
  0x7c   :  { %v12_v3 = vpop.permute.xlu0 %11  }
  0x7d   :  { %15 = vst.msk [vmem:[#allocation2 + $0x1] sm:$0x1] %vm8_vm0, %v12_v3  }
  0x84   :  { %v18_v4 = vld [vmem:[#allocation2] sm:$0x3] }
  0x85   :  { %21 = vst [vmem:[#allocation0] sm:$0x3] %v18_v4 }
  0x86   :  { %30 = dma.vmem_to_hbm [thread:$0]  %s26_s9, 32, %s28_s1, [#allocation1]  }
  0x87   :  { %60 = dma.done.wait [#allocation1], 32  }
  0x88   :  { %61 = vsyncadd [#allocation1], 4294967264 }
  0x89   :  { %33 = vsyncpa [#allocation1], 1 }

// kernel: cvae_forward.1
= control target key start
LH: loop header
LB: loop body
LE: loop exit
PB: predicated region body
PF: predicated region fallthrough
CT: control target
= control target key end

     0   :  { %12 = vsyncpa [#allocation3], 0  ;;  %s9706_s0 = inlined_call_operand.vmem [shape: f32[64,128], index: 0, kind: input, shape index: {}]   ;;  %s9707_s1 = inlined_call_operand.vmem [shape: f32[96,14], index: 1, kind: input, shape index: {}]   ;;  %s9708_s2 = inlined_call_operand.hbm [shape: bf16[30,64,64], index: 2, kind: input, shape index: {}]   ;;  %s9709_s3 = inlined_call_operand.hbm [shape: bf16[10,128,384], index: 3, kind: input, shape index: {}]   ;;  %s9710_s4 = inlined_call_operand.vmem [shape: bf16[96,64], index: 4, kind: input, shape index: {}]   ;;  %s9711_s5 = inlined_call_operand.vmem [shape: f32[32,1], index: 5, kind: output, shape index: {0}]   ;;  %s9712_s6 = inlined_call_operand.hbm [shape: f32[8,32], index: 6, kind: output, shape index: {1}]  }
   0x1   :  { %13 = vsyncpa [#allocation6], 0 }
   0x2   :  { %14 = vsyncpa [#allocation4], 0  ;;  %s23_s23 = sshll.u32 %s9708_s2, 4  ;;  %s8719_s24 = smov [#allocation2]   ;;  %s24_s23 = int_to_ptr.hbm [resolvable:$true] %s23_s23 }
   0x3   :  { %s25_s25 = sshll.u32 %s8719_s24, 4  ;;  %s36_s28 = sshll.u32 %s9709_s3, 4  ;;  %s26_s25 = int_to_ptr.vmem [resolvable:$true] %s25_s25  ;;  %s37_s28 = int_to_ptr.hbm [resolvable:$true] %s36_s28 }
   0x4   :  { %s8720_s29 = smov 64   ;;  %s8721_s30 = smov 4  }
   0x5   :  { %31 = dma.hbm_to_vmem [thread:$0]  %s24_s23, 15360, %s26_s25, [#allocation3], %s8720_s29, %s8720_s29, %s8721_s30  }
   0x6   :  { %s8722_s7 = smov [#allocation5]   ;;  %s8723_s9 = smov 192  }
   0x7   :  { %s38_s8 = sshll.u32 %s8722_s7, 4  ;;  %s8724_s10 = smov 12   ;;  %s39_s8 = int_to_ptr.vmem [resolvable:$true] %s38_s8 }
   0x8   :  { %44 = dma.hbm_to_vmem [thread:$0]  %s37_s28, 30720, %s39_s8, [#allocation6], %s8723_s9, %s8723_s9, %s8724_s10  }
   0x9   :  { %8713 = dma.done.wait [#allocation3], 15360  }
   0xa   :  { %8714 = vsyncadd [#allocation3], 4294951936 }
   0xb   :  { %8715 = dma.done.wait [#allocation6], 30720  }
   0xc   :  { %8716 = vsyncadd [#allocation6], 4294936576  ;;  %v8725_v0 = vmov 1   ;;  %v8786_v1 = vld [vmem:[%s9706_s0 + $0x10] sm:$0xff]  ;;  %v8791_v2 = vld [vmem:[%s9706_s0] sm:$0xff]  ;;  %v8726_v4 = vmov 0  }
   0xd   :  { %8554 = vset.pattern.permute.xlu2 %v8725_v0  ;;  %8553 = vset.pattern.permute.xlu1 %v8725_v0  ;;  %v88_v3 = vmul.f32 %v8791_v2, %v8791_v2  ;;  %v8801_v5 = vld [vmem:[%s9706_s0 + $0x8] sm:$0xff]  ;;  %v8806_v6 = vld [vmem:[%s9706_s0 + $0x18] sm:$0xff]  ;;  %v90_v8 = vmul.f32 %v8786_v1, %v8786_v1  ;;  %v8826_v11 = vld [vmem:[%s9707_s1] sm:$0xff]  ;;  %s6558_s12 = sshll.u32 %s9712_s6, 4  ;;  %s6559_s12 = int_to_ptr.hbm [resolvable:$true] %s6558_s12 }
   0xe   :  { %68 = vadd.xlane.f32.xlu2 %v8786_v1  ;;  %64 = vadd.xlane.f32.xlu0 %v8791_v2  ;;  %v89_v7 = vmul.f32 %v8801_v5, %v8801_v5  ;;  %v91_v9 = vmul.f32 %v8806_v6, %v8806_v6  ;;  %v8819_v10 = vld [vmem:[%s9707_s1 + $0x8] sm:$0xff]  ;;  %v8835_v12 = vld [vmem:[%s9706_s0 + $0x20] sm:$0xff]  ;;  %v8851_v16 = vld [vmem:[%s9707_s1 + $0x10] sm:$0xff] }
   0xf   :  { %8552 = vset.pattern.permute.xlu0 %v8726_v4  ;;  %96 = vadd.xlane.f32.xlu1 %v88_v3  ;;  %v92_v13 = vmul.f32 %v8835_v12, %v8835_v12  ;;  %v8843_v14 = vld [vmem:[%s9706_s0 + $0x28] sm:$0xff]  ;;  %v8859_v17 = vld [vmem:[%s9707_s1 + $0x18] sm:$0xff]  ;;  %v8183_v27 = vld [vmem:[#allocation5 + $0xb0] sm:$0xf0] }
  0x10   :  { %v93_v15 = vmul.f32 %v8843_v14, %v8843_v14  ;;  %v6657_v26 = vld [vmem:[#allocation5 + $0xa8] sm:$0xf]  ;;  %v8182_v29 = vld [vmem:[#allocation5 + $0xac] sm:$0xf]  ;;  %v6659_v30 = vld [vmem:[#allocation5 + $0xb4] sm:$0xf0] }
  0x11   :  { %v6658_v28 = vor.u32 %v8183_v27, %v6657_v26  ;;  %v6665_v31 = vld [vmem:[#allocation5 + $0xb0] sm:$0xf]  ;;  %v6662_v34 = vor.u32 %v8182_v29, %v6659_v30  ;;  %v8184_v35 = vld [vmem:[#allocation5 + $0xb8] sm:$0xf0]  ;;  %v8179_v39 = vld [vmem:[#allocation5 + $0x94] sm:$0xf] }
  0x12   :  { %v8879_v33 = vld [vmem:[%s9706_s0 + $0x30] sm:$0xff]  ;;  %v6666_v37 = vor.u32 %v8184_v35, %v6665_v31  ;;  %v8180_v38 = vld [vmem:[#allocation5 + $0x98] sm:$0xf0]  ;;  %v6647_v40 = vld [vmem:[#allocation5 + $0x9c] sm:$0xf0] }
  0x13   :  { %v6645_v36 = vld [vmem:[#allocation5 + $0x90] sm:$0xf]  ;;  %512 = vmatpush.bf16.msra.mxu0 %v6658_v28  ;;  %541 = vmatpush.bf16.msra.mxu1 %v6662_v34  ;;  %v6650_v43 = vor.u32 %v8179_v39, %v6647_v40  ;;  %v6653_v44 = vld [vmem:[#allocation5 + $0x98] sm:$0xf]  ;;  %v8181_v45 = vld [vmem:[#allocation5 + $0xa0] sm:$0xf0]  ;;  %v94_v48 = vmul.f32 %v8879_v33, %v8879_v33 }
  0x14   :  { %v6646_v42 = vor.u32 %v8180_v38, %v6645_v36  ;;  %570 = vmatpush.bf16.msra.mxu2 %v6666_v37  ;;  %v6654_v46 = vor.u32 %v8181_v45, %v6653_v44  ;;  %v6633_v58 = vld [vmem:[#allocation5 + $0x78] sm:$0xf]  ;;  %v8177_v59 = vld [vmem:[#allocation5 + $0x80] sm:$0xf0]  ;;  %v8176_v60 = vld [vmem:[#allocation5 + $0x7c] sm:$0xf] }
  0x15   :  { %v6634_v61 = vor.u32 %v8177_v59, %v6633_v58  ;;  %v6635_v62 = vld [vmem:[#allocation5 + $0x84] sm:$0xf0]  ;;  %v6641_v63 = vld [vmem:[#allocation5 + $0x80] sm:$0xf]  ;;  %v8178_v3 = vld [vmem:[#allocation5 + $0x88] sm:$0xf0] }
  0x16   :  { %70 = vadd.xlane.f32.xlu2 %v8806_v6  ;;  %66 = vadd.xlane.f32.xlu0 %v8801_v5  ;;  %v6623_v27 = vld [vmem:[#allocation5 + $0x6c] sm:$0xf0]  ;;  %v6629_v28 = vld [vmem:[#allocation5 + $0x68] sm:$0xf]  ;;  %v8175_v29 = vld [vmem:[#allocation5 + $0x70] sm:$0xf0] }
  0x17   :  { %98 = vadd.xlane.f32.xlu1 %v89_v7  ;;  %513 = vmatpush.bf16.msra.mxu0 %v6646_v42  ;;  %v6609_v34 = vld [vmem:[#allocation5 + $0x48] sm:$0xf]  ;;  %v8171_v35 = vld [vmem:[#allocation5 + $0x50] sm:$0xf0]  ;;  %v8170_v38 = vld [vmem:[#allocation5 + $0x4c] sm:$0xf] }
  0x18   :  { %542 = vmatpush.bf16.msra.mxu1 %v6650_v43  ;;  %571 = vmatpush.bf16.msra.mxu2 %v6654_v46  ;;  %v6610_v37 = vor.u32 %v8171_v35, %v6609_v34  ;;  %v6611_v39 = vld [vmem:[#allocation5 + $0x54] sm:$0xf0]  ;;  %v6617_v40 = vld [vmem:[#allocation5 + $0x50] sm:$0xf]  ;;  %v8172_v43 = vld [vmem:[#allocation5 + $0x58] sm:$0xf0] }
  0x19   :  { %v6614_v42 = vor.u32 %v8170_v38, %v6611_v39  ;;  %v6618_v44 = vor.u32 %v8172_v43, %v6617_v40  ;;  %v6597_v45 = vld [vmem:[#allocation5 + $0x30] sm:$0xf]  ;;  %v8168_v46 = vld [vmem:[#allocation5 + $0x38] sm:$0xf0]  ;;  %v8165_v58 = vld [vmem:[#allocation5 + $0x20] sm:$0xf0] }
  0x1a   :  { %v8164_v59 = vld [vmem:[#allocation5 + $0x1c] sm:$0xf]  ;;  %v8925_v39 = vld [vmem:[%s9707_s1 + $0x28] sm:$0xff] }
  0x1b   :  { %514 = vmatpush.bf16.msra.mxu0 %v6634_v61  ;;  %v6587_v61 = vld [vmem:[#allocation5 + $0x24] sm:$0xf0] }
  0x1e   :  { %100 = vadd.xlane.f32.xlu0 %v90_v8 }
  0x1f   :  { %102 = vadd.xlane.f32.xlu1 %v91_v9  ;;  %v8903_v9 = vld [vmem:[%s9706_s0 + $0x38] sm:$0xff] }
  0x2e   :  { %313 = vperm.xlu2 %8554, %v8819_v10  }
  0x32   :  { %267 = vperm.xlu0 %8552, %v8819_v10  }
  0x36   :  { %8555 = vset.pattern.permute.xlu2 %v8726_v4 }
  0x38   :  { %309 = vperm.xlu1 %8553, %v8826_v11  }
  0x3a   :  { %8557 = vset.pattern.permute.xlu0 %v8725_v0 }
  0x40   :  { %8556 = vset.pattern.permute.xlu1 %v8726_v4 }
  0x57   :  { %72 = vadd.xlane.f32.xlu2 %v8835_v12 }
  0x5c   :  { %104 = vadd.xlane.f32.xlu0 %v92_v13  ;;  %v6638_v13 = vor.u32 %v8176_v60, %v6635_v62  ;;  %v6593_v62 = vld [vmem:[#allocation5 + $0x20] sm:$0xf] }
  0x5e   :  { %543 = vmatpush.bf16.msra.mxu1 %v6638_v13 }
  0x5f   :  { %106 = vadd.xlane.f32.xlu2 %v93_v15  ;;  %v6642_v15 = vor.u32 %v8178_v3, %v6641_v63  ;;  %v8166_v63 = vld [vmem:[#allocation5 + $0x28] sm:$0xf0]  ;;  %v6590_v3 = vor.u32 %v8164_v59, %v6587_v61 }
  0x61   :  { %572 = vmatpush.bf16.msra.mxu2 %v6642_v15  ;;  %v6573_v15 = vld [vmem:[#allocation5] sm:$0xf] }
  0x62   :  { %74 = vadd.xlane.f32.xlu1 %v8843_v14 }
  0x70   :  { %317 = vperm.xlu0 %8557, %v8851_v16  }
  0x77   :  { %262 = vperm.xlu2 %8555, %v8826_v11  }
  0x7b   :  { %272 = vperm.xlu1 %8556, %v8851_v16  }
  0x7f   :  { %277 = vperm.xlu2 %8555, %v8859_v17  }
  0x81   :  { %v65_v18 = vpop.xlane.xlu0 %64  ;;  %v69_v36 = vpop.xlane.xlu2 %68 }
  0x82   :  { %v8862_v19 = vmul.f32 0.03125, %v65_v18  ;;  %v97_v20 = vpop.xlane.xlu1 %96  ;;  %v8908_v18 = vld [vmem:[%s9707_s1 + $0x20] sm:$0xff] }
  0x83   :  { %v112_v22 = vmul.f32 0.03125, %v97_v20  ;;  %8558 = vset.pattern.permute.xlu1 %v8725_v0  ;;  %v6621_v20 = vld [vmem:[#allocation5 + $0x60] sm:$0xf] }
  0x84   :  { %9715 = vst [vmem:[#allocation11_spill] sm:$0xff] %v8862_v19  ;;  %v120_v21 = vmul.f32 %v8862_v19, %v8862_v19  ;;  %321 = vperm.xlu1 %8558, %v8859_v17   ;;  %v164_v59 = vsub.f32 %v8791_v2, %v8862_v19 }
  0x86   :  { %v128_v23 = vsub.f32 %v112_v22, %v120_v21  ;;  %v8174_v21 = vld [vmem:[#allocation5 + $0x68] sm:$0xf0]  ;;  %v8173_v22 = vld [vmem:[#allocation5 + $0x64] sm:$0xf] }
  0x87   :  { %v6622_v26 = vor.u32 %v8174_v21, %v6621_v20  ;;  %v6626_v31 = vor.u32 %v8173_v22, %v6623_v27  ;;  %v8162_v20 = vld [vmem:[#allocation5 + $0x8] sm:$0xf0]  ;;  %v8161_v21 = vld [vmem:[#allocation5 + $0x4] sm:$0xf]  ;;  %v6581_v27 = vld [vmem:[#allocation5 + $0x8] sm:$0xf] }
  0x88   :  { %v8868_v24 = vadd.f32 1e-05, %v128_v23  ;;  %v95_v23 = vmul.f32 %v8903_v9, %v8903_v9 }
  0x89   :  { %v67_v55 = vpop.xlane.xlu0 %66  ;;  %515 = vmatpush.bf16.msra.mxu0 %v6622_v26  ;;  %544 = vmatpush.bf16.msra.mxu1 %v6626_v31  ;;  %v6575_v26 = vld [vmem:[#allocation5 + $0xc] sm:$0xf0]  ;;  %v8918_v31 = vmul.f32 0.03125, %v69_v36 }
  0x8a   :  { %8600 = vrsqrt.f32 %v8868_v24  ;;  %vm151_vm0 = vcmp.eq.f32.partialorder %v8868_v24, inf  ;;  %v154_v52 = vand.u32 2147483648, %v8868_v24  ;;  %vm153_vm1 = vcmp.eq.f32.partialorder %v8868_v24, 0.0  ;;  %v99_v57 = vpop.xlane.xlu1 %98 }
  0x8b   :  { %v8895_v56 = vmul.f32 0.03125, %v67_v55  ;;  %v113_v8 = vmul.f32 0.03125, %v99_v57  ;;  %v6585_v57 = vld [vmem:[#allocation5 + $0x18] sm:$0xf]  ;;  %v122_v40 = vmul.f32 %v8918_v31, %v8918_v31  ;;  %vm178_vm6 = vweird.f32 %v8868_v24 }
  0x8c   :  { %8559 = vset.pattern.permute.xlu1 %v8726_v4  ;;  %v6586_v60 = vor.u32 %v8165_v58, %v6585_v57 }
  0x8d   :  { %v121_v7 = vmul.f32 %v8895_v56, %v8895_v56  ;;  %516 = vmatpush.bf16.msra.mxu0 %v6610_v37  ;;  %545 = vmatpush.bf16.msra.mxu1 %v6614_v42 }
  0x8f   :  { %v129_v30 = vsub.f32 %v113_v8, %v121_v7  ;;  %v6594_v7 = vor.u32 %v8166_v63, %v6593_v62  ;;  %v71_v8 = vpop.xlane.xlu2 %70 }
  0x90   :  { %v8872_v25 = vpop.eup %8600  ;;  %v8920_v37 = vmul.f32 0.03125, %v71_v8 }
  0x91   :  { %v145_v32 = vmul.f32 %v8872_v25, %v8868_v24  ;;  %v101_v35 = vpop.xlane.xlu0 %100  ;;  %vm179_vm5 = vweird.f32 %v8872_v25 }
  0x92   :  { %v103_v38 = vpop.xlane.xlu1 %102  ;;  %v114_v43 = vmul.f32 0.03125, %v101_v35  ;;  %v123_v36 = vmul.f32 %v8920_v37, %v8920_v37  ;;  %vm180_vm7 = vmor %vm178_vm6, %vm179_vm5 }
  0x93   :  { %v146_v41 = vmul.f32 %v8872_v25, %v145_v32  ;;  %v6630_v32 = vor.u32 %v8175_v29, %v6629_v28  ;;  %v8163_v28 = vld [vmem:[#allocation5 + $0x10] sm:$0xf0]  ;;  %v6578_v29 = vor.u32 %v8161_v21, %v6575_v26 }
  0x95   :  { %v147_v47 = vmul.f32 0.5, %v146_v41  ;;  %573 = vmatpush.bf16.msra.mxu2 %v6630_v32  ;;  %v8914_v41 = vadd.f32 1e-05, %v129_v30  ;;  %v6582_v30 = vor.u32 %v8163_v28, %v6581_v27 }
  0x97   :  { %v148_v49 = vsub.f32 1.5, %v147_v47  ;;  %v8167_v47 = vld [vmem:[#allocation5 + $0x34] sm:$0xf]  ;;  %8602 = vrsqrt.f32 %v8914_v41  ;;  %v314_v34 = vpop.permute.xlu2 %313  ;;  %vm188_vm3 = vweird.f32 %v8914_v41 }
  0x99   :  { %v8885_v50 = vmul.f32 %v8872_v25, %v148_v49  ;;  %574 = vmatpush.bf16.msra.mxu2 %v6618_v44  ;;  %v6599_v49 = vld [vmem:[#allocation5 + $0x3c] sm:$0xf0]  ;;  %v115_v44 = vmul.f32 0.03125, %v103_v38  ;;  %v167_v38 = vsub.f32 %v8806_v6, %v8920_v37 }
  0x9a   :  { %108 = vadd.xlane.f32.xlu0 %v94_v48  ;;  %v6598_v48 = vor.u32 %v8168_v46, %v6597_v45  ;;  %v130_v45 = vsub.f32 %v114_v43, %v122_v40 }
  0x9b   :  { %v150_v51 = vmul.f32 %v8885_v50, %v8868_v24 }
  0x9c   :  { %517 = vmatpush.bf16.msra.mxu0 %v6598_v48  ;;  %v131_v48 = vsub.f32 %v115_v44, %v123_v36 }
  0x9d   :  { %v152_v53 = vsel %vm151_vm0, %v8868_v24, %v150_v51  ;;  %v6605_v51 = vld [vmem:[#allocation5 + $0x38] sm:$0xf]  ;;  %v8603_v13 = vpop.eup %8602 }
  0x9e   :  { %v8893_v54 = vsel %vm153_vm1, %v154_v52, %v152_v53  ;;  %v8169_v52 = vld [vmem:[#allocation5 + $0x40] sm:$0xf0]  ;;  %v6602_v53 = vor.u32 %v8167_v47, %v6599_v49  ;;  %v183_v22 = vmul.f32 %v8603_v13, %v8914_v41  ;;  %v8938_v49 = vld [vmem:[%s9707_s1 + $0x30] sm:$0xff]  ;;  %vm189_vm2 = vweird.f32 %v8603_v13 }
  0x9f   :  { %9716 = vst [vmem:[#allocation12_spill] sm:$0xff] %v8893_v54  ;;  %v6606_v55 = vor.u32 %v8169_v52, %v6605_v51  ;;  %v138_v51 = vadd.f32 1e-05, %v130_v45  ;;  %vm190_vm4 = vmor %vm188_vm3, %vm189_vm2 }
  0xa0   :  { %546 = vmatpush.bf16.msra.mxu1 %v6602_v53  ;;  %518 = vmatpush.bf16.msra.mxu0 %v6586_v60  ;;  %v184_v32 = vmul.f32 %v8603_v13, %v183_v22  ;;  %v139_v53 = vadd.f32 1e-05, %v131_v48 }
  0xa1   :  { %575 = vmatpush.bf16.msra.mxu2 %v6606_v55  ;;  %v165_v55 = vsub.f32 %v8801_v5, %v8895_v56  ;;  %8604 = vrsqrt.f32 %v138_v51  ;;  %v181_v5 = vsel %vm180_vm7, %v8872_v25, %v8885_v50  ;;  %v8957_v56 = vld [vmem:[%s9707_s1 + $0x38] sm:$0xff]  ;;  %vm198_vm8 = vweird.f32 %v138_v51 }
  0xa2   :  { %v185_v42 = vmul.f32 0.5, %v184_v32  ;;  %8606 = vrsqrt.f32 %v139_v53  ;;  %v252_v24 = vmul.f32 %v181_v5, %v164_v59  ;;  %vm208_vm12 = vweird.f32 %v139_v53 }
  0xa4   :  { %547 = vmatpush.bf16.msra.mxu1 %v6590_v3  ;;  %v186_v46 = vsub.f32 1.5, %v185_v42  ;;  %v268_v60 = vpop.permute.xlu0 %267 }
  0xa5   :  { %576 = vmatpush.bf16.msra.mxu2 %v6594_v7 }
  0xa6   :  { %v187_v52 = vmul.f32 %v8603_v13, %v186_v46 }
  0xa7   :  { %v8605_v61 = vpop.eup %8604 }
  0xa8   :  { %76 = vadd.xlane.f32.xlu2 %v8879_v33  ;;  %548 = vmatpush.bf16.msra.mxu1 %v6578_v29  ;;  %v191_v57 = vsel %vm190_vm4, %v8603_v13, %v187_v52  ;;  %v8607_v2 = vpop.eup %8606  ;;  %v193_v3 = vmul.f32 %v8605_v61, %v138_v51  ;;  %vm199_vm9 = vweird.f32 %v8605_v61 }
  0xa9   :  { %577 = vmatpush.bf16.msra.mxu2 %v6582_v30  ;;  %v253_v41 = vmul.f32 %v191_v57, %v165_v55  ;;  %v203_v7 = vmul.f32 %v8607_v2, %v139_v53  ;;  %vm209_vm10 = vweird.f32 %v8607_v2  ;;  %vm200_vm11 = vmor %vm198_vm8, %vm199_vm9 }
  0xaa   :  { %v8963_v50 = vpop.permute.xlu1 %309  ;;  %vm210_vm13 = vmor %vm208_vm12, %vm209_vm10  ;;  %vm667_vm10 = vcmask 523264   ;;  %vm6547_vm12 = vcmask 261120  }
  0xab   :  { %v301_v62 = vmul.f32 %v268_v60, %v253_v41  ;;  %9717 = vst [vmem:[#allocation13_spill] sm:$0xff] %v8963_v50  ;;  %v204_v21 = vmul.f32 %v8607_v2, %v203_v7 }
  0xad   :  { %v341_v8 = vadd.f32 %v314_v34, %v301_v62  ;;  %v205_v22 = vmul.f32 0.5, %v204_v21 }
  0xae   :  { %325 = vperm.xlu0 %8557, %v8908_v18   ;;  %78 = vadd.xlane.f32.xlu1 %v8903_v9 }
  0xaf   :  { %v206_v27 = vsub.f32 1.5, %v205_v22 }
  0xb0   :  { %110 = vadd.xlane.f32.xlu2 %v95_v23  ;;  %v6574_v23 = vor.u32 %v8162_v20, %v6573_v15  ;;  %v194_v15 = vmul.f32 %v8605_v61, %v193_v3 }
  0xb1   :  { %v207_v30 = vmul.f32 %v8607_v2, %v206_v27 }
  0xb2   :  { %519 = vmatpush.bf16.msra.mxu0 %v6574_v23 }
  0xb3   :  { %v211_v35 = vsel %vm210_vm13, %v8607_v2, %v207_v30 }
  0xb4   :  { %v255_v43 = vmul.f32 %v211_v35, %v167_v38 }
  0xc7   :  { %282 = vperm.xlu1 %8559, %v8908_v18  }
  0xc8   :  { %287 = vperm.xlu2 %8555, %v8925_v39  }
  0xca   :  { %v8933_v47 = vpop.xlane.xlu2 %72 }
  0xcf   :  { %8560 = vset.pattern.permute.xlu1 %v8725_v0  ;;  %v105_v29 = vpop.xlane.xlu0 %104 }
  0xd0   :  { %292 = vperm.xlu2 %8555, %v8938_v49   ;;  %329 = vperm.xlu1 %8560, %v8925_v39   ;;  %v116_v55 = vmul.f32 0.03125, %v105_v29 }
  0xd2   :  { %v8946_v58 = vpop.xlane.xlu2 %106 }
  0xd3   :  { %v117_v6 = vmul.f32 0.03125, %v8946_v58 }
  0xd5   :  { %v75_v23 = vpop.xlane.xlu1 %74 }
  0xd8   :  { %8562 = vset.pattern.permute.xlu2 %v8725_v0  ;;  %8561 = vset.pattern.permute.xlu1 %v8726_v4  ;;  %v195_v4 = vmul.f32 0.5, %v194_v15 }
  0xd9   :  { %333 = vperm.xlu2 %8562, %v8938_v49   ;;  %297 = vperm.xlu1 %8561, %v8957_v56  }
  0xda   :  { %v263_v63 = vpop.permute.xlu2 %262  ;;  %v196_v26 = vsub.f32 1.5, %v195_v4 }
  0xdb   :  { %v300_v25 = vmul.f32 %v263_v63, %v252_v24 }
  0xdc   :  { %v197_v28 = vmul.f32 %v8605_v61, %v196_v26 }
  0xdd   :  { %v340_v13 = vadd.f32 %v8963_v50, %v300_v25 }
  0xde   :  { %v201_v34 = vsel %vm200_vm11, %v8605_v61, %v197_v28  ;;  %vm3562_vm11 = vcmask 7168  }
  0xdf   :  { %v348_v20 = vpack.c.bf16 %v341_v8, %v340_v13 }
  0xe1   :  { %520 = vmatmul.bf16.vlgmr.msra.gmra.mxu0 %v348_v20  ;;  %549 = vmatmul.bf16.vlgmr.msra.gmra.mxu1 %v348_v20 }
  0xe2   :  { %578 = vmatmul.bf16.vlgmr.msra.gmra.mxu2 %v348_v20  ;;  %8563 = vset.pattern.permute.xlu1 %v8725_v0  ;;  %v166_v0 = vsub.f32 %v8786_v1, %v8918_v31  ;;  %v278_v42 = vpop.permute.xlu2 %277  ;;  %v318_v44 = vpop.permute.xlu0 %317  ;;  %v84_v1 = vmul.f32 0.03125, %v8933_v47  ;;  %v85_v31 = vmul.f32 0.03125, %v75_v23 }
  0xe3   :  { %337 = vperm.xlu1 %8563, %v8957_v56   ;;  %v303_v45 = vmul.f32 %v278_v42, %v255_v43 }
  0xe4   :  { %v254_v40 = vmul.f32 %v201_v34, %v166_v0  ;;  %v124_v53 = vmul.f32 %v84_v1, %v84_v1  ;;  %v125_v37 = vmul.f32 %v85_v31, %v85_v31 }
  0xe6   :  { %v132_v57 = vsub.f32 %v116_v55, %v124_v53  ;;  %v133_v41 = vsub.f32 %v117_v6, %v125_v37 }
  0xe8   :  { %v140_v59 = vadd.f32 1e-05, %v132_v57  ;;  %v141_v5 = vadd.f32 1e-05, %v133_v41 }
  0xea   :  { %8608 = vrsqrt.f32 %v140_v59  ;;  %vm218_vm14 = vweird.f32 %v140_v59  ;;  %vm228_vm2 = vweird.f32 %v141_v5 }
  0xeb   :  { %8610 = vrsqrt.f32 %v141_v5 }
  0xed   :  { %v273_v32 = vpop.permute.xlu1 %272 }
  0xee   :  { %v302_v36 = vmul.f32 %v273_v32, %v254_v40 }
  0xf0   :  { %v342_v48 = vadd.f32 %v318_v44, %v302_v36  ;;  %v8609_v63 = vpop.eup %8608  ;;  %v168_v36 = vsub.f32 %v8835_v12, %v84_v1 }
  0xf1   :  { %v8611_v25 = vpop.eup %8610  ;;  %v213_v13 = vmul.f32 %v8609_v63, %v140_v59  ;;  %vm219_vm15 = vweird.f32 %v8609_v63 }
  0xf2   :  { %v223_v20 = vmul.f32 %v8611_v25, %v141_v5  ;;  %vm220_vm0 = vmor %vm218_vm14, %vm219_vm15  ;;  %vm229_vm1 = vweird.f32 %v8611_v25 }
  0xf3   :  { %v214_v4 = vmul.f32 %v8609_v63, %v213_v13  ;;  %vm230_vm3 = vmor %vm228_vm2, %vm229_vm1 }
  0xf4   :  { %v224_v23 = vmul.f32 %v8611_v25, %v223_v20 }
  0xf5   :  { %v215_v27 = vmul.f32 0.5, %v214_v4 }
  0xf6   :  { %v322_v46 = vpop.permute.xlu1 %321  ;;  %v225_v28 = vmul.f32 0.5, %v224_v23 }
  0xf7   :  { %v343_v51 = vadd.f32 %v322_v46, %v303_v45  ;;  %v216_v29 = vsub.f32 1.5, %v215_v27  ;;  %v169_v46 = vsub.f32 %v8843_v14, %v85_v31 }
  0xf8   :  { %v226_v30 = vsub.f32 1.5, %v225_v28 }
  0xf9   :  { %v349_v52 = vpack.c.bf16 %v343_v51, %v342_v48  ;;  %v217_v34 = vmul.f32 %v8609_v63, %v216_v29 }
  0xfa   :  { %v227_v38 = vmul.f32 %v8611_v25, %v226_v30 }
  0xfb   :  { %525 = vmatmul.bf16.gmra.mxu0 %v349_v52  ;;  %554 = vmatmul.bf16.gmra.mxu1 %v349_v52  ;;  %v221_v43 = vsel %vm220_vm0, %v8609_v63, %v217_v34 }
  0xfc   :  { %583 = vmatmul.bf16.gmra.mxu2 %v349_v52  ;;  %v231_v44 = vsel %vm230_vm3, %v8611_v25, %v227_v38  ;;  %v256_v48 = vmul.f32 %v221_v43, %v168_v36 }
  0xfd   :  { %v257_v53 = vmul.f32 %v231_v44, %v169_v46 }
 0x10d   :  { %v109_v24 = vpop.xlane.xlu0 %108 }
 0x10e   :  { %v118_v3 = vmul.f32 0.03125, %v109_v24 }
 0x11b   :  { %v77_v60 = vpop.xlane.xlu2 %76 }
 0x11c   :  { %v8974_v61 = vmul.f32 0.03125, %v77_v60 }
 0x11e   :  { %v126_v58 = vmul.f32 %v8974_v61, %v8974_v61 }
 0x120   :  { %v134_v15 = vsub.f32 %v118_v3, %v126_v58  ;;  %v326_v57 = vpop.permute.xlu0 %325 }
 0x121   :  { %v79_v62 = vpop.xlane.xlu1 %78 }
 0x122   :  { %v8976_v2 = vmul.f32 0.03125, %v79_v62  ;;  %v142_v22 = vadd.f32 1e-05, %v134_v15 }
 0x123   :  { %v111_v47 = vpop.xlane.xlu2 %110 }
 0x124   :  { %v127_v7 = vmul.f32 %v8976_v2, %v8976_v2  ;;  %v119_v8 = vmul.f32 0.03125, %v111_v47  ;;  %8612 = vrsqrt.f32 %v142_v22  ;;  %vm238_vm4 = vweird.f32 %v142_v22 }
 0x125   :  { %v170_v47 = vsub.f32 %v8879_v33, %v8974_v61  ;;  %v171_v25 = vsub.f32 %v8903_v9, %v8976_v2 }
 0x126   :  { %v135_v21 = vsub.f32 %v119_v8, %v127_v7 }
 0x128   :  { %v143_v26 = vadd.f32 1e-05, %v135_v21 }
 0x12a   :  { %8614 = vrsqrt.f32 %v143_v26  ;;  %v8613_v32 = vpop.eup %8612  ;;  %vm248_vm8 = vweird.f32 %v143_v26 }
 0x12b   :  { %v233_v35 = vmul.f32 %v8613_v32, %v142_v22  ;;  %v288_v52 = vpop.permute.xlu2 %287  ;;  %vm239_vm5 = vweird.f32 %v8613_v32 }
 0x12c   :  { %v305_v37 = vmul.f32 %v288_v52, %v257_v53  ;;  %vm240_vm6 = vmor %vm238_vm4, %vm239_vm5 }
 0x12d   :  { %v234_v45 = vmul.f32 %v8613_v32, %v233_v35 }
 0x12f   :  { %v235_v6 = vmul.f32 0.5, %v234_v45 }
 0x130   :  { %v8615_v0 = vpop.eup %8614 }
 0x131   :  { %v243_v42 = vmul.f32 %v8615_v0, %v143_v26  ;;  %v236_v62 = vsub.f32 1.5, %v235_v6  ;;  %vm249_vm7 = vweird.f32 %v8615_v0 }
 0x132   :  { %vm250_vm9 = vmor %vm248_vm8, %vm249_vm7 }
 0x133   :  { %v244_v51 = vmul.f32 %v8615_v0, %v243_v42  ;;  %v293_v14 = vpop.permute.xlu2 %292  ;;  %v237_v1 = vmul.f32 %v8613_v32, %v236_v62 }
 0x135   :  { %v245_v41 = vmul.f32 0.5, %v244_v51  ;;  %v241_v3 = vsel %vm240_vm6, %v8613_v32, %v237_v1 }
 0x136   :  { %v258_v7 = vmul.f32 %v241_v3, %v170_v47 }
 0x137   :  { %v246_v12 = vsub.f32 1.5, %v245_v41 }
 0x138   :  { %v306_v15 = vmul.f32 %v293_v14, %v258_v7 }
 0x139   :  { %v283_v40 = vpop.permute.xlu1 %282  ;;  %v247_v31 = vmul.f32 %v8615_v0, %v246_v12 }
 0x13a   :  { %v304_v55 = vmul.f32 %v283_v40, %v256_v48 }
 0x13b   :  { %v251_v58 = vsel %vm250_vm9, %v8615_v0, %v247_v31  ;;  %v334_v13 = vpop.permute.xlu2 %333 }
 0x13c   :  { %v344_v60 = vadd.f32 %v326_v57, %v304_v55  ;;  %v259_v8 = vmul.f32 %v251_v58, %v171_v25  ;;  %v346_v4 = vadd.f32 %v334_v13, %v306_v15 }
 0x142   :  { %v330_v59 = vpop.permute.xlu1 %329 }
 0x143   :  { %v345_v5 = vadd.f32 %v330_v59, %v305_v37  ;;  %v8727_v37 = vmov 4  }
 0x144   :  { %8566 = vset.pattern.permute.xlu1 %v8727_v37  ;;  %8564 = vset.pattern.permute.xlu0 %v8727_v37 }
 0x145   :  { %v350_v24 = vpack.c.bf16 %v345_v5, %v344_v60  ;;  %718 = vperm.xlu1 %8566, %v8851_v16   ;;  %710 = vperm.xlu0 %8564, %v8826_v11  }
 0x146   :  { %8565 = vset.pattern.permute.xlu2 %v8727_v37  ;;  %v8192_v37 = vld [vmem:[#allocation2 + $0x38] sm:$0xff] }
 0x147   :  { %530 = vmatmul.bf16.gmra.mxu0 %v350_v24  ;;  %559 = vmatmul.bf16.gmra.mxu1 %v350_v24 }
 0x148   :  { %588 = vmatmul.bf16.gmra.mxu2 %v350_v24  ;;  %714 = vperm.xlu2 %8565, %v8819_v10  }
 0x14b   :  { %v298_v63 = vpop.permute.xlu1 %297 }
 0x14c   :  { %v307_v20 = vmul.f32 %v298_v63, %v259_v8 }
 0x14d   :  { %726 = vperm.xlu1 %8566, %v8908_v18   ;;  %730 = vperm.xlu0 %8564, %v8925_v39  }
 0x150   :  { %722 = vperm.xlu2 %8565, %v8859_v17  }
 0x155   :  { %v338_v21 = vpop.permute.xlu1 %337  ;;  %738 = vperm.xlu1 %8566, %v8957_v56  }
 0x156   :  { %v347_v22 = vadd.f32 %v338_v21, %v307_v20 }
 0x158   :  { %v351_v23 = vpack.c.bf16 %v347_v22, %v346_v4  ;;  %v8186_v22 = vld [vmem:[#allocation2 + $0x8] sm:$0xff]  ;;  %734 = vperm.xlu2 %8565, %v8938_v49  }
 0x15a   :  { %535 = vmatmul.bf16.gmra.mxu0 %v351_v23  ;;  %564 = vmatmul.bf16.gmra.mxu1 %v351_v23 }
 0x15b   :  { %593 = vmatmul.bf16.gmra.mxu2 %v351_v23 }
 0x15e   :  { %v521_v33 = vpop.f32.mrf.mxu0  ;;  %v550_v61 = vpop.f32.mrf.mxu1 }
 0x15f   :  { %v8988_v26 = vpack.c.bf16 %v550_v61, %v521_v33  ;;  %v8185_v33 = vld [vmem:[#allocation2] sm:$0xff] }
 0x161   :  { %v651_v8 = vunpack.c.l.b16 %v8988_v26  ;;  %v778_v49 = vunpack.c.h.b16 %v8988_v26  ;;  %v8189_v26 = vld [vmem:[#allocation2 + $0x20] sm:$0xff] }
 0x165   :  { %v8990_v27 = vpop.f32.mrf.mxu2 }
 0x166   :  { %v523_v28 = vpop.f32.mrf.mxu0  ;;  %v552_v9 = vpop.f32.mrf.mxu1 }
 0x167   :  { %v601_v1 = vpack.c.bf16 %v552_v9, %v523_v28 }
 0x169   :  { %v652_v3 = vunpack.c.l.b16 %v601_v1 }
 0x16b   :  { %v659_v20 = vpack.c.b16 %v652_v3, %v651_v8  ;;  %v8217_v3 = vld [vmem:[#allocation5 + $0x160] sm:$0xf0]  ;;  %v6789_v8 = vld [vmem:[#allocation5 + $0x138] sm:$0xf] }
 0x16d   :  { %v8992_v2 = vpop.f32.mrf.mxu2 }
 0x178   :  { %v526_v29 = vpop.f32.mrf.mxu0  ;;  %v555_v30 = vpop.f32.mrf.mxu1 }
 0x179   :  { %v603_v24 = vpack.c.bf16 %v555_v30, %v526_v29  ;;  %v602_v29 = vpack.c.bf16 %v8992_v2, %v8992_v2 }
 0x17b   :  { %v653_v11 = vunpack.c.l.b16 %v603_v24 }
 0x17f   :  { %v8994_v32 = vpop.f32.mrf.mxu2 }
 0x180   :  { %v528_v34 = vpop.f32.mrf.mxu0  ;;  %v557_v0 = vpop.f32.mrf.mxu1  ;;  %v604_v61 = vpack.c.bf16 %v8994_v32, %v8994_v32  ;;  %v600_v32 = vpack.c.bf16 %v8990_v27, %v8990_v27  ;;  %v8193_v27 = vld [vmem:[#allocation2 + $0x40] sm:$0xff] }
 0x181   :  { %v605_v60 = vpack.c.bf16 %v557_v0, %v528_v34 }
 0x183   :  { %v654_v16 = vunpack.c.l.b16 %v605_v60  ;;  %v781_v0 = vunpack.c.h.b16 %v605_v60  ;;  %v8218_v60 = vld [vmem:[#allocation5 + $0x16c] sm:$0xf] }
 0x185   :  { %v660_v63 = vpack.c.b16 %v654_v16, %v653_v11  ;;  %v8216_v16 = vld [vmem:[#allocation5 + $0x158] sm:$0xf0] }
 0x187   :  { %v8996_v35 = vpop.f32.mrf.mxu2 }
 0x188   :  { %v606_v15 = vpack.c.bf16 %v8996_v35, %v8996_v35  ;;  %v780_v35 = vunpack.c.h.b16 %v603_v24  ;;  %v6821_v24 = vld [vmem:[#allocation5 + $0x170] sm:$0xf] }
 0x18a   :  { %v883_v30 = vunpack.c.l.b16 %v606_v15  ;;  %v6791_v15 = vld [vmem:[#allocation5 + $0x144] sm:$0xf0] }
 0x1c4   :  { %v531_v38 = vpop.f32.mrf.mxu0  ;;  %v560_v40 = vpop.f32.mrf.mxu1 }
 0x1c5   :  { %v607_v57 = vpack.c.bf16 %v560_v40, %v531_v38  ;;  %v882_v38 = vunpack.c.l.b16 %v604_v61  ;;  %v881_v40 = vunpack.c.l.b16 %v602_v29  ;;  %v8211_v29 = vld [vmem:[#allocation5 + $0x130] sm:$0xf0] }
 0x1c7   :  { %v655_v12 = vunpack.c.l.b16 %v607_v57  ;;  %v782_v28 = vunpack.c.h.b16 %v607_v57  ;;  %v889_v2 = vpack.c.b16 %v883_v30, %v882_v38  ;;  %v8206_v38 = vld [vmem:[#allocation5 + $0x10c] sm:$0xf] }
 0x1cb   :  { %v8998_v42 = vpop.f32.mrf.mxu2 }
 0x1cc   :  { %v533_v43 = vpop.f32.mrf.mxu0  ;;  %v562_v36 = vpop.f32.mrf.mxu1  ;;  %v608_v18 = vpack.c.bf16 %v8998_v42, %v8998_v42  ;;  %v787_v42 = vpack.c.b16 %v781_v0, %v780_v35  ;;  %v8207_v35 = vld [vmem:[#allocation5 + $0x110] sm:$0xf0] }
 0x1cd   :  { %v9000_v55 = vpack.c.bf16 %v562_v36, %v533_v43  ;;  %v779_v43 = vunpack.c.h.b16 %v601_v1  ;;  %v880_v36 = vunpack.c.l.b16 %v600_v32  ;;  %v6765_v32 = vld [vmem:[#allocation5 + $0x108] sm:$0xf] }
 0x1ce   :  { %v884_v9 = vunpack.c.l.b16 %v608_v18  ;;  %v8213_v18 = vld [vmem:[#allocation5 + $0x140] sm:$0xf0] }
 0x1cf   :  { %v656_v62 = vunpack.c.l.b16 %v9000_v55  ;;  %v783_v23 = vunpack.c.h.b16 %v9000_v55  ;;  %v8196_v55 = vld [vmem:[#allocation2 + $0x58] sm:$0xff] }
 0x1d1   :  { %v661_v31 = vpack.c.b16 %v656_v62, %v655_v12  ;;  %v788_v34 = vpack.c.b16 %v783_v23, %v782_v28  ;;  %v6815_v62 = vld [vmem:[#allocation5 + $0x174] sm:$0xf0]  ;;  %v8220_v12 = vld [vmem:[#allocation5 + $0x178] sm:$0xf0]  ;;  %v8210_v23 = vld [vmem:[#allocation5 + $0x128] sm:$0xf0] }
 0x1d2   :  { %v6822_v1 = vor.u32 %v8220_v12, %v6821_v24  ;;  %v6779_v28 = vld [vmem:[#allocation5 + $0x12c] sm:$0xf0]  ;;  %v8202_v24 = vld [vmem:[#allocation5 + $0xe8] sm:$0xf0] }
 0x1d3   :  { %v591_v44 = vpop.f32.mrf.mxu2 }
 0x1d4   :  { %v610_v58 = vpack.c.bf16 %v591_v44, %v591_v44  ;;  %v786_v44 = vpack.c.b16 %v779_v43, %v778_v49  ;;  %v8208_v43 = vld [vmem:[#allocation5 + $0x118] sm:$0xf0] }
 0x1d6   :  { %v885_v21 = vunpack.c.l.b16 %v610_v58 }
 0x1d7   :  { %v536_v45 = vpop.f32.mrf.mxu0  ;;  %v565_v46 = vpop.f32.mrf.mxu1 }
 0x1d8   :  { %v611_v48 = vpack.c.bf16 %v565_v46, %v536_v45  ;;  %v890_v56 = vpack.c.b16 %v885_v21, %v884_v9  ;;  %v888_v45 = vpack.c.b16 %v881_v40, %v880_v36  ;;  %v8187_v46 = vld [vmem:[#allocation2 + $0x10] sm:$0xff]  ;;  %v8214_v21 = vld [vmem:[#allocation5 + $0x148] sm:$0xf0]  ;;  %v6785_v9 = vld [vmem:[#allocation5 + $0x128] sm:$0xf]  ;;  %v6766_v40 = vor.u32 %v8207_v35, %v6765_v32 }
 0x1da   :  { %v657_v41 = vunpack.c.l.b16 %v611_v48  ;;  %v784_v13 = vunpack.c.h.b16 %v611_v48  ;;  %v8188_v48 = vld [vmem:[#allocation2 + $0x18] sm:$0xff] }
 0x1de   :  { %v594_v51 = vpop.f32.mrf.mxu2 }
 0x1df   :  { %v538_v52 = vpop.f32.mrf.mxu0  ;;  %v567_v53 = vpop.f32.mrf.mxu1  ;;  %v612_v10 = vpack.c.bf16 %v594_v51, %v594_v51  ;;  %v8194_v51 = vld [vmem:[#allocation2 + $0x48] sm:$0xff] }
 0x1e0   :  { %v613_v6 = vpack.c.bf16 %v567_v53, %v538_v52  ;;  %v8195_v52 = vld [vmem:[#allocation2 + $0x50] sm:$0xff]  ;;  %v8190_v53 = vld [vmem:[#allocation2 + $0x28] sm:$0xff] }
 0x1e1   :  { %v886_v39 = vunpack.c.l.b16 %v612_v10  ;;  %v6803_v10 = vld [vmem:[#allocation5 + $0x15c] sm:$0xf0] }
 0x1e2   :  { %v658_v59 = vunpack.c.l.b16 %v613_v6  ;;  %v785_v7 = vunpack.c.h.b16 %v613_v6  ;;  %v8191_v6 = vld [vmem:[#allocation2 + $0x30] sm:$0xff] }
 0x1e4   :  { %v662_v5 = vpack.c.b16 %v658_v59, %v657_v41  ;;  %v789_v4 = vpack.c.b16 %v785_v7, %v784_v13  ;;  %v6813_v41 = vld [vmem:[#allocation5 + $0x168] sm:$0xf]  ;;  %v8219_v59 = vld [vmem:[#allocation5 + $0x170] sm:$0xf0]  ;;  %v8212_v13 = vld [vmem:[#allocation5 + $0x13c] sm:$0xf] }
 0x1e6   :  { %v596_v14 = vpop.f32.mrf.mxu2  ;;  %684 = vmatpush.bf16.msrb.mxu0 %v662_v5  ;;  %8527 = vmatpush.bf16.msra.mxu3 %v662_v5  ;;  %v6814_v5 = vor.u32 %v8219_v59, %v6813_v41  ;;  %v8200_v41 = vld [vmem:[#allocation5 + $0xdc] sm:$0xf] }
 0x1e7   :  { %v614_v47 = vpack.c.bf16 %v596_v14, %v596_v14  ;;  %v6818_v14 = vor.u32 %v8218_v60, %v6815_v62  ;;  %v6749_v62 = vld [vmem:[#allocation5 + $0xe0] sm:$0xf] }
 0x1e8   :  { %1118 = vmatpush.bf16.msrb.mxu1 %v6814_v5  ;;  %v6743_v5 = vld [vmem:[#allocation5 + $0xe4] sm:$0xf0] }
 0x1e9   :  { %v887_v25 = vunpack.c.l.b16 %v614_v47  ;;  %v8215_v47 = vld [vmem:[#allocation5 + $0x154] sm:$0xf]  ;;  %1147 = vmatpush.bf16.msrb.mxu2 %v6818_v14  ;;  %v6746_v12 = vor.u32 %v8200_v41, %v6743_v5  ;;  %v6750_v14 = vor.u32 %v8202_v24, %v6749_v62 }
 0x1ea   :  { %685 = vmatpush.bf16.msrb.mxu0 %v661_v31  ;;  %8528 = vmatpush.bf16.msra.mxu3 %v661_v31  ;;  %v6801_v31 = vld [vmem:[#allocation5 + $0x150] sm:$0xf]  ;;  %v6806_v58 = vor.u32 %v8215_v47, %v6803_v10  ;;  %v6737_v10 = vld [vmem:[#allocation5 + $0xc8] sm:$0xf] }
 0x1eb   :  { %v891_v17 = vpack.c.b16 %v887_v25, %v886_v39  ;;  %v6802_v11 = vor.u32 %v8216_v16, %v6801_v31  ;;  %v6790_v39 = vor.u32 %v8213_v18, %v6789_v8  ;;  %v8198_v31 = vld [vmem:[#allocation5 + $0xc8] sm:$0xf0]  ;;  %v8197_v16 = vld [vmem:[#allocation5 + $0xc4] sm:$0xf] }
 0x1ed   :  { %1119 = vmatpush.bf16.msrb.mxu1 %v6802_v11  ;;  %1148 = vmatpush.bf16.msrb.mxu2 %v6806_v58  ;;  %v6731_v11 = vld [vmem:[#allocation5 + $0xcc] sm:$0xf0] }
 0x1ee   :  { %686 = vmatpush.bf16.msrb.mxu0 %v660_v63  ;;  %8529 = vmatpush.bf16.msra.mxu3 %v660_v63  ;;  %v6809_v63 = vld [vmem:[#allocation5 + $0x158] sm:$0xf] }
 0x1ef   :  { %v6810_v25 = vor.u32 %v8217_v3, %v6809_v63  ;;  %v8199_v63 = vld [vmem:[#allocation5 + $0xd0] sm:$0xf0]  ;;  %v6734_v3 = vor.u32 %v8197_v16, %v6731_v11 }
 0x1f0   :  { %v6738_v58 = vor.u32 %v8199_v63, %v6737_v10 }
 0x1f1   :  { %1120 = vmatpush.bf16.msrb.mxu1 %v6790_v39 }
 0x1f2   :  { %687 = vmatpush.bf16.msrb.mxu0 %v659_v20  ;;  %8530 = vmatpush.bf16.msra.mxu3 %v659_v20  ;;  %v6797_v20 = vld [vmem:[#allocation5 + $0x140] sm:$0xf] }
 0x1f5   :  { %6684 = vmatmul.msk.bf16.vlgmr.msra.gmra.mxu3 %vm667_vm10, %v8186_v22  ;;  %6683 = vmatmul.msk.bf16.vlgmr.msrb.gmra.mxu0 %vm667_vm10, %v8185_v33  ;;  %v6777_v22 = vld [vmem:[#allocation5 + $0x120] sm:$0xf]  ;;  %v8209_v33 = vld [vmem:[#allocation5 + $0x124] sm:$0xf] }
 0x1f6   :  { %810 = vmatpush.bf16.msrb.mxu3 %v789_v4  ;;  %912 = vmatpush.bf16.msra.mxu0 %v891_v17  ;;  %v6794_v17 = vor.u32 %v8212_v13, %v6791_v15  ;;  %v6798_v4 = vor.u32 %v8214_v21, %v6797_v20  ;;  %v6778_v61 = vor.u32 %v8210_v23, %v6777_v22  ;;  %v711_v15 = vpop.permute.xlu0 %710 }
 0x1f7   :  { %v6782_v30 = vor.u32 %v8209_v33, %v6779_v28 }
 0x1f8   :  { %1149 = vmatpush.bf16.msrb.mxu2 %v6794_v17  ;;  %1121 = vmatpush.bf16.msrb.mxu1 %v6778_v61  ;;  %v715_v17 = vpop.permute.xlu2 %714 }
 0x1fa   :  { %811 = vmatpush.bf16.msrb.mxu3 %v788_v34  ;;  %913 = vmatpush.bf16.msra.mxu0 %v890_v56  ;;  %v6786_v34 = vor.u32 %v8211_v29, %v6785_v9 }
 0x1fc   :  { %1150 = vmatpush.bf16.msrb.mxu2 %v6782_v30  ;;  %1122 = vmatpush.bf16.msrb.mxu1 %v6766_v40 }
 0x1fe   :  { %812 = vmatpush.bf16.msrb.mxu3 %v787_v42  ;;  %914 = vmatpush.bf16.msra.mxu0 %v889_v2  ;;  %v6767_v42 = vld [vmem:[#allocation5 + $0x114] sm:$0xf0]  ;;  %v6773_v2 = vld [vmem:[#allocation5 + $0x110] sm:$0xf] }
 0x1ff   :  { %v6770_v49 = vor.u32 %v8206_v38, %v6767_v42  ;;  %v6774_v36 = vor.u32 %v8208_v43, %v6773_v2 }
 0x201   :  { %1151 = vmatpush.bf16.msrb.mxu2 %v6770_v49 }
 0x202   :  { %813 = vmatpush.bf16.msrb.mxu3 %v786_v44  ;;  %915 = vmatpush.bf16.msra.mxu0 %v888_v45  ;;  %v6753_v44 = vld [vmem:[#allocation5 + $0xf0] sm:$0xf]  ;;  %v8204_v45 = vld [vmem:[#allocation5 + $0xf8] sm:$0xf0] }
 0x205   :  { %6685 = vmatmul.msk.bf16.gmra.mxu3 %vm667_vm10, %v8187_v46  ;;  %6723 = vmatmul.msk.bf16.vlgmr.msra.gmra.mxu0 %vm667_vm10, %v8193_v27  ;;  %v8203_v46 = vld [vmem:[#allocation5 + $0xf4] sm:$0xf]  ;;  %v6754_v27 = vor.u32 %v8204_v45, %v6753_v44 }
 0x206   :  { %1176 = vmatpush.bf16.msra.mxu3 %v6822_v1  ;;  %v6729_v1 = vld [vmem:[#allocation5 + $0xc0] sm:$0xf] }
 0x207   :  { %1123 = vmatpush.bf16.msrb.mxu1 %v6754_v27  ;;  %v6730_v47 = vor.u32 %v8198_v31, %v6729_v1 }
 0x20a   :  { %1177 = vmatpush.bf16.msra.mxu3 %v6810_v25 }
 0x20e   :  { %1178 = vmatpush.bf16.msra.mxu3 %v6798_v4 }
 0x212   :  { %1179 = vmatpush.bf16.msra.mxu3 %v6786_v34  ;;  %v719_v34 = vpop.permute.xlu1 %718 }
 0x215   :  { %6686 = vmatmul.msk.bf16.gmra.mxu3 %vm667_vm10, %v8188_v48  ;;  %6724 = vmatmul.msk.bf16.gmra.mxu0 %vm667_vm10, %v8194_v51  ;;  %v6755_v48 = vld [vmem:[#allocation5 + $0xfc] sm:$0xf0]  ;;  %v6761_v51 = vld [vmem:[#allocation5 + $0xf8] sm:$0xf] }
 0x216   :  { %1180 = vmatpush.bf16.msra.mxu3 %v6774_v36 }
 0x225   :  { %6703 = vmatmul.msk.bf16.vlgmr.msrb.gmra.mxu3 %vm667_vm10, %v8189_v26  ;;  %6725 = vmatmul.msk.bf16.gmra.mxu0 %vm667_vm10, %v8195_v52  ;;  %v8205_v26 = vld [vmem:[#allocation5 + $0x100] sm:$0xf0]  ;;  %v6758_v52 = vor.u32 %v8203_v46, %v6755_v48  ;;  %v727_v48 = vpop.permute.xlu1 %726 }
 0x227   :  { %1152 = vmatpush.bf16.msrb.mxu2 %v6758_v52 }
 0x22b   :  { %1153 = vmatpush.bf16.msrb.mxu2 %v6746_v12 }
 0x22f   :  { %1154 = vmatpush.bf16.msrb.mxu2 %v6734_v3 }
 0x235   :  { %6704 = vmatmul.msk.bf16.gmra.mxu3 %vm667_vm10, %v8190_v53  ;;  %6726 = vmatmul.msk.bf16.gmra.mxu0 %vm667_vm10, %v8196_v55  ;;  %v6762_v53 = vor.u32 %v8205_v26, %v6761_v51 }
 0x237   :  { %1181 = vmatpush.bf16.msra.mxu3 %v6762_v53 }
 0x23b   :  { %1182 = vmatpush.bf16.msra.mxu3 %v6750_v14 }
 0x23f   :  { %1183 = vmatpush.bf16.msra.mxu3 %v6738_v58 }
 0x245   :  { %6705 = vmatmul.msk.bf16.gmra.mxu3 %vm667_vm10, %v8191_v6  ;;  %v6741_v6 = vld [vmem:[#allocation5 + $0xd8] sm:$0xf] }
 0x255   :  { %6706 = vmatmul.msk.bf16.gmra.mxu3 %vm667_vm10, %v8192_v37  ;;  %v8201_v37 = vld [vmem:[#allocation5 + $0xe0] sm:$0xf0] }
 0x256   :  { %v6742_v60 = vor.u32 %v8201_v37, %v6741_v6 }
 0x258   :  { %1124 = vmatpush.bf16.msrb.mxu1 %v6742_v60 }
 0x25c   :  { %1125 = vmatpush.bf16.msrb.mxu1 %v6730_v47 }
 0x272   :  { %v689_v0 = vpop.f32.mrf.mxu0 }
 0x273   :  { %v741_v20 = vadd.f32 %v711_v15, %v689_v0  ;;  %v723_v0 = vpop.permute.xlu2 %722 }
 0x278   :  { %v9036_v57 = vpop.f32.mrf.mxu3 }
 0x279   :  { %v743_v38 = vadd.f32 %v719_v34, %v9036_v57  ;;  %v731_v57 = vpop.permute.xlu0 %730 }
 0x27a   :  { %v691_v59 = vpop.f32.mrf.mxu0 }
 0x27b   :  { %v742_v4 = vadd.f32 %v715_v17, %v691_v59  ;;  %v735_v62 = vpop.permute.xlu2 %734 }
 0x280   :  { %v9038_v7 = vpop.f32.mrf.mxu3 }
 0x281   :  { %v744_v42 = vadd.f32 %v723_v0, %v9038_v7  ;;  %v8728_v0 = vmov 5  }
 0x282   :  { %v917_v8 = vpop.f32.mrf.mxu0  ;;  %8567 = vset.pattern.permute.xlu0 %v8728_v0  ;;  %8569 = vset.pattern.permute.xlu1 %v8728_v0 }
 0x283   :  { %8568 = vset.pattern.permute.xlu2 %v8728_v0 }
 0x288   :  { %v9040_v56 = vpop.f32.mrf.mxu3 }
 0x289   :  { %v745_v26 = vadd.f32 %v727_v48, %v9040_v56  ;;  %v739_v56 = vpop.permute.xlu1 %738 }
 0x28a   :  { %v919_v13 = vpop.f32.mrf.mxu0 }
 0x290   :  { %v9042_v55 = vpop.f32.mrf.mxu3 }
 0x291   :  { %v746_v7 = vadd.f32 %v731_v57, %v9042_v55 }
 0x292   :  { %v922_v23 = vpop.f32.mrf.mxu0 }
 0x298   :  { %v704_v25 = vpop.f32.mrf.mxu3 }
 0x299   :  { %v747_v1 = vadd.f32 %v735_v62, %v704_v25 }
 0x29a   :  { %v924_v35 = vpop.f32.mrf.mxu0 }
 0x2a0   :  { %v706_v18 = vpop.f32.mrf.mxu3 }
 0x2a1   :  { %v748_v16 = vadd.f32 %v739_v56, %v706_v18 }
 0x2a2   :  { %v927_v44 = vpop.f32.mrf.mxu0 }
 0x2a8   :  { %v815_v39 = vpop.f32.mrf.mxu3 }
 0x2a9   :  { %v835_v21 = vadd.f32 %v815_v39, %v741_v20 }
 0x2aa   :  { %v929_v53 = vpop.f32.mrf.mxu0 }
 0x2ab   :  { %v937_v33 = vadd.f32 %v917_v8, %v835_v21 }
 0x2ad   :  { %v945_v9 = vmax.f32 %v937_v33, 0.0 }
 0x2b0   :  { %v817_v22 = vpop.f32.mrf.mxu3 }
 0x2b1   :  { %v836_v61 = vadd.f32 %v817_v22, %v742_v4 }
 0x2b2   :  { %v932_v12 = vpop.f32.mrf.mxu0 }
 0x2b3   :  { %v938_v28 = vadd.f32 %v919_v13, %v836_v61 }
 0x2b5   :  { %v946_v29 = vmax.f32 %v938_v28, 0.0 }
 0x2b7   :  { %v953_v30 = vpack.c.bf16 %v946_v29, %v945_v9 }
 0x2b8   :  { %v820_v32 = vpop.f32.mrf.mxu3 }
 0x2b9   :  { %1126 = vmatmul.bf16.vlgmr.msrb.gmra.mxu1 %v953_v30  ;;  %1155 = vmatmul.bf16.vlgmr.msrb.gmra.mxu2 %v953_v30  ;;  %v837_v40 = vadd.f32 %v820_v32, %v743_v38 }
 0x2ba   :  { %1184 = vmatmul.bf16.vlgmr.msra.gmra.mxu3 %v953_v30  ;;  %v934_v10 = vpop.f32.mrf.mxu0 }
 0x2bb   :  { %v939_v43 = vadd.f32 %v922_v23, %v837_v40 }
 0x2bd   :  { %v947_v45 = vmax.f32 %v939_v43, 0.0  ;;  %v9077_v43 = vld [vmem:[%s9707_s1 + $0x8] sm:$0xff] }
 0x2be   :  { %1320 = vperm.xlu2 %8568, %v9077_v43  }
 0x2c0   :  { %v822_v2 = vpop.f32.mrf.mxu3 }
 0x2c1   :  { %v838_v49 = vadd.f32 %v822_v2, %v744_v42  ;;  %v9065_v42 = vld [vmem:[%s9707_s1] sm:$0xff]  ;;  %v9071_v2 = vld [vmem:[%s9707_s1 + $0x10] sm:$0xff] }
 0x2c2   :  { %1316 = vperm.xlu0 %8567, %v9065_v42   ;;  %1324 = vperm.xlu1 %8569, %v9071_v2  }
 0x2c3   :  { %v940_v36 = vadd.f32 %v924_v35, %v838_v49 }
 0x2c5   :  { %v948_v46 = vmax.f32 %v940_v36, 0.0 }
 0x2c7   :  { %v954_v27 = vpack.c.bf16 %v948_v46, %v947_v45 }
 0x2c8   :  { %v825_v51 = vpop.f32.mrf.mxu3 }
 0x2c9   :  { %1131 = vmatmul.bf16.gmra.mxu1 %v954_v27  ;;  %1160 = vmatmul.bf16.gmra.mxu2 %v954_v27  ;;  %v839_v52 = vadd.f32 %v825_v51, %v745_v26  ;;  %v9083_v51 = vld [vmem:[%s9707_s1 + $0x28] sm:$0xff]  ;;  %v9089_v26 = vld [vmem:[%s9707_s1 + $0x20] sm:$0xff] }
 0x2ca   :  { %1189 = vmatmul.bf16.gmra.mxu3 %v954_v27  ;;  %1336 = vperm.xlu0 %8567, %v9083_v51  }
 0x2cb   :  { %v941_v37 = vadd.f32 %v927_v44, %v839_v52  ;;  %1332 = vperm.xlu1 %8569, %v9089_v26  }
 0x2cd   :  { %v949_v60 = vmax.f32 %v941_v37, 0.0 }
 0x2d0   :  { %v827_v6 = vpop.f32.mrf.mxu3 }
 0x2d1   :  { %v840_v41 = vadd.f32 %v827_v6, %v746_v7 }
 0x2d3   :  { %v942_v59 = vadd.f32 %v929_v53, %v840_v41 }
 0x2d5   :  { %v950_v5 = vmax.f32 %v942_v59, 0.0  ;;  %v9095_v59 = vld [vmem:[%s9707_s1 + $0x18] sm:$0xff] }
 0x2d6   :  { %1328 = vperm.xlu2 %8568, %v9095_v59  }
 0x2d7   :  { %v955_v24 = vpack.c.bf16 %v950_v5, %v949_v60 }
 0x2d8   :  { %v830_v14 = vpop.f32.mrf.mxu3 }
 0x2d9   :  { %1136 = vmatmul.bf16.gmra.mxu1 %v955_v24  ;;  %1165 = vmatmul.bf16.gmra.mxu2 %v955_v24  ;;  %v841_v31 = vadd.f32 %v830_v14, %v747_v1 }
 0x2da   :  { %1194 = vmatmul.bf16.gmra.mxu3 %v955_v24 }
 0x2db   :  { %v943_v11 = vadd.f32 %v932_v12, %v841_v31 }
 0x2dd   :  { %v951_v3 = vmax.f32 %v943_v11, 0.0 }
 0x2e0   :  { %v832_v47 = vpop.f32.mrf.mxu3 }
 0x2e1   :  { %v842_v55 = vadd.f32 %v832_v47, %v748_v16 }
 0x2e3   :  { %v944_v63 = vadd.f32 %v934_v10, %v842_v55 }
 0x2e5   :  { %v952_v58 = vmax.f32 %v944_v63, 0.0 }
 0x2e7   :  { %v956_v8 = vpack.c.bf16 %v952_v58, %v951_v3 }
 0x2e9   :  { %1141 = vmatmul.bf16.gmra.mxu1 %v956_v8  ;;  %1170 = vmatmul.bf16.gmra.mxu2 %v956_v8 }
 0x2ea   :  { %1199 = vmatmul.bf16.gmra.mxu3 %v956_v8 }
 0x336   :  { %v1127_v13 = vpop.f32.mrf.mxu1 }
 0x33c   :  { %v1156_v39 = vpop.f32.mrf.mxu2 }
 0x33d   :  { %v9048_v15 = vpack.c.bf16 %v1156_v39, %v1127_v13  ;;  %v9050_v20 = vpop.f32.mrf.mxu3 }
 0x33e   :  { %v9052_v25 = vpop.f32.mrf.mxu1 }
 0x33f   :  { %v1384_v0 = vunpack.c.h.b16 %v9048_v15 }
 0x344   :  { %v9054_v18 = vpop.f32.mrf.mxu2 }
 0x345   :  { %v9056_v21 = vpop.f32.mrf.mxu3  ;;  %v1207_v63 = vpack.c.bf16 %v9054_v18, %v9052_v25 }
 0x346   :  { %v1132_v17 = vpop.f32.mrf.mxu1 }
 0x34c   :  { %v1161_v4 = vpop.f32.mrf.mxu2 }
 0x34d   :  { %v9058_v22 = vpop.f32.mrf.mxu3  ;;  %v1209_v11 = vpack.c.bf16 %v1161_v4, %v1132_v17  ;;  %v9107_v17 = vld [vmem:[%s9707_s1 + $0x38] sm:$0xff]  ;;  %v1208_v4 = vpack.c.bf16 %v9056_v21, %v9056_v21  ;;  %v1385_v21 = vunpack.c.h.b16 %v1207_v63 }
 0x34e   :  { %v1134_v23 = vpop.f32.mrf.mxu1  ;;  %v1210_v3 = vpack.c.bf16 %v9058_v22, %v9058_v22  ;;  %1344 = vperm.xlu1 %8569, %v9107_v17  }
 0x34f   :  { %v1386_v22 = vunpack.c.h.b16 %v1209_v11 }
 0x354   :  { %v1163_v33 = vpop.f32.mrf.mxu2 }
 0x355   :  { %v9060_v61 = vpop.f32.mrf.mxu3  ;;  %v1211_v60 = vpack.c.bf16 %v1163_v33, %v1134_v23  ;;  %v1260_v33 = vunpack.c.l.b16 %v1209_v11  ;;  %v8253_v11 = vld [vmem:[#allocation5 + $0x220] sm:$0xf0] }
 0x356   :  { %v1137_v28 = vpop.f32.mrf.mxu1  ;;  %v1212_v31 = vpack.c.bf16 %v9060_v61, %v9060_v61  ;;  %v1206_v61 = vpack.c.bf16 %v9050_v20, %v9050_v20 }
 0x357   :  { %v1261_v8 = vunpack.c.l.b16 %v1211_v60  ;;  %v1387_v13 = vunpack.c.h.b16 %v1211_v60 }
 0x358   :  { %v1489_v25 = vunpack.c.l.b16 %v1212_v31  ;;  %v1486_v20 = vunpack.c.l.b16 %v1206_v61  ;;  %v6933_v61 = vld [vmem:[#allocation5 + $0x1e0] sm:$0xf] }
 0x35c   :  { %v1166_v9 = vpop.f32.mrf.mxu2 }
 0x35d   :  { %v1195_v29 = vpop.f32.mrf.mxu3  ;;  %v1213_v57 = vpack.c.bf16 %v1166_v9, %v1137_v28  ;;  %v1488_v28 = vunpack.c.l.b16 %v1210_v3  ;;  %v9117_v9 = vld [vmem:[%s9707_s1 + $0x30] sm:$0xff]  ;;  %v8249_v3 = vld [vmem:[#allocation5 + $0x200] sm:$0xf0] }
 0x35e   :  { %v1139_v30 = vpop.f32.mrf.mxu1  ;;  %v1214_v5 = vpack.c.bf16 %v1195_v29, %v1195_v29  ;;  %1340 = vperm.xlu2 %8568, %v9117_v9   ;;  %v1259_v29 = vunpack.c.l.b16 %v1207_v63  ;;  %v6945_v63 = vld [vmem:[#allocation5 + $0x1f8] sm:$0xf] }
 0x35f   :  { %v1262_v55 = vunpack.c.l.b16 %v1213_v57  ;;  %v1388_v10 = vunpack.c.h.b16 %v1213_v57  ;;  %v6969_v57 = vld [vmem:[#allocation5 + $0x228] sm:$0xf] }
 0x360   :  { %v1490_v58 = vunpack.c.l.b16 %v1214_v5 }
 0x364   :  { %v1168_v34 = vpop.f32.mrf.mxu2 }
 0x365   :  { %v1197_v32 = vpop.f32.mrf.mxu3  ;;  %v1215_v46 = vpack.c.bf16 %v1168_v34, %v1139_v30  ;;  %v1267_v30 = vpack.c.b16 %v1261_v8, %v1260_v33  ;;  %v1393_v34 = vpack.c.b16 %v1387_v13, %v1386_v22  ;;  %v6946_v8 = vor.u32 %v8249_v3, %v6945_v63  ;;  %v6947_v13 = vld [vmem:[#allocation5 + $0x204] sm:$0xf0]  ;;  %v8228_v33 = vld [vmem:[#allocation2 + $0x98] sm:$0xff]  ;;  %v8235_v3 = vld [vmem:[#allocation5 + $0x190] sm:$0xf0] }
 0x366   :  { %v1142_v35 = vpop.f32.mrf.mxu1  ;;  %v1216_v52 = vpack.c.bf16 %v1197_v32, %v1197_v32  ;;  %v1487_v32 = vunpack.c.l.b16 %v1208_v4  ;;  %v8232_v22 = vld [vmem:[#allocation2 + $0xb8] sm:$0xff]  ;;  %v6893_v63 = vld [vmem:[#allocation5 + $0x188] sm:$0xf] }
 0x367   :  { %v1263_v12 = vunpack.c.l.b16 %v1215_v46  ;;  %v1389_v14 = vunpack.c.h.b16 %v1215_v46  ;;  %v8229_v46 = vld [vmem:[#allocation2 + $0xa0] sm:$0xff] }
 0x368   :  { %v1491_v16 = vunpack.c.l.b16 %v1216_v52  ;;  %v8255_v52 = vld [vmem:[#allocation5 + $0x230] sm:$0xf0] }
 0x369   :  { %v1268_v39 = vpack.c.b16 %v1263_v12, %v1262_v55  ;;  %v1394_v23 = vpack.c.b16 %v1389_v14, %v1388_v10  ;;  %v8231_v12 = vld [vmem:[#allocation2 + $0xb0] sm:$0xff] }
 0x36a   :  { %v1496_v18 = vpack.c.b16 %v1491_v16, %v1490_v58  ;;  %v6957_v14 = vld [vmem:[#allocation5 + $0x210] sm:$0xf]  ;;  %v6959_v16 = vld [vmem:[#allocation5 + $0x21c] sm:$0xf0]  ;;  %v8248_v58 = vld [vmem:[#allocation5 + $0x1fc] sm:$0xf] }
 0x36b   :  { %v6950_v4 = vor.u32 %v8248_v58, %v6947_v13 }
 0x36c   :  { %v1171_v38 = vpop.f32.mrf.mxu2 }
 0x36d   :  { %v1200_v40 = vpop.f32.mrf.mxu3  ;;  %v1217_v49 = vpack.c.bf16 %v1171_v38, %v1142_v35  ;;  %v1495_v35 = vpack.c.b16 %v1489_v25, %v1488_v28  ;;  %v1258_v38 = vunpack.c.l.b16 %v9048_v15  ;;  %v8222_v15 = vld [vmem:[#allocation2 + $0x68] sm:$0xff] }
 0x36e   :  { %v1218_v36 = vpack.c.bf16 %v1200_v40, %v1200_v40  ;;  %v1144_v44 = vpop.f32.mrf.mxu1  ;;  %v8246_v28 = vld [vmem:[#allocation5 + $0x1e8] sm:$0xf0] }
 0x36f   :  { %v1264_v7 = vunpack.c.l.b16 %v1217_v49  ;;  %v1390_v6 = vunpack.c.h.b16 %v1217_v49  ;;  %v1266_v40 = vpack.c.b16 %v1259_v29, %v1258_v38  ;;  %v1392_v49 = vpack.c.b16 %v1385_v21, %v1384_v0  ;;  %v8245_v29 = vld [vmem:[#allocation5 + $0x1e4] sm:$0xf]  ;;  %v6921_v0 = vld [vmem:[#allocation5 + $0x1c8] sm:$0xf] }
 0x370   :  { %v1492_v62 = vunpack.c.l.b16 %v1218_v36  ;;  %v1494_v36 = vpack.c.b16 %v1487_v32, %v1486_v20  ;;  %v6934_v21 = vor.u32 %v8246_v28, %v6933_v61  ;;  %v8247_v32 = vld [vmem:[#allocation5 + $0x1f0] sm:$0xf0] }
 0x371   :  { %v8243_v20 = vld [vmem:[#allocation5 + $0x1d0] sm:$0xf0] }
 0x374   :  { %v1173_v45 = vpop.f32.mrf.mxu2 }
 0x375   :  { %v1219_v27 = vpack.c.bf16 %v1173_v45, %v1144_v44  ;;  %v1202_v48 = vpop.f32.mrf.mxu3  ;;  %v8221_v44 = vld [vmem:[#allocation2 + $0x60] sm:$0xff] }
 0x376   :  { %v1220_v53 = vpack.c.bf16 %v1202_v48, %v1202_v48  ;;  %v8225_v45 = vld [vmem:[#allocation2 + $0x80] sm:$0xff]  ;;  %v8230_v48 = vld [vmem:[#allocation2 + $0xa8] sm:$0xff] }
 0x377   :  { %v1265_v37 = vunpack.c.l.b16 %v1219_v27  ;;  %v1391_v41 = vunpack.c.h.b16 %v1219_v27  ;;  %v8226_v27 = vld [vmem:[#allocation2 + $0x88] sm:$0xff] }
 0x378   :  { %v1493_v24 = vunpack.c.l.b16 %v1220_v53  ;;  %v8254_v53 = vld [vmem:[#allocation5 + $0x22c] sm:$0xf] }
 0x379   :  { %v1269_v1 = vpack.c.b16 %v1265_v37, %v1264_v7  ;;  %v1395_v56 = vpack.c.b16 %v1391_v41, %v1390_v6  ;;  %v6970_v7 = vor.u32 %v8255_v52, %v6969_v57  ;;  %v6971_v6 = vld [vmem:[#allocation5 + $0x234] sm:$0xf0]  ;;  %v6977_v37 = vld [vmem:[#allocation5 + $0x230] sm:$0xf]  ;;  %v8256_v41 = vld [vmem:[#allocation5 + $0x238] sm:$0xf0] }
 0x37a   :  { %v1497_v47 = vpack.c.b16 %v1493_v24, %v1492_v62  ;;  %v6974_v60 = vor.u32 %v8254_v53, %v6971_v6  ;;  %v6978_v5 = vor.u32 %v8256_v41, %v6977_v37  ;;  %v8223_v62 = vld [vmem:[#allocation2 + $0x70] sm:$0xff]  ;;  %v6911_v53 = vld [vmem:[#allocation5 + $0x1bc] sm:$0xf0]  ;;  %v8241_v6 = vld [vmem:[#allocation5 + $0x1c0] sm:$0xf0] }
 0x37b   :  { %1290 = vmatpush.bf16.msrb.mxu0 %v1269_v1  ;;  %1416 = vmatpush.bf16.msra.mxu1 %v1395_v56  ;;  %v8227_v24 = vld [vmem:[#allocation2 + $0x90] sm:$0xff]  ;;  %v8252_v1 = vld [vmem:[#allocation5 + $0x218] sm:$0xf0] }
 0x37c   :  { %1518 = vmatpush.bf16.msra.mxu2 %v1497_v47  ;;  %1724 = vmatpush.bf16.msrb.mxu3 %v6970_v7  ;;  %v8251_v56 = vld [vmem:[#allocation5 + $0x214] sm:$0xf]  ;;  %v6958_v31 = vor.u32 %v8252_v1, %v6957_v14  ;;  %v6965_v47 = vld [vmem:[#allocation5 + $0x218] sm:$0xf]  ;;  %v6905_v14 = vld [vmem:[#allocation5 + $0x1a0] sm:$0xf] }
 0x37d   :  { %v6962_v55 = vor.u32 %v8251_v56, %v6959_v16  ;;  %v6966_v10 = vor.u32 %v8253_v11, %v6965_v47  ;;  %v8239_v57 = vld [vmem:[#allocation5 + $0x1b4] sm:$0xf]  ;;  %v6917_v7 = vld [vmem:[#allocation5 + $0x1b8] sm:$0xf]  ;;  %v8238_v1 = vld [vmem:[#allocation5 + $0x1a8] sm:$0xf0] }
 0x37e   :  { %v6914_v37 = vor.u32 %v8239_v57, %v6911_v53  ;;  %v6918_v41 = vor.u32 %v8241_v6, %v6917_v7  ;;  %v6885_v16 = vld [vmem:[#allocation5 + $0x180] sm:$0xf]  ;;  %v8234_v47 = vld [vmem:[#allocation5 + $0x188] sm:$0xf0]  ;;  %v8233_v11 = vld [vmem:[#allocation5 + $0x184] sm:$0xf] }
 0x37f   :  { %1291 = vmatpush.bf16.msrb.mxu0 %v1268_v39  ;;  %1417 = vmatpush.bf16.msra.mxu1 %v1394_v23  ;;  %v6953_v39 = vld [vmem:[#allocation5 + $0x200] sm:$0xf]  ;;  %v8250_v23 = vld [vmem:[#allocation5 + $0x208] sm:$0xf0] }
 0x380   :  { %1519 = vmatpush.bf16.msra.mxu2 %v1496_v18  ;;  %1725 = vmatpush.bf16.msrb.mxu3 %v6958_v31  ;;  %v6954_v25 = vor.u32 %v8250_v23, %v6953_v39  ;;  %v8224_v18 = vld [vmem:[#allocation2 + $0x78] sm:$0xff]  ;;  %v6906_v31 = vor.u32 %v8238_v1, %v6905_v14  ;;  %v1317_v23 = vpop.permute.xlu0 %1316 }
 0x383   :  { %1292 = vmatpush.bf16.msrb.mxu0 %v1267_v30  ;;  %1418 = vmatpush.bf16.msra.mxu1 %v1393_v34  ;;  %v6935_v30 = vld [vmem:[#allocation5 + $0x1ec] sm:$0xf0]  ;;  %v6941_v34 = vld [vmem:[#allocation5 + $0x1e8] sm:$0xf] }
 0x384   :  { %1520 = vmatpush.bf16.msra.mxu2 %v1495_v35  ;;  %1726 = vmatpush.bf16.msrb.mxu3 %v6946_v8  ;;  %v6938_v35 = vor.u32 %v8245_v29, %v6935_v30  ;;  %v6942_v38 = vor.u32 %v8247_v32, %v6941_v34  ;;  %v6894_v8 = vor.u32 %v8235_v3, %v6893_v63 }
 0x387   :  { %1293 = vmatpush.bf16.msrb.mxu0 %v1266_v40  ;;  %1419 = vmatpush.bf16.msra.mxu1 %v1392_v49  ;;  %v8242_v40 = vld [vmem:[#allocation5 + $0x1cc] sm:$0xf]  ;;  %v6922_v49 = vor.u32 %v8243_v20, %v6921_v0 }
 0x388   :  { %1521 = vmatpush.bf16.msra.mxu2 %v1494_v36  ;;  %1727 = vmatpush.bf16.msrb.mxu3 %v6934_v21  ;;  %v6923_v36 = vld [vmem:[#allocation5 + $0x1d4] sm:$0xf0]  ;;  %v1337_v14 = vpop.permute.xlu0 %1336 }
 0x38a   :  { %6839 = vmatmul.msk.bf16.vlgmr.msrb.gmra.mxu0 %vm667_vm10, %v8221_v44  ;;  %6859 = vmatmul.msk.bf16.vlgmr.msra.gmra.mxu1 %vm667_vm10, %v8225_v45  ;;  %v6929_v44 = vld [vmem:[#allocation5 + $0x1d0] sm:$0xf]  ;;  %v8244_v45 = vld [vmem:[#allocation5 + $0x1d8] sm:$0xf0] }
 0x38b   :  { %6879 = vmatmul.msk.bf16.vlgmr.msra.gmra.mxu2 %vm667_vm10, %v8229_v46  ;;  %1753 = vmatpush.bf16.msra.mxu0 %v6974_v60  ;;  %v6926_v46 = vor.u32 %v8242_v40, %v6923_v36  ;;  %v6897_v60 = vld [vmem:[#allocation5 + $0x198] sm:$0xf]  ;;  %v1325_v40 = vpop.permute.xlu1 %1324 }
 0x38c   :  { %1782 = vmatpush.bf16.msrb.mxu1 %v6978_v5  ;;  %1728 = vmatpush.bf16.msrb.mxu3 %v6922_v49  ;;  %v8237_v5 = vld [vmem:[#allocation5 + $0x1a0] sm:$0xf0] }
 0x38f   :  { %1754 = vmatpush.bf16.msra.mxu0 %v6962_v55  ;;  %v6886_v55 = vor.u32 %v8234_v47, %v6885_v16 }
 0x390   :  { %1783 = vmatpush.bf16.msrb.mxu1 %v6966_v10  ;;  %v6887_v10 = vld [vmem:[#allocation5 + $0x18c] sm:$0xf0] }
 0x391   :  { %v6890_v58 = vor.u32 %v8233_v11, %v6887_v10 }
 0x393   :  { %1755 = vmatpush.bf16.msra.mxu0 %v6950_v4 }
 0x394   :  { %1784 = vmatpush.bf16.msrb.mxu1 %v6954_v25 }
 0x397   :  { %1756 = vmatpush.bf16.msra.mxu0 %v6938_v35 }
 0x398   :  { %1785 = vmatpush.bf16.msrb.mxu1 %v6942_v38 }
 0x39a   :  { %6840 = vmatmul.msk.bf16.gmra.mxu0 %vm667_vm10, %v8222_v15  ;;  %6860 = vmatmul.msk.bf16.gmra.mxu1 %vm667_vm10, %v8226_v27  ;;  %v6930_v15 = vor.u32 %v8244_v45, %v6929_v44  ;;  %v6909_v27 = vld [vmem:[#allocation5 + $0x1b0] sm:$0xf] }
 0x39b   :  { %6880 = vmatmul.msk.bf16.gmra.mxu2 %vm667_vm10, %v8230_v48  ;;  %1757 = vmatpush.bf16.msra.mxu0 %v6926_v46  ;;  %v8240_v48 = vld [vmem:[#allocation5 + $0x1b8] sm:$0xf0] }
 0x39c   :  { %1786 = vmatpush.bf16.msrb.mxu1 %v6930_v15  ;;  %v6910_v52 = vor.u32 %v8240_v48, %v6909_v27 }
 0x39e   :  { %1729 = vmatpush.bf16.msrb.mxu3 %v6910_v52 }
 0x39f   :  { %1758 = vmatpush.bf16.msra.mxu0 %v6914_v37 }
 0x3a0   :  { %1787 = vmatpush.bf16.msrb.mxu1 %v6918_v41 }
 0x3a4   :  { %1788 = vmatpush.bf16.msrb.mxu1 %v6906_v31 }
 0x3a8   :  { %1789 = vmatpush.bf16.msrb.mxu1 %v6894_v8 }
 0x3aa   :  { %6841 = vmatmul.msk.bf16.gmra.mxu0 %vm667_vm10, %v8223_v62  ;;  %6861 = vmatmul.msk.bf16.gmra.mxu1 %vm667_vm10, %v8227_v24  ;;  %v8236_v62 = vld [vmem:[#allocation5 + $0x19c] sm:$0xf]  ;;  %v6898_v24 = vor.u32 %v8237_v5, %v6897_v60  ;;  %v1333_v5 = vpop.permute.xlu1 %1332 }
 0x3ab   :  { %6881 = vmatmul.msk.bf16.gmra.mxu2 %vm667_vm10, %v8231_v12  ;;  %v6899_v12 = vld [vmem:[#allocation5 + $0x1a4] sm:$0xf0] }
 0x3ac   :  { %v6902_v56 = vor.u32 %v8236_v62, %v6899_v12  ;;  %1730 = vmatpush.bf16.msrb.mxu3 %v6898_v24 }
 0x3ae   :  { %1759 = vmatpush.bf16.msra.mxu0 %v6902_v56 }
 0x3b0   :  { %1731 = vmatpush.bf16.msrb.mxu3 %v6886_v55 }
 0x3b2   :  { %1760 = vmatpush.bf16.msra.mxu0 %v6890_v58 }
 0x3ba   :  { %6842 = vmatmul.msk.bf16.gmra.mxu0 %vm667_vm10, %v8224_v18  ;;  %6862 = vmatmul.msk.bf16.gmra.mxu1 %vm667_vm10, %v8228_v33 }
 0x3bb   :  { %6882 = vmatmul.msk.bf16.gmra.mxu2 %vm667_vm10, %v8232_v22  ;;  %v1321_v22 = vpop.permute.xlu2 %1320 }
 0x3c3   :  { %v1329_v46 = vpop.permute.xlu2 %1328 }
 0x407   :  { %v1295_v13 = vpop.f32.mrf.mxu0  ;;  %v1421_v39 = vpop.f32.mrf.mxu1 }
 0x408   :  { %v1347_v4 = vadd.f32 %v1317_v23, %v1295_v13  ;;  %v1341_v13 = vpop.permute.xlu2 %1340 }
 0x40a   :  { %v1441_v61 = vadd.f32 %v1421_v39, %v1347_v4 }
 0x40e   :  { %v1523_v25 = vpop.f32.mrf.mxu2 }
 0x40f   :  { %v1297_v18 = vpop.f32.mrf.mxu0  ;;  %v1423_v33 = vpop.f32.mrf.mxu1  ;;  %v1543_v29 = vadd.f32 %v1523_v25, %v1441_v61 }
 0x410   :  { %v1348_v28 = vadd.f32 %v1321_v22, %v1297_v18  ;;  %v1345_v25 = vpop.permute.xlu1 %1344 }
 0x411   :  { %v1551_v38 = vmax.f32 %v1543_v29, 0.0 }
 0x412   :  { %v1442_v21 = vadd.f32 %v1423_v33, %v1348_v28 }
 0x416   :  { %v1525_v30 = vpop.f32.mrf.mxu2 }
 0x417   :  { %v1544_v34 = vadd.f32 %v1525_v30, %v1442_v21  ;;  %v1300_v32 = vpop.f32.mrf.mxu0  ;;  %v1426_v35 = vpop.f32.mrf.mxu1 }
 0x418   :  { %v1349_v49 = vadd.f32 %v1325_v40, %v1300_v32 }
 0x419   :  { %v1552_v0 = vmax.f32 %v1544_v34, 0.0 }
 0x41a   :  { %v1443_v15 = vadd.f32 %v1426_v35, %v1349_v49 }
 0x41b   :  { %v1559_v20 = vpack.c.bf16 %v1552_v0, %v1551_v38 }
 0x41d   :  { %1732 = vmatmul.bf16.vlgmr.msrb.gmra.mxu3 %v1559_v20  ;;  %1761 = vmatmul.bf16.vlgmr.msra.gmra.mxu0 %v1559_v20 }
 0x41e   :  { %1790 = vmatmul.bf16.vlgmr.msrb.gmra.mxu1 %v1559_v20  ;;  %v1528_v36 = vpop.f32.mrf.mxu2 }
 0x41f   :  { %v1302_v44 = vpop.f32.mrf.mxu0  ;;  %v1428_v45 = vpop.f32.mrf.mxu1  ;;  %v1545_v48 = vadd.f32 %v1528_v36, %v1443_v15 }
 0x420   :  { %v1350_v27 = vadd.f32 %v1329_v46, %v1302_v44 }
 0x421   :  { %v1553_v37 = vmax.f32 %v1545_v48, 0.0 }
 0x422   :  { %v1444_v57 = vadd.f32 %v1428_v45, %v1350_v27 }
 0x426   :  { %v1530_v52 = vpop.f32.mrf.mxu2 }
 0x427   :  { %v1546_v53 = vadd.f32 %v1530_v52, %v1444_v57  ;;  %v1305_v7 = vpop.f32.mrf.mxu0  ;;  %v1431_v6 = vpop.f32.mrf.mxu1 }
 0x428   :  { %v1351_v24 = vadd.f32 %v1333_v5, %v1305_v7  ;;  %v8729_v5 = vmov 6  }
 0x429   :  { %v1554_v41 = vmax.f32 %v1546_v53, 0.0  ;;  %8570 = vset.pattern.permute.xlu0 %v8729_v5  ;;  %8572 = vset.pattern.permute.xlu1 %v8729_v5 }
 0x42a   :  { %v1445_v31 = vadd.f32 %v1431_v6, %v1351_v24  ;;  %1922 = vperm.xlu0 %8570, %v9065_v42   ;;  %1930 = vperm.xlu1 %8572, %v9071_v2  }
 0x42b   :  { %v1560_v60 = vpack.c.bf16 %v1554_v41, %v1553_v37  ;;  %8571 = vset.pattern.permute.xlu2 %v8729_v5  ;;  %v8258_v5 = vld [vmem:[#allocation2 + $0xc8] sm:$0xff] }
 0x42c   :  { %1926 = vperm.xlu2 %8571, %v9077_v43  }
 0x42d   :  { %1737 = vmatmul.bf16.gmra.mxu3 %v1560_v60  ;;  %1766 = vmatmul.bf16.gmra.mxu0 %v1560_v60 }
 0x42e   :  { %1795 = vmatmul.bf16.gmra.mxu1 %v1560_v60  ;;  %v1533_v62 = vpop.f32.mrf.mxu2 }
 0x42f   :  { %v1307_v12 = vpop.f32.mrf.mxu0  ;;  %v1433_v1 = vpop.f32.mrf.mxu1  ;;  %v1547_v16 = vadd.f32 %v1533_v62, %v1445_v31 }
 0x430   :  { %v1352_v56 = vadd.f32 %v1337_v14, %v1307_v12 }
 0x431   :  { %v1555_v63 = vmax.f32 %v1547_v16, 0.0 }
 0x432   :  { %v1446_v47 = vadd.f32 %v1433_v1, %v1352_v56  ;;  %1942 = vperm.xlu0 %8570, %v9083_v51   ;;  %1938 = vperm.xlu1 %8572, %v9089_v26  }
 0x434   :  { %1934 = vperm.xlu2 %8571, %v9095_v59  }
 0x436   :  { %v1535_v11 = vpop.f32.mrf.mxu2 }
 0x437   :  { %v1548_v55 = vadd.f32 %v1535_v11, %v1446_v47  ;;  %v1310_v10 = vpop.f32.mrf.mxu0  ;;  %v1436_v58 = vpop.f32.mrf.mxu1 }
 0x438   :  { %v1353_v23 = vadd.f32 %v1341_v13, %v1310_v10 }
 0x439   :  { %v1556_v3 = vmax.f32 %v1548_v55, 0.0 }
 0x43a   :  { %v1447_v33 = vadd.f32 %v1436_v58, %v1353_v23  ;;  %1950 = vperm.xlu1 %8572, %v9107_v17  }
 0x43b   :  { %v1561_v8 = vpack.c.bf16 %v1556_v3, %v1555_v63 }
 0x43c   :  { %1946 = vperm.xlu2 %8571, %v9117_v9   ;;  %v8257_v9 = vld [vmem:[#allocation2 + $0xc0] sm:$0xff] }
 0x43d   :  { %1742 = vmatmul.bf16.gmra.mxu3 %v1561_v8  ;;  %1771 = vmatmul.bf16.gmra.mxu0 %v1561_v8 }
 0x43e   :  { %1800 = vmatmul.bf16.gmra.mxu1 %v1561_v8  ;;  %v1538_v39 = vpop.f32.mrf.mxu2 }
 0x43f   :  { %v1312_v4 = vpop.f32.mrf.mxu0  ;;  %v1438_v22 = vpop.f32.mrf.mxu1  ;;  %v1549_v61 = vadd.f32 %v1538_v39, %v1447_v33 }
 0x440   :  { %v1354_v18 = vadd.f32 %v1345_v25, %v1312_v4 }
 0x441   :  { %v1557_v30 = vmax.f32 %v1549_v61, 0.0 }
 0x442   :  { %v1448_v28 = vadd.f32 %v1438_v22, %v1354_v18 }
 0x446   :  { %v1540_v29 = vpop.f32.mrf.mxu2 }
 0x447   :  { %v1550_v21 = vadd.f32 %v1540_v29, %v1448_v28 }
 0x449   :  { %v1558_v34 = vmax.f32 %v1550_v21, 0.0 }
 0x44b   :  { %v1562_v32 = vpack.c.bf16 %v1558_v34, %v1557_v30 }
 0x44d   :  { %1747 = vmatmul.bf16.gmra.mxu3 %v1562_v32  ;;  %1776 = vmatmul.bf16.gmra.mxu0 %v1562_v32 }
 0x44e   :  { %1805 = vmatmul.bf16.gmra.mxu1 %v1562_v32 }
 0x49a   :  { %v1762_v35 = vpop.f32.mrf.mxu0 }
 0x49b   :  { %v9134_v38 = vpop.f32.mrf.mxu1 }
 0x49c   :  { %v1812_v29 = vpack.c.bf16 %v9134_v38, %v9134_v38 }
 0x4a0   :  { %v1733_v0 = vpop.f32.mrf.mxu3 }
 0x4a1   :  { %v9136_v20 = vpack.c.bf16 %v1762_v35, %v1733_v0 }
 0x4a2   :  { %v9138_v40 = vpop.f32.mrf.mxu0 }
 0x4a3   :  { %v9140_v49 = vpop.f32.mrf.mxu1  ;;  %v1864_v17 = vunpack.c.l.b16 %v9136_v20 }
 0x4a4   :  { %v1814_v25 = vpack.c.bf16 %v9140_v49, %v9140_v49 }
 0x4a6   :  { %v2093_v32 = vunpack.c.l.b16 %v1814_v25  ;;  %v8264_v25 = vld [vmem:[#allocation2 + $0xf8] sm:$0xff] }
 0x4a8   :  { %v9142_v36 = vpop.f32.mrf.mxu3 }
 0x4a9   :  { %v1813_v35 = vpack.c.bf16 %v9138_v40, %v9142_v36  ;;  %v8265_v36 = vld [vmem:[#allocation2 + $0x100] sm:$0xff] }
 0x4aa   :  { %v1767_v44 = vpop.f32.mrf.mxu0 }
 0x4ab   :  { %v1796_v45 = vpop.f32.mrf.mxu1 }
 0x4ac   :  { %v1816_v58 = vpack.c.bf16 %v1796_v45, %v1796_v45 }
 0x4ae   :  { %v2094_v21 = vunpack.c.l.b16 %v1816_v58  ;;  %v7115_v58 = vld [vmem:[#allocation5 + $0x2dc] sm:$0xf0] }
 0x4b0   :  { %v1738_v46 = vpop.f32.mrf.mxu3 }
 0x4b1   :  { %v1815_v59 = vpack.c.bf16 %v1767_v44, %v1738_v46 }
 0x4b2   :  { %v1769_v15 = vpop.f32.mrf.mxu0 }
 0x4b3   :  { %v1798_v27 = vpop.f32.mrf.mxu1  ;;  %v1866_v38 = vunpack.c.l.b16 %v1815_v59  ;;  %v1992_v44 = vunpack.c.h.b16 %v1815_v59  ;;  %v7089_v59 = vld [vmem:[#allocation5 + $0x2a0] sm:$0xf] }
 0x4b4   :  { %v1818_v11 = vpack.c.bf16 %v1798_v27, %v1798_v27 }
 0x4b6   :  { %v2095_v18 = vunpack.c.l.b16 %v1818_v11  ;;  %v8267_v11 = vld [vmem:[#allocation2 + $0x110] sm:$0xff] }
 0x4b8   :  { %v1740_v48 = vpop.f32.mrf.mxu3  ;;  %v2101_v0 = vpack.c.b16 %v2095_v18, %v2094_v21  ;;  %v7101_v18 = vld [vmem:[#allocation5 + $0x2b8] sm:$0xf] }
 0x4b9   :  { %v1817_v33 = vpack.c.bf16 %v1769_v15, %v1740_v48  ;;  %v2092_v48 = vunpack.c.l.b16 %v1812_v29 }
 0x4ba   :  { %v1772_v57 = vpop.f32.mrf.mxu0 }
 0x4bb   :  { %v1801_v52 = vpop.f32.mrf.mxu1  ;;  %v1867_v49 = vunpack.c.l.b16 %v1817_v33  ;;  %v1993_v45 = vunpack.c.h.b16 %v1817_v33  ;;  %v2100_v46 = vpack.c.b16 %v2093_v32, %v2092_v48  ;;  %v8285_v33 = vld [vmem:[#allocation5 + $0x2c0] sm:$0xf0]  ;;  %v8279_v48 = vld [vmem:[#allocation5 + $0x290] sm:$0xf0] }
 0x4bc   :  { %v1820_v56 = vpack.c.bf16 %v1801_v52, %v1801_v52  ;;  %v1991_v52 = vunpack.c.h.b16 %v1813_v35 }
 0x4bd   :  { %v1999_v40 = vpack.c.b16 %v1993_v45, %v1992_v44 }
 0x4be   :  { %v2096_v43 = vunpack.c.l.b16 %v1820_v56  ;;  %v7133_v56 = vld [vmem:[#allocation5 + $0x2f0] sm:$0xf] }
 0x4c0   :  { %v1743_v53 = vpop.f32.mrf.mxu3 }
 0x4c1   :  { %v1819_v8 = vpack.c.bf16 %v1772_v57, %v1743_v53  ;;  %v1865_v57 = vunpack.c.l.b16 %v1813_v35  ;;  %v1873_v53 = vpack.c.b16 %v1867_v49, %v1866_v38  ;;  %v7091_v35 = vld [vmem:[#allocation5 + $0x2ac] sm:$0xf0]  ;;  %v8283_v49 = vld [vmem:[#allocation5 + $0x2b0] sm:$0xf0]  ;;  %v8278_v38 = vld [vmem:[#allocation5 + $0x28c] sm:$0xf] }
 0x4c2   :  { %v1774_v6 = vpop.f32.mrf.mxu0 }
 0x4c3   :  { %v1803_v7 = vpop.f32.mrf.mxu1  ;;  %v1868_v30 = vunpack.c.l.b16 %v1819_v8  ;;  %v1994_v34 = vunpack.c.h.b16 %v1819_v8  ;;  %v8289_v8 = vld [vmem:[#allocation5 + $0x2e0] sm:$0xf0] }
 0x4c4   :  { %v1822_v14 = vpack.c.bf16 %v1803_v7, %v1803_v7  ;;  %v1990_v7 = vunpack.c.h.b16 %v9136_v20  ;;  %v7125_v20 = vld [vmem:[#allocation5 + $0x2e8] sm:$0xf] }
 0x4c6   :  { %v2097_v55 = vunpack.c.l.b16 %v1822_v14  ;;  %v8290_v14 = vld [vmem:[#allocation5 + $0x2ec] sm:$0xf] }
 0x4c8   :  { %v1745_v37 = vpop.f32.mrf.mxu3  ;;  %v2102_v51 = vpack.c.b16 %v2097_v55, %v2096_v43  ;;  %v8259_v55 = vld [vmem:[#allocation2 + $0xd0] sm:$0xff]  ;;  %v7121_v43 = vld [vmem:[#allocation5 + $0x2d8] sm:$0xf] }
 0x4c9   :  { %v1821_v42 = vpack.c.bf16 %v1774_v6, %v1745_v37  ;;  %v1872_v6 = vpack.c.b16 %v1865_v57, %v1864_v17  ;;  %v1998_v37 = vpack.c.b16 %v1991_v52, %v1990_v7  ;;  %v7085_v57 = vld [vmem:[#allocation5 + $0x290] sm:$0xf]  ;;  %v8280_v52 = vld [vmem:[#allocation5 + $0x298] sm:$0xf0]  ;;  %v8275_v7 = vld [vmem:[#allocation5 + $0x274] sm:$0xf] }
 0x4ca   :  { %v1777_v60 = vpop.f32.mrf.mxu0  ;;  %v8276_v17 = vld [vmem:[#allocation5 + $0x278] sm:$0xf0] }
 0x4cb   :  { %v1806_v41 = vpop.f32.mrf.mxu1  ;;  %v1869_v22 = vunpack.c.l.b16 %v1821_v42  ;;  %v1995_v26 = vunpack.c.h.b16 %v1821_v42  ;;  %v8287_v42 = vld [vmem:[#allocation5 + $0x2d4] sm:$0xf] }
 0x4cc   :  { %v1824_v24 = vpack.c.bf16 %v1806_v41, %v1806_v41  ;;  %v8261_v41 = vld [vmem:[#allocation2 + $0xe0] sm:$0xff] }
 0x4cd   :  { %v1874_v15 = vpack.c.b16 %v1869_v22, %v1868_v30  ;;  %v2000_v27 = vpack.c.b16 %v1995_v26, %v1994_v34  ;;  %v7102_v22 = vor.u32 %v8285_v33, %v7101_v18  ;;  %v7103_v26 = vld [vmem:[#allocation5 + $0x2c4] sm:$0xf0]  ;;  %v8282_v30 = vld [vmem:[#allocation5 + $0x2a8] sm:$0xf0]  ;;  %v8281_v34 = vld [vmem:[#allocation5 + $0x2a4] sm:$0xf] }
 0x4ce   :  { %v2098_v31 = vunpack.c.l.b16 %v1824_v24  ;;  %v8291_v24 = vld [vmem:[#allocation5 + $0x2f0] sm:$0xf0]  ;;  %v7090_v32 = vor.u32 %v8282_v30, %v7089_v59  ;;  %v7094_v45 = vor.u32 %v8281_v34, %v7091_v35  ;;  %v1931_v35 = vpop.permute.xlu1 %1930 }
 0x4d0   :  { %v1748_v62 = vpop.f32.mrf.mxu3 }
 0x4d1   :  { %v1823_v47 = vpack.c.bf16 %v1777_v60, %v1748_v62  ;;  %v8266_v60 = vld [vmem:[#allocation2 + $0x108] sm:$0xff] }
 0x4d2   :  { %v1779_v10 = vpop.f32.mrf.mxu0  ;;  %v8262_v62 = vld [vmem:[#allocation2 + $0xe8] sm:$0xff] }
 0x4d3   :  { %v1808_v12 = vpop.f32.mrf.mxu1  ;;  %v1870_v13 = vunpack.c.l.b16 %v1823_v47  ;;  %v1996_v39 = vunpack.c.h.b16 %v1823_v47 }
 0x4d4   :  { %v1826_v1 = vpack.c.bf16 %v1808_v12, %v1808_v12  ;;  %v7126_v12 = vor.u32 %v8291_v24, %v7125_v20  ;;  %v8273_v20 = vld [vmem:[#allocation5 + $0x260] sm:$0xf0]  ;;  %v8272_v24 = vld [vmem:[#allocation5 + $0x25c] sm:$0xf] }
 0x4d6   :  { %v2099_v16 = vunpack.c.l.b16 %v1826_v1  ;;  %v7127_v1 = vld [vmem:[#allocation5 + $0x2f4] sm:$0xf0]  ;;  %2330 = vmatpush.bf16.msra.mxu1 %v7126_v12 }
 0x4d8   :  { %v2103_v63 = vpack.c.b16 %v2099_v16, %v2098_v31  ;;  %v1750_v3 = vpop.f32.mrf.mxu3  ;;  %v7130_v31 = vor.u32 %v8290_v14, %v7127_v1  ;;  %v8292_v16 = vld [vmem:[#allocation5 + $0x2f8] sm:$0xf0]  ;;  %v7055_v14 = vld [vmem:[#allocation5 + $0x264] sm:$0xf0]  ;;  %v7061_v1 = vld [vmem:[#allocation5 + $0x260] sm:$0xf] }
 0x4d9   :  { %v1825_v2 = vpack.c.bf16 %v1779_v10, %v1750_v3  ;;  %v7134_v47 = vor.u32 %v8292_v16, %v7133_v56  ;;  %v8263_v10 = vld [vmem:[#allocation2 + $0xf0] sm:$0xff]  ;;  %v8288_v3 = vld [vmem:[#allocation5 + $0x2d8] sm:$0xf0]  ;;  %v8274_v56 = vld [vmem:[#allocation5 + $0x268] sm:$0xf0] }
 0x4da   :  { %2124 = vmatpush.bf16.msrb.mxu0 %v2103_v63  ;;  %v7113_v63 = vld [vmem:[#allocation5 + $0x2d0] sm:$0xf]  ;;  %v7062_v16 = vor.u32 %v8274_v56, %v7061_v1 }
 0x4db   :  { %v1871_v23 = vunpack.c.l.b16 %v1825_v2  ;;  %v1997_v4 = vunpack.c.h.b16 %v1825_v2  ;;  %v7114_v2 = vor.u32 %v8288_v3, %v7113_v63  ;;  %v7043_v63 = vld [vmem:[#allocation5 + $0x24c] sm:$0xf0]  ;;  %v7049_v3 = vld [vmem:[#allocation5 + $0x248] sm:$0xf] }
 0x4dd   :  { %v1875_v61 = vpack.c.b16 %v1871_v23, %v1870_v13  ;;  %v2001_v28 = vpack.c.b16 %v1997_v4, %v1996_v39  ;;  %v7118_v13 = vor.u32 %v8287_v42, %v7115_v58  ;;  %v7122_v39 = vor.u32 %v8289_v8, %v7121_v43  ;;  %2331 = vmatpush.bf16.msra.mxu1 %v7114_v2  ;;  %v8268_v23 = vld [vmem:[#allocation2 + $0x118] sm:$0xff]  ;;  %v8271_v42 = vld [vmem:[#allocation5 + $0x250] sm:$0xf0]  ;;  %v1923_v8 = vpop.permute.xlu0 %1922 }
 0x4de   :  { %2125 = vmatpush.bf16.msrb.mxu0 %v2102_v51  ;;  %v8260_v4 = vld [vmem:[#allocation2 + $0xd8] sm:$0xff]  ;;  %v7050_v58 = vor.u32 %v8271_v42, %v7049_v3 }
 0x4df   :  { %1896 = vmatpush.bf16.msrb.mxu2 %v1875_v61  ;;  %2022 = vmatpush.bf16.msra.mxu3 %v2001_v28  ;;  %v8284_v51 = vld [vmem:[#allocation5 + $0x2bc] sm:$0xf]  ;;  %v7109_v61 = vld [vmem:[#allocation5 + $0x2c0] sm:$0xf]  ;;  %v8286_v28 = vld [vmem:[#allocation5 + $0x2c8] sm:$0xf0] }
 0x4e0   :  { %v7106_v29 = vor.u32 %v8284_v51, %v7103_v26  ;;  %v7110_v21 = vor.u32 %v8286_v28, %v7109_v61 }
 0x4e1   :  { %2332 = vmatpush.bf16.msra.mxu1 %v7102_v22 }
 0x4e2   :  { %2126 = vmatpush.bf16.msrb.mxu0 %v2101_v0  ;;  %v7097_v0 = vld [vmem:[#allocation5 + $0x2a8] sm:$0xf] }
 0x4e3   :  { %1897 = vmatpush.bf16.msrb.mxu2 %v1874_v15  ;;  %2023 = vmatpush.bf16.msra.mxu3 %v2000_v27  ;;  %v7098_v15 = vor.u32 %v8283_v49, %v7097_v0  ;;  %v7077_v27 = vld [vmem:[#allocation5 + $0x288] sm:$0xf] }
 0x4e4   :  { %v7078_v44 = vor.u32 %v8279_v48, %v7077_v27 }
 0x4e5   :  { %2333 = vmatpush.bf16.msra.mxu1 %v7090_v32 }
 0x4e6   :  { %2127 = vmatpush.bf16.msrb.mxu0 %v2100_v46  ;;  %v7079_v46 = vld [vmem:[#allocation5 + $0x294] sm:$0xf0] }
 0x4e7   :  { %1898 = vmatpush.bf16.msrb.mxu2 %v1873_v53  ;;  %2024 = vmatpush.bf16.msra.mxu3 %v1999_v40  ;;  %v7082_v53 = vor.u32 %v8278_v38, %v7079_v46  ;;  %v7086_v40 = vor.u32 %v8280_v52, %v7085_v57 }
 0x4e9   :  { %7035 = vmatmul.msk.bf16.vlgmr.msrb.gmra.mxu0 %vm667_vm10, %v8265_v36  ;;  %2334 = vmatpush.bf16.msra.mxu1 %v7078_v44  ;;  %v7065_v36 = vld [vmem:[#allocation5 + $0x270] sm:$0xf] }
 0x4eb   :  { %1899 = vmatpush.bf16.msrb.mxu2 %v1872_v6  ;;  %2025 = vmatpush.bf16.msra.mxu3 %v1998_v37  ;;  %v7066_v6 = vor.u32 %v8276_v17, %v7065_v36  ;;  %v7067_v37 = vld [vmem:[#allocation5 + $0x27c] sm:$0xf0] }
 0x4ed   :  { %2335 = vmatpush.bf16.msra.mxu1 %v7066_v6  ;;  %v1939_v6 = vpop.permute.xlu1 %1938 }
 0x4ee   :  { %6995 = vmatmul.msk.bf16.vlgmr.msrb.gmra.mxu2 %vm667_vm10, %v8257_v9  ;;  %7015 = vmatmul.msk.bf16.vlgmr.msra.gmra.mxu3 %vm667_vm10, %v8261_v41  ;;  %v7073_v9 = vld [vmem:[#allocation5 + $0x278] sm:$0xf]  ;;  %v8277_v41 = vld [vmem:[#allocation5 + $0x280] sm:$0xf0] }
 0x4ef   :  { %2359 = vmatpush.bf16.msra.mxu2 %v7130_v31  ;;  %2388 = vmatpush.bf16.msrb.mxu3 %v7134_v47  ;;  %v7058_v31 = vor.u32 %v8272_v24, %v7055_v14  ;;  %v7041_v47 = vld [vmem:[#allocation5 + $0x240] sm:$0xf] }
 0x4f3   :  { %2360 = vmatpush.bf16.msra.mxu2 %v7118_v13  ;;  %2389 = vmatpush.bf16.msrb.mxu3 %v7122_v39 }
 0x4f5   :  { %v1951_v3 = vpop.permute.xlu1 %1950 }
 0x4f7   :  { %2361 = vmatpush.bf16.msra.mxu2 %v7106_v29  ;;  %2390 = vmatpush.bf16.msrb.mxu3 %v7110_v21 }
 0x4f9   :  { %7036 = vmatmul.msk.bf16.gmra.mxu0 %vm667_vm10, %v8266_v60  ;;  %v7070_v60 = vor.u32 %v8275_v7, %v7067_v37 }
 0x4fb   :  { %2362 = vmatpush.bf16.msra.mxu2 %v7094_v45  ;;  %2391 = vmatpush.bf16.msrb.mxu3 %v7098_v15 }
 0x4fe   :  { %6996 = vmatmul.msk.bf16.gmra.mxu2 %vm667_vm10, %v8258_v5  ;;  %7016 = vmatmul.msk.bf16.gmra.mxu3 %vm667_vm10, %v8262_v62  ;;  %v7074_v5 = vor.u32 %v8277_v41, %v7073_v9  ;;  %v7053_v62 = vld [vmem:[#allocation5 + $0x258] sm:$0xf]  ;;  %v1943_v9 = vpop.permute.xlu0 %1942 }
 0x4ff   :  { %2363 = vmatpush.bf16.msra.mxu2 %v7082_v53  ;;  %2392 = vmatpush.bf16.msrb.mxu3 %v7086_v40  ;;  %v7054_v12 = vor.u32 %v8273_v20, %v7053_v62 }
 0x501   :  { %2336 = vmatpush.bf16.msra.mxu1 %v7054_v12 }
 0x503   :  { %2364 = vmatpush.bf16.msra.mxu2 %v7070_v60  ;;  %2393 = vmatpush.bf16.msrb.mxu3 %v7074_v5 }
 0x507   :  { %2365 = vmatpush.bf16.msra.mxu2 %v7058_v31  ;;  %2394 = vmatpush.bf16.msrb.mxu3 %v7062_v16 }
 0x509   :  { %7037 = vmatmul.msk.bf16.gmra.mxu0 %vm667_vm10, %v8267_v11  ;;  %v8270_v11 = vld [vmem:[#allocation5 + $0x248] sm:$0xf0] }
 0x50b   :  { %2395 = vmatpush.bf16.msrb.mxu3 %v7050_v58 }
 0x50e   :  { %6997 = vmatmul.msk.bf16.gmra.mxu2 %vm667_vm10, %v8259_v55  ;;  %7017 = vmatmul.msk.bf16.gmra.mxu3 %vm667_vm10, %v8263_v10  ;;  %v8269_v55 = vld [vmem:[#allocation5 + $0x244] sm:$0xf]  ;;  %v7042_v10 = vor.u32 %v8270_v11, %v7041_v47 }
 0x50f   :  { %v7046_v2 = vor.u32 %v8269_v55, %v7043_v63 }
 0x510   :  { %2337 = vmatpush.bf16.msra.mxu1 %v7042_v10 }
 0x511   :  { %2366 = vmatpush.bf16.msra.mxu2 %v7046_v2 }
 0x519   :  { %7038 = vmatmul.msk.bf16.gmra.mxu0 %vm667_vm10, %v8268_v23 }
 0x51e   :  { %6998 = vmatmul.msk.bf16.gmra.mxu2 %vm667_vm10, %v8260_v4  ;;  %7018 = vmatmul.msk.bf16.gmra.mxu3 %vm667_vm10, %v8264_v25  ;;  %v1927_v25 = vpop.permute.xlu2 %1926 }
 0x526   :  { %v1935_v45 = vpop.permute.xlu2 %1934 }
 0x52e   :  { %v1947_v11 = vpop.permute.xlu2 %1946 }
 0x566   :  { %v2129_v43 = vpop.f32.mrf.mxu0 }
 0x56e   :  { %v2131_v13 = vpop.f32.mrf.mxu0 }
 0x571   :  { %v1901_v39 = vpop.f32.mrf.mxu2  ;;  %v2027_v23 = vpop.f32.mrf.mxu3 }
 0x572   :  { %v1953_v4 = vadd.f32 %v1923_v8, %v1901_v39 }
 0x574   :  { %v2047_v18 = vadd.f32 %v2027_v23, %v1953_v4 }
 0x576   :  { %v2134_v26 = vpop.f32.mrf.mxu0  ;;  %v2149_v61 = vadd.f32 %v2129_v43, %v2047_v18 }
 0x578   :  { %v2157_v21 = vmax.f32 %v2149_v61, 0.0 }
 0x579   :  { %v1903_v33 = vpop.f32.mrf.mxu2  ;;  %v2029_v51 = vpop.f32.mrf.mxu3 }
 0x57a   :  { %v1954_v22 = vadd.f32 %v1927_v25, %v1903_v33 }
 0x57c   :  { %v2048_v28 = vadd.f32 %v2029_v51, %v1954_v22 }
 0x57e   :  { %v2150_v29 = vadd.f32 %v2131_v13, %v2048_v28  ;;  %v2136_v49 = vpop.f32.mrf.mxu0 }
 0x580   :  { %v2158_v59 = vmax.f32 %v2150_v29, 0.0 }
 0x581   :  { %v1906_v30 = vpop.f32.mrf.mxu2  ;;  %v2032_v34 = vpop.f32.mrf.mxu3 }
 0x582   :  { %v2165_v32 = vpack.c.bf16 %v2158_v59, %v2157_v21  ;;  %v1955_v0 = vadd.f32 %v1931_v35, %v1906_v30 }
 0x584   :  { %2338 = vmatmul.bf16.vlgmr.msra.gmra.mxu1 %v2165_v32  ;;  %2367 = vmatmul.bf16.vlgmr.msra.gmra.mxu2 %v2165_v32  ;;  %v2049_v15 = vadd.f32 %v2032_v34, %v1955_v0 }
 0x585   :  { %2396 = vmatmul.bf16.vlgmr.msrb.gmra.mxu3 %v2165_v32 }
 0x586   :  { %v2151_v44 = vadd.f32 %v2134_v26, %v2049_v15  ;;  %v2139_v52 = vpop.f32.mrf.mxu0 }
 0x588   :  { %v2159_v53 = vmax.f32 %v2151_v44, 0.0  ;;  %v8730_v44 = vmov 7  }
 0x589   :  { %v1908_v27 = vpop.f32.mrf.mxu2  ;;  %v2034_v48 = vpop.f32.mrf.mxu3  ;;  %8573 = vset.pattern.permute.xlu0 %v8730_v44  ;;  %8575 = vset.pattern.permute.xlu1 %v8730_v44 }
 0x58a   :  { %v1956_v38 = vadd.f32 %v1935_v45, %v1908_v27  ;;  %8574 = vset.pattern.permute.xlu2 %v8730_v44 }
 0x58c   :  { %v2050_v46 = vadd.f32 %v2034_v48, %v1956_v38 }
 0x58e   :  { %v2152_v57 = vadd.f32 %v2136_v49, %v2050_v46  ;;  %v2141_v60 = vpop.f32.mrf.mxu0 }
 0x590   :  { %v2160_v40 = vmax.f32 %v2152_v57, 0.0  ;;  %v9189_v57 = vld [vmem:[%s9707_s1] sm:$0xff] }
 0x591   :  { %v1911_v36 = vpop.f32.mrf.mxu2  ;;  %v2037_v17 = vpop.f32.mrf.mxu3  ;;  %2528 = vperm.xlu0 %8573, %v9189_v57  }
 0x592   :  { %v2166_v7 = vpack.c.bf16 %v2160_v40, %v2159_v53  ;;  %v1957_v37 = vadd.f32 %v1939_v6, %v1911_v36  ;;  %v9201_v53 = vld [vmem:[%s9707_s1 + $0x8] sm:$0xff] }
 0x593   :  { %2532 = vperm.xlu2 %8574, %v9201_v53  }
 0x594   :  { %2343 = vmatmul.bf16.gmra.mxu1 %v2166_v7  ;;  %2372 = vmatmul.bf16.gmra.mxu2 %v2166_v7  ;;  %v2051_v41 = vadd.f32 %v2037_v17, %v1957_v37 }
 0x595   :  { %2401 = vmatmul.bf16.gmra.mxu3 %v2166_v7 }
 0x596   :  { %v2153_v24 = vadd.f32 %v2139_v52, %v2051_v41  ;;  %v2144_v55 = vpop.f32.mrf.mxu0  ;;  %v9195_v52 = vld [vmem:[%s9707_s1 + $0x10] sm:$0xff]  ;;  %v9207_v41 = vld [vmem:[%s9707_s1 + $0x28] sm:$0xff] }
 0x597   :  { %2536 = vperm.xlu1 %8575, %v9195_v52  }
 0x598   :  { %v2161_v1 = vmax.f32 %v2153_v24, 0.0 }
 0x599   :  { %v1913_v5 = vpop.f32.mrf.mxu2  ;;  %v2039_v62 = vpop.f32.mrf.mxu3  ;;  %2548 = vperm.xlu0 %8573, %v9207_v41  }
 0x59a   :  { %v1958_v20 = vadd.f32 %v1943_v9, %v1913_v5 }
 0x59c   :  { %v2052_v12 = vadd.f32 %v2039_v62, %v1958_v20 }
 0x59e   :  { %v2154_v14 = vadd.f32 %v2141_v60, %v2052_v12  ;;  %v2146_v13 = vpop.f32.mrf.mxu0  ;;  %v9213_v60 = vld [vmem:[%s9707_s1 + $0x20] sm:$0xff] }
 0x59f   :  { %2544 = vperm.xlu1 %8575, %v9213_v60  }
 0x5a0   :  { %v2162_v56 = vmax.f32 %v2154_v14, 0.0 }
 0x5a1   :  { %v1916_v31 = vpop.f32.mrf.mxu2  ;;  %v2042_v16 = vpop.f32.mrf.mxu3 }
 0x5a2   :  { %v2167_v47 = vpack.c.bf16 %v2162_v56, %v2161_v1  ;;  %v1959_v10 = vadd.f32 %v1947_v11, %v1916_v31  ;;  %v9219_v56 = vld [vmem:[%s9707_s1 + $0x18] sm:$0xff] }
 0x5a3   :  { %2540 = vperm.xlu2 %8574, %v9219_v56  }
 0x5a4   :  { %2348 = vmatmul.bf16.gmra.mxu1 %v2167_v47  ;;  %2377 = vmatmul.bf16.gmra.mxu2 %v2167_v47  ;;  %v2053_v63 = vadd.f32 %v2042_v16, %v1959_v10 }
 0x5a5   :  { %2406 = vmatmul.bf16.gmra.mxu3 %v2167_v47 }
 0x5a6   :  { %v2155_v43 = vadd.f32 %v2144_v55, %v2053_v63 }
 0x5a8   :  { %v2163_v23 = vmax.f32 %v2155_v43, 0.0 }
 0x5a9   :  { %v1918_v42 = vpop.f32.mrf.mxu2  ;;  %v2044_v58 = vpop.f32.mrf.mxu3 }
 0x5aa   :  { %v1960_v2 = vadd.f32 %v1951_v3, %v1918_v42 }
 0x5ac   :  { %v2054_v8 = vadd.f32 %v2044_v58, %v1960_v2 }
 0x5ae   :  { %v2156_v39 = vadd.f32 %v2146_v13, %v2054_v8 }
 0x5b0   :  { %v2164_v4 = vmax.f32 %v2156_v39, 0.0 }
 0x5b2   :  { %v2168_v25 = vpack.c.bf16 %v2164_v4, %v2163_v23 }
 0x5b4   :  { %2353 = vmatmul.bf16.gmra.mxu1 %v2168_v25  ;;  %2382 = vmatmul.bf16.gmra.mxu2 %v2168_v25 }
 0x5b5   :  { %2411 = vmatmul.bf16.gmra.mxu3 %v2168_v25 }
 0x601   :  { %v2339_v18 = vpop.f32.mrf.mxu1 }
 0x607   :  { %v2368_v33 = vpop.f32.mrf.mxu2 }
 0x608   :  { %v9172_v51 = vpack.c.bf16 %v2368_v33, %v2339_v18  ;;  %v9174_v22 = vpop.f32.mrf.mxu3 }
 0x609   :  { %v9176_v26 = vpop.f32.mrf.mxu1 }
 0x60a   :  { %v2596_v44 = vunpack.c.h.b16 %v9172_v51 }
 0x60f   :  { %v9178_v61 = vpop.f32.mrf.mxu2 }
 0x610   :  { %v9180_v28 = vpop.f32.mrf.mxu3  ;;  %v2419_v39 = vpack.c.bf16 %v9178_v61, %v9176_v26 }
 0x611   :  { %v2344_v29 = vpop.f32.mrf.mxu1 }
 0x617   :  { %v2373_v21 = vpop.f32.mrf.mxu2 }
 0x618   :  { %v9182_v59 = vpop.f32.mrf.mxu3  ;;  %v2421_v43 = vpack.c.bf16 %v2373_v21, %v2344_v29  ;;  %v9231_v29 = vld [vmem:[%s9707_s1 + $0x38] sm:$0xff]  ;;  %v2420_v21 = vpack.c.bf16 %v9180_v28, %v9180_v28  ;;  %v2597_v28 = vunpack.c.h.b16 %v2419_v39 }
 0x619   :  { %v2346_v30 = vpop.f32.mrf.mxu1  ;;  %v2422_v23 = vpack.c.bf16 %v9182_v59, %v9182_v59  ;;  %2556 = vperm.xlu1 %8575, %v9231_v29  }
 0x61a   :  { %v2598_v59 = vunpack.c.h.b16 %v2421_v43 }
 0x61f   :  { %v2375_v34 = vpop.f32.mrf.mxu2 }
 0x620   :  { %v9184_v32 = vpop.f32.mrf.mxu3  ;;  %v2423_v31 = vpack.c.bf16 %v2375_v34, %v2346_v30  ;;  %v2472_v34 = vunpack.c.l.b16 %v2421_v43  ;;  %v8325_v43 = vld [vmem:[#allocation5 + $0x3a0] sm:$0xf0] }
 0x621   :  { %v2349_v35 = vpop.f32.mrf.mxu1  ;;  %v2424_v42 = vpack.c.bf16 %v9184_v32, %v9184_v32  ;;  %v2418_v32 = vpack.c.bf16 %v9174_v22, %v9174_v22 }
 0x622   :  { %v2473_v25 = vunpack.c.l.b16 %v2423_v31  ;;  %v2599_v18 = vunpack.c.h.b16 %v2423_v31 }
 0x623   :  { %v2701_v26 = vunpack.c.l.b16 %v2424_v42  ;;  %v2698_v22 = vunpack.c.l.b16 %v2418_v32  ;;  %v7245_v32 = vld [vmem:[#allocation5 + $0x360] sm:$0xf] }
 0x627   :  { %v2378_v0 = vpop.f32.mrf.mxu2 }
 0x628   :  { %v2407_v49 = vpop.f32.mrf.mxu3  ;;  %v2425_v5 = vpack.c.bf16 %v2378_v0, %v2349_v35  ;;  %v2700_v35 = vunpack.c.l.b16 %v2422_v23  ;;  %v9241_v0 = vld [vmem:[%s9707_s1 + $0x30] sm:$0xff]  ;;  %v8321_v23 = vld [vmem:[#allocation5 + $0x380] sm:$0xf0] }
 0x629   :  { %v2351_v45 = vpop.f32.mrf.mxu1  ;;  %v2426_v16 = vpack.c.bf16 %v2407_v49, %v2407_v49  ;;  %2552 = vperm.xlu2 %8574, %v9241_v0   ;;  %v2471_v49 = vunpack.c.l.b16 %v2419_v39  ;;  %v7257_v39 = vld [vmem:[#allocation5 + $0x378] sm:$0xf] }
 0x62a   :  { %v2474_v8 = vunpack.c.l.b16 %v2425_v5  ;;  %v2600_v13 = vunpack.c.h.b16 %v2425_v5  ;;  %v7281_v5 = vld [vmem:[#allocation5 + $0x3a8] sm:$0xf] }
 0x62b   :  { %v2702_v4 = vunpack.c.l.b16 %v2426_v16 }
 0x62f   :  { %v2380_v15 = vpop.f32.mrf.mxu2 }
 0x630   :  { %v2409_v27 = vpop.f32.mrf.mxu3  ;;  %v2427_v6 = vpack.c.bf16 %v2380_v15, %v2351_v45  ;;  %v2479_v45 = vpack.c.b16 %v2473_v25, %v2472_v34  ;;  %v2605_v15 = vpack.c.b16 %v2599_v18, %v2598_v59  ;;  %v7258_v25 = vor.u32 %v8321_v23, %v7257_v39  ;;  %v7259_v18 = vld [vmem:[#allocation5 + $0x384] sm:$0xf0]  ;;  %v8300_v34 = vld [vmem:[#allocation2 + $0x158] sm:$0xff]  ;;  %v8307_v23 = vld [vmem:[#allocation5 + $0x310] sm:$0xf0] }
 0x631   :  { %v2354_v48 = vpop.f32.mrf.mxu1  ;;  %v2428_v62 = vpack.c.bf16 %v2409_v27, %v2409_v27  ;;  %v2699_v27 = vunpack.c.l.b16 %v2420_v21  ;;  %v8304_v59 = vld [vmem:[#allocation2 + $0x178] sm:$0xff]  ;;  %v7205_v39 = vld [vmem:[#allocation5 + $0x308] sm:$0xf] }
 0x632   :  { %v2475_v55 = vunpack.c.l.b16 %v2427_v6  ;;  %v2601_v10 = vunpack.c.h.b16 %v2427_v6  ;;  %v8301_v6 = vld [vmem:[#allocation2 + $0x160] sm:$0xff] }
 0x633   :  { %v2703_v2 = vunpack.c.l.b16 %v2428_v62  ;;  %v8327_v62 = vld [vmem:[#allocation5 + $0x3b0] sm:$0xf0] }
 0x634   :  { %v2480_v33 = vpack.c.b16 %v2475_v55, %v2474_v8  ;;  %v2606_v30 = vpack.c.b16 %v2601_v10, %v2600_v13  ;;  %v8303_v55 = vld [vmem:[#allocation2 + $0x170] sm:$0xff] }
 0x635   :  { %v2708_v61 = vpack.c.b16 %v2703_v2, %v2702_v4  ;;  %v7269_v10 = vld [vmem:[#allocation5 + $0x390] sm:$0xf]  ;;  %v7271_v2 = vld [vmem:[#allocation5 + $0x39c] sm:$0xf0]  ;;  %v8320_v4 = vld [vmem:[#allocation5 + $0x37c] sm:$0xf] }
 0x636   :  { %v7262_v21 = vor.u32 %v8320_v4, %v7259_v18 }
 0x637   :  { %v2383_v38 = vpop.f32.mrf.mxu2 }
 0x638   :  { %v2412_v46 = vpop.f32.mrf.mxu3  ;;  %v2429_v40 = vpack.c.bf16 %v2383_v38, %v2354_v48  ;;  %v2707_v48 = vpack.c.b16 %v2701_v26, %v2700_v35  ;;  %v2470_v38 = vunpack.c.l.b16 %v9172_v51  ;;  %v8294_v51 = vld [vmem:[#allocation2 + $0x128] sm:$0xff] }
 0x639   :  { %v2430_v36 = vpack.c.bf16 %v2412_v46, %v2412_v46  ;;  %v2356_v17 = vpop.f32.mrf.mxu1  ;;  %v8318_v35 = vld [vmem:[#allocation5 + $0x368] sm:$0xf0] }
 0x63a   :  { %v2476_v24 = vunpack.c.l.b16 %v2429_v40  ;;  %v2602_v12 = vunpack.c.h.b16 %v2429_v40  ;;  %v2478_v46 = vpack.c.b16 %v2471_v49, %v2470_v38  ;;  %v2604_v40 = vpack.c.b16 %v2597_v28, %v2596_v44  ;;  %v8317_v49 = vld [vmem:[#allocation5 + $0x364] sm:$0xf]  ;;  %v7233_v44 = vld [vmem:[#allocation5 + $0x348] sm:$0xf] }
 0x63b   :  { %v2704_v47 = vunpack.c.l.b16 %v2430_v36  ;;  %v2706_v36 = vpack.c.b16 %v2699_v27, %v2698_v22  ;;  %v7246_v28 = vor.u32 %v8318_v35, %v7245_v32  ;;  %v8319_v27 = vld [vmem:[#allocation5 + $0x370] sm:$0xf0] }
 0x63c   :  { %v8315_v22 = vld [vmem:[#allocation5 + $0x350] sm:$0xf0] }
 0x63f   :  { %v2385_v7 = vpop.f32.mrf.mxu2 }
 0x640   :  { %v2431_v37 = vpack.c.bf16 %v2385_v7, %v2356_v17  ;;  %v2414_v9 = vpop.f32.mrf.mxu3  ;;  %v8293_v17 = vld [vmem:[#allocation2 + $0x120] sm:$0xff] }
 0x641   :  { %v2432_v20 = vpack.c.bf16 %v2414_v9, %v2414_v9  ;;  %v8297_v7 = vld [vmem:[#allocation2 + $0x140] sm:$0xff]  ;;  %v8302_v9 = vld [vmem:[#allocation2 + $0x168] sm:$0xff] }
 0x642   :  { %v2477_v14 = vunpack.c.l.b16 %v2431_v37  ;;  %v2603_v1 = vunpack.c.h.b16 %v2431_v37  ;;  %v8298_v37 = vld [vmem:[#allocation2 + $0x148] sm:$0xff] }
 0x643   :  { %v2705_v11 = vunpack.c.l.b16 %v2432_v20  ;;  %v8326_v20 = vld [vmem:[#allocation5 + $0x3ac] sm:$0xf] }
 0x644   :  { %v2481_v63 = vpack.c.b16 %v2477_v14, %v2476_v24  ;;  %v2607_v3 = vpack.c.b16 %v2603_v1, %v2602_v12  ;;  %v7282_v24 = vor.u32 %v8327_v62, %v7281_v5  ;;  %v7283_v12 = vld [vmem:[#allocation5 + $0x3b4] sm:$0xf0]  ;;  %v7289_v14 = vld [vmem:[#allocation5 + $0x3b0] sm:$0xf]  ;;  %v8328_v1 = vld [vmem:[#allocation5 + $0x3b8] sm:$0xf0] }
 0x645   :  { %v2709_v58 = vpack.c.b16 %v2705_v11, %v2704_v47  ;;  %v7286_v31 = vor.u32 %v8326_v20, %v7283_v12  ;;  %v7290_v16 = vor.u32 %v8328_v1, %v7289_v14  ;;  %v8295_v47 = vld [vmem:[#allocation2 + $0x130] sm:$0xff]  ;;  %v7223_v20 = vld [vmem:[#allocation5 + $0x33c] sm:$0xf0]  ;;  %v8313_v12 = vld [vmem:[#allocation5 + $0x340] sm:$0xf0] }
 0x646   :  { %2502 = vmatpush.bf16.msra.mxu0 %v2481_v63  ;;  %2628 = vmatpush.bf16.msrb.mxu1 %v2607_v3  ;;  %v8299_v11 = vld [vmem:[#allocation2 + $0x150] sm:$0xff]  ;;  %v8324_v63 = vld [vmem:[#allocation5 + $0x398] sm:$0xf0] }
 0x647   :  { %2730 = vmatpush.bf16.msrb.mxu2 %v2709_v58  ;;  %2936 = vmatpush.bf16.msra.mxu3 %v7282_v24  ;;  %v8323_v3 = vld [vmem:[#allocation5 + $0x394] sm:$0xf]  ;;  %v7270_v42 = vor.u32 %v8324_v63, %v7269_v10  ;;  %v7277_v58 = vld [vmem:[#allocation5 + $0x398] sm:$0xf]  ;;  %v7217_v10 = vld [vmem:[#allocation5 + $0x320] sm:$0xf] }
 0x648   :  { %v7274_v8 = vor.u32 %v8323_v3, %v7271_v2  ;;  %v7278_v13 = vor.u32 %v8325_v43, %v7277_v58  ;;  %v8311_v5 = vld [vmem:[#allocation5 + $0x334] sm:$0xf]  ;;  %v7229_v24 = vld [vmem:[#allocation5 + $0x338] sm:$0xf]  ;;  %v8310_v63 = vld [vmem:[#allocation5 + $0x328] sm:$0xf0] }
 0x649   :  { %v7226_v14 = vor.u32 %v8311_v5, %v7223_v20  ;;  %v7230_v1 = vor.u32 %v8313_v12, %v7229_v24  ;;  %v7197_v2 = vld [vmem:[#allocation5 + $0x300] sm:$0xf]  ;;  %v8306_v58 = vld [vmem:[#allocation5 + $0x308] sm:$0xf0]  ;;  %v8305_v43 = vld [vmem:[#allocation5 + $0x304] sm:$0xf] }
 0x64a   :  { %2503 = vmatpush.bf16.msra.mxu0 %v2480_v33  ;;  %2629 = vmatpush.bf16.msrb.mxu1 %v2606_v30  ;;  %v7265_v33 = vld [vmem:[#allocation5 + $0x380] sm:$0xf]  ;;  %v8322_v30 = vld [vmem:[#allocation5 + $0x388] sm:$0xf0] }
 0x64b   :  { %2731 = vmatpush.bf16.msrb.mxu2 %v2708_v61  ;;  %2937 = vmatpush.bf16.msra.mxu3 %v7270_v42  ;;  %v7266_v26 = vor.u32 %v8322_v30, %v7265_v33  ;;  %v8296_v61 = vld [vmem:[#allocation2 + $0x138] sm:$0xff]  ;;  %v7218_v42 = vor.u32 %v8310_v63, %v7217_v10  ;;  %v2529_v30 = vpop.permute.xlu0 %2528 }
 0x64e   :  { %2504 = vmatpush.bf16.msra.mxu0 %v2479_v45  ;;  %2630 = vmatpush.bf16.msrb.mxu1 %v2605_v15  ;;  %v7247_v45 = vld [vmem:[#allocation5 + $0x36c] sm:$0xf0]  ;;  %v7253_v15 = vld [vmem:[#allocation5 + $0x368] sm:$0xf] }
 0x64f   :  { %2732 = vmatpush.bf16.msrb.mxu2 %v2707_v48  ;;  %2938 = vmatpush.bf16.msra.mxu3 %v7258_v25  ;;  %v7250_v48 = vor.u32 %v8317_v49, %v7247_v45  ;;  %v7254_v38 = vor.u32 %v8319_v27, %v7253_v15  ;;  %v7206_v25 = vor.u32 %v8307_v23, %v7205_v39 }
 0x652   :  { %2505 = vmatpush.bf16.msra.mxu0 %v2478_v46  ;;  %2631 = vmatpush.bf16.msrb.mxu1 %v2604_v40  ;;  %v8314_v46 = vld [vmem:[#allocation5 + $0x34c] sm:$0xf]  ;;  %v7234_v40 = vor.u32 %v8315_v22, %v7233_v44 }
 0x653   :  { %2733 = vmatpush.bf16.msrb.mxu2 %v2706_v36  ;;  %2939 = vmatpush.bf16.msra.mxu3 %v7246_v28  ;;  %v7235_v36 = vld [vmem:[#allocation5 + $0x354] sm:$0xf0]  ;;  %v2549_v10 = vpop.permute.xlu0 %2548 }
 0x655   :  { %7151 = vmatmul.msk.bf16.vlgmr.msra.gmra.mxu0 %vm667_vm10, %v8293_v17  ;;  %7171 = vmatmul.msk.bf16.vlgmr.msrb.gmra.mxu1 %vm667_vm10, %v8297_v7  ;;  %v7241_v17 = vld [vmem:[#allocation5 + $0x350] sm:$0xf]  ;;  %v8316_v7 = vld [vmem:[#allocation5 + $0x358] sm:$0xf0] }
 0x656   :  { %7191 = vmatmul.msk.bf16.vlgmr.msrb.gmra.mxu2 %vm667_vm10, %v8301_v6  ;;  %2965 = vmatpush.bf16.msrb.mxu0 %v7286_v31  ;;  %v7238_v6 = vor.u32 %v8314_v46, %v7235_v36  ;;  %v7209_v31 = vld [vmem:[#allocation5 + $0x318] sm:$0xf]  ;;  %v2537_v46 = vpop.permute.xlu1 %2536 }
 0x657   :  { %2994 = vmatpush.bf16.msra.mxu1 %v7290_v16  ;;  %2940 = vmatpush.bf16.msra.mxu3 %v7234_v40  ;;  %v8309_v16 = vld [vmem:[#allocation5 + $0x320] sm:$0xf0] }
 0x65a   :  { %2966 = vmatpush.bf16.msrb.mxu0 %v7274_v8  ;;  %v7198_v8 = vor.u32 %v8306_v58, %v7197_v2 }
 0x65b   :  { %2995 = vmatpush.bf16.msra.mxu1 %v7278_v13  ;;  %v7199_v13 = vld [vmem:[#allocation5 + $0x30c] sm:$0xf0] }
 0x65c   :  { %v7202_v4 = vor.u32 %v8305_v43, %v7199_v13 }
 0x65e   :  { %2967 = vmatpush.bf16.msrb.mxu0 %v7262_v21 }
 0x65f   :  { %2996 = vmatpush.bf16.msra.mxu1 %v7266_v26 }
 0x662   :  { %2968 = vmatpush.bf16.msrb.mxu0 %v7250_v48 }
 0x663   :  { %2997 = vmatpush.bf16.msra.mxu1 %v7254_v38 }
 0x665   :  { %7152 = vmatmul.msk.bf16.gmra.mxu0 %vm667_vm10, %v8294_v51  ;;  %7172 = vmatmul.msk.bf16.gmra.mxu1 %vm667_vm10, %v8298_v37  ;;  %v7242_v51 = vor.u32 %v8316_v7, %v7241_v17  ;;  %v7221_v37 = vld [vmem:[#allocation5 + $0x330] sm:$0xf] }
 0x666   :  { %7192 = vmatmul.msk.bf16.gmra.mxu2 %vm667_vm10, %v8302_v9  ;;  %2969 = vmatpush.bf16.msrb.mxu0 %v7238_v6  ;;  %v8312_v9 = vld [vmem:[#allocation5 + $0x338] sm:$0xf0] }
 0x667   :  { %2998 = vmatpush.bf16.msra.mxu1 %v7242_v51  ;;  %v7222_v62 = vor.u32 %v8312_v9, %v7221_v37 }
 0x669   :  { %2941 = vmatpush.bf16.msra.mxu3 %v7222_v62 }
 0x66a   :  { %2970 = vmatpush.bf16.msrb.mxu0 %v7226_v14 }
 0x66b   :  { %2999 = vmatpush.bf16.msra.mxu1 %v7230_v1 }
 0x66f   :  { %3000 = vmatpush.bf16.msra.mxu1 %v7218_v42 }
 0x673   :  { %3001 = vmatpush.bf16.msra.mxu1 %v7206_v25 }
 0x675   :  { %7153 = vmatmul.msk.bf16.gmra.mxu0 %vm667_vm10, %v8295_v47  ;;  %7173 = vmatmul.msk.bf16.gmra.mxu1 %vm667_vm10, %v8299_v11  ;;  %v8308_v47 = vld [vmem:[#allocation5 + $0x31c] sm:$0xf]  ;;  %v7210_v11 = vor.u32 %v8309_v16, %v7209_v31  ;;  %v2545_v16 = vpop.permute.xlu1 %2544 }
 0x676   :  { %7193 = vmatmul.msk.bf16.gmra.mxu2 %vm667_vm10, %v8303_v55  ;;  %v7211_v55 = vld [vmem:[#allocation5 + $0x324] sm:$0xf0] }
 0x677   :  { %v7214_v3 = vor.u32 %v8308_v47, %v7211_v55  ;;  %2942 = vmatpush.bf16.msra.mxu3 %v7210_v11 }
 0x679   :  { %2971 = vmatpush.bf16.msrb.mxu0 %v7214_v3 }
 0x67b   :  { %2943 = vmatpush.bf16.msra.mxu3 %v7198_v8 }
 0x67d   :  { %2972 = vmatpush.bf16.msrb.mxu0 %v7202_v4 }
 0x685   :  { %7154 = vmatmul.msk.bf16.gmra.mxu0 %vm667_vm10, %v8296_v61  ;;  %7174 = vmatmul.msk.bf16.gmra.mxu1 %vm667_vm10, %v8300_v34 }
 0x686   :  { %7194 = vmatmul.msk.bf16.gmra.mxu2 %vm667_vm10, %v8304_v59  ;;  %v2533_v59 = vpop.permute.xlu2 %2532 }
 0x68e   :  { %v2541_v6 = vpop.permute.xlu2 %2540 }
 0x6d2   :  { %v2507_v18 = vpop.f32.mrf.mxu0  ;;  %v2633_v33 = vpop.f32.mrf.mxu1 }
 0x6d3   :  { %v2559_v21 = vadd.f32 %v2529_v30, %v2507_v18  ;;  %v2553_v18 = vpop.permute.xlu2 %2552 }
 0x6d5   :  { %v2653_v32 = vadd.f32 %v2633_v33, %v2559_v21 }
 0x6d9   :  { %v2735_v26 = vpop.f32.mrf.mxu2 }
 0x6da   :  { %v2509_v61 = vpop.f32.mrf.mxu0  ;;  %v2635_v34 = vpop.f32.mrf.mxu1  ;;  %v2755_v49 = vadd.f32 %v2735_v26, %v2653_v32 }
 0x6db   :  { %v2560_v35 = vadd.f32 %v2533_v59, %v2509_v61  ;;  %v2557_v26 = vpop.permute.xlu1 %2556 }
 0x6dc   :  { %v2763_v38 = vmax.f32 %v2755_v49, 0.0 }
 0x6dd   :  { %v2654_v28 = vadd.f32 %v2635_v34, %v2560_v35 }
 0x6e1   :  { %v2737_v45 = vpop.f32.mrf.mxu2 }
 0x6e2   :  { %v2756_v15 = vadd.f32 %v2737_v45, %v2654_v28  ;;  %v2512_v27 = vpop.f32.mrf.mxu0  ;;  %v2638_v48 = vpop.f32.mrf.mxu1 }
 0x6e3   :  { %v2561_v40 = vadd.f32 %v2537_v46, %v2512_v27 }
 0x6e4   :  { %v2764_v44 = vmax.f32 %v2756_v15, 0.0 }
 0x6e5   :  { %v2655_v51 = vadd.f32 %v2638_v48, %v2561_v40 }
 0x6e6   :  { %v2771_v22 = vpack.c.bf16 %v2764_v44, %v2763_v38 }
 0x6e8   :  { %2944 = vmatmul.bf16.vlgmr.msra.gmra.mxu3 %v2771_v22  ;;  %2973 = vmatmul.bf16.vlgmr.msrb.gmra.mxu0 %v2771_v22 }
 0x6e9   :  { %3002 = vmatmul.bf16.vlgmr.msra.gmra.mxu1 %v2771_v22  ;;  %v2740_v36 = vpop.f32.mrf.mxu2 }
 0x6ea   :  { %v2514_v17 = vpop.f32.mrf.mxu0  ;;  %v2640_v7 = vpop.f32.mrf.mxu1  ;;  %v2757_v9 = vadd.f32 %v2740_v36, %v2655_v51 }
 0x6eb   :  { %v2562_v37 = vadd.f32 %v2541_v6, %v2514_v17 }
 0x6ec   :  { %v2765_v14 = vmax.f32 %v2757_v9, 0.0 }
 0x6ed   :  { %v2656_v5 = vadd.f32 %v2640_v7, %v2562_v37 }
 0x6f1   :  { %v2742_v62 = vpop.f32.mrf.mxu2 }
 0x6f2   :  { %v2758_v20 = vadd.f32 %v2742_v62, %v2656_v5  ;;  %v2517_v24 = vpop.f32.mrf.mxu0  ;;  %v2643_v12 = vpop.f32.mrf.mxu1 }
 0x6f3   :  { %v2563_v11 = vadd.f32 %v2545_v16, %v2517_v24  ;;  %v8731_v16 = vmov 8  }
 0x6f4   :  { %v2766_v1 = vmax.f32 %v2758_v20, 0.0  ;;  %8578 = vset.pattern.permute.xlu1 %v8731_v16  ;;  %8577 = vset.pattern.permute.xlu2 %v8731_v16 }
 0x6f5   :  { %v2657_v42 = vadd.f32 %v2643_v12, %v2563_v11  ;;  %3150 = vperm.xlu1 %8578, %v9213_v60   ;;  %3162 = vperm.xlu2 %8577, %v9231_v29  }
 0x6f6   :  { %v2772_v31 = vpack.c.bf16 %v2766_v1, %v2765_v14  ;;  %8576 = vset.pattern.permute.xlu0 %v8731_v16  ;;  %v8330_v16 = vld [vmem:[#allocation2 + $0x188] sm:$0xff] }
 0x6f7   :  { %3158 = vperm.xlu0 %8576, %v9241_v0  }
 0x6f8   :  { %2949 = vmatmul.bf16.gmra.mxu3 %v2772_v31  ;;  %2978 = vmatmul.bf16.gmra.mxu0 %v2772_v31 }
 0x6f9   :  { %3007 = vmatmul.bf16.gmra.mxu1 %v2772_v31  ;;  %v2745_v47 = vpop.f32.mrf.mxu2 }
 0x6fa   :  { %v2519_v55 = vpop.f32.mrf.mxu0  ;;  %v2645_v63 = vpop.f32.mrf.mxu1  ;;  %v2759_v2 = vadd.f32 %v2745_v47, %v2657_v42 }
 0x6fb   :  { %v2564_v3 = vadd.f32 %v2549_v10, %v2519_v55 }
 0x6fc   :  { %v2767_v39 = vmax.f32 %v2759_v2, 0.0 }
 0x6fd   :  { %v2658_v58 = vadd.f32 %v2645_v63, %v2564_v3  ;;  %3142 = vperm.xlu1 %8578, %v9195_v52   ;;  %3154 = vperm.xlu2 %8577, %v9207_v41  }
 0x6ff   :  { %3146 = vperm.xlu0 %8576, %v9219_v56  }
 0x701   :  { %v2747_v43 = vpop.f32.mrf.mxu2 }
 0x702   :  { %v2760_v8 = vadd.f32 %v2747_v43, %v2658_v58  ;;  %v2522_v13 = vpop.f32.mrf.mxu0  ;;  %v2648_v4 = vpop.f32.mrf.mxu1 }
 0x703   :  { %v2565_v30 = vadd.f32 %v2553_v18, %v2522_v13 }
 0x704   :  { %v2768_v23 = vmax.f32 %v2760_v8, 0.0 }
 0x705   :  { %v2659_v34 = vadd.f32 %v2648_v4, %v2565_v30  ;;  %3138 = vperm.xlu1 %8578, %v9201_v53   ;;  %3134 = vperm.xlu2 %8577, %v9189_v57  }
 0x706   :  { %v2773_v25 = vpack.c.bf16 %v2768_v23, %v2767_v39 }
 0x708   :  { %2954 = vmatmul.bf16.gmra.mxu3 %v2773_v25  ;;  %2983 = vmatmul.bf16.gmra.mxu0 %v2773_v25 }
 0x709   :  { %3012 = vmatmul.bf16.gmra.mxu1 %v2773_v25  ;;  %v2750_v33 = vpop.f32.mrf.mxu2 }
 0x70a   :  { %v2524_v21 = vpop.f32.mrf.mxu0  ;;  %v2650_v59 = vpop.f32.mrf.mxu1  ;;  %v2761_v32 = vadd.f32 %v2750_v33, %v2659_v34 }
 0x70b   :  { %v2566_v61 = vadd.f32 %v2557_v26, %v2524_v21 }
 0x70c   :  { %v2769_v45 = vmax.f32 %v2761_v32, 0.0 }
 0x70d   :  { %v2660_v35 = vadd.f32 %v2650_v59, %v2566_v61 }
 0x711   :  { %v2752_v49 = vpop.f32.mrf.mxu2 }
 0x712   :  { %v2762_v28 = vadd.f32 %v2752_v49, %v2660_v35 }
 0x714   :  { %v2770_v15 = vmax.f32 %v2762_v28, 0.0 }
 0x716   :  { %v2774_v27 = vpack.c.bf16 %v2770_v15, %v2769_v45 }
 0x718   :  { %2959 = vmatmul.bf16.gmra.mxu3 %v2774_v27  ;;  %2988 = vmatmul.bf16.gmra.mxu0 %v2774_v27 }
 0x719   :  { %3017 = vmatmul.bf16.gmra.mxu1 %v2774_v27 }
 0x765   :  { %v2974_v48 = vpop.f32.mrf.mxu0 }
 0x766   :  { %v9258_v38 = vpop.f32.mrf.mxu1 }
 0x767   :  { %v3024_v49 = vpack.c.bf16 %v9258_v38, %v9258_v38 }
 0x76b   :  { %v2945_v44 = vpop.f32.mrf.mxu3 }
 0x76c   :  { %v9260_v22 = vpack.c.bf16 %v2974_v48, %v2945_v44 }
 0x76d   :  { %v9262_v46 = vpop.f32.mrf.mxu0 }
 0x76e   :  { %v9264_v40 = vpop.f32.mrf.mxu1  ;;  %v3076_v53 = vunpack.c.l.b16 %v9260_v22  ;;  %v3202_v57 = vunpack.c.h.b16 %v9260_v22  ;;  %v9293_v22 = vld [vmem:[%s9707_s1 + $0x30] sm:$0xff] }
 0x76f   :  { %v3026_v26 = vpack.c.bf16 %v9264_v40, %v9264_v40 }
 0x771   :  { %v3305_v27 = vunpack.c.l.b16 %v3026_v26 }
 0x773   :  { %v9266_v36 = vpop.f32.mrf.mxu3 }
 0x774   :  { %v3025_v48 = vpack.c.bf16 %v9262_v46, %v9266_v36  ;;  %v8337_v36 = vld [vmem:[#allocation2 + $0x1c0] sm:$0xff] }
 0x775   :  { %v2979_v17 = vpop.f32.mrf.mxu0 }
 0x776   :  { %v3008_v7 = vpop.f32.mrf.mxu1 }
 0x777   :  { %v3028_v4 = vpack.c.bf16 %v3008_v7, %v3008_v7 }
 0x779   :  { %v3306_v28 = vunpack.c.l.b16 %v3028_v4  ;;  %v9336_v4 = vld [vmem:[%s9707_s1 + $0x28] sm:$0xff] }
 0x77b   :  { %v2950_v6 = vpop.f32.mrf.mxu3 }
 0x77c   :  { %v3027_v56 = vpack.c.bf16 %v2979_v17, %v2950_v6 }
 0x77d   :  { %v2981_v51 = vpop.f32.mrf.mxu0 }
 0x77e   :  { %v3010_v37 = vpop.f32.mrf.mxu1  ;;  %v3078_v17 = vunpack.c.l.b16 %v3027_v56  ;;  %v3204_v6 = vunpack.c.h.b16 %v3027_v56 }
 0x77f   :  { %v3030_v43 = vpack.c.bf16 %v3010_v37, %v3010_v37  ;;  %v3304_v37 = vunpack.c.l.b16 %v3024_v49 }
 0x781   :  { %v3307_v61 = vunpack.c.l.b16 %v3030_v43  ;;  %v9317_v43 = vld [vmem:[%s9707_s1 + $0x10] sm:$0xff] }
 0x783   :  { %v2952_v9 = vpop.f32.mrf.mxu3  ;;  %v3313_v44 = vpack.c.b16 %v3307_v61, %v3306_v28  ;;  %v8735_v61 = vmov 11  }
 0x784   :  { %v3029_v34 = vpack.c.bf16 %v2981_v51, %v2952_v9  ;;  %v3312_v9 = vpack.c.b16 %v3305_v27, %v3304_v37 }
 0x785   :  { %v2984_v5 = vpop.f32.mrf.mxu0 }
 0x786   :  { %v3013_v62 = vpop.f32.mrf.mxu1  ;;  %v3079_v40 = vunpack.c.l.b16 %v3029_v34  ;;  %v3205_v7 = vunpack.c.h.b16 %v3029_v34 }
 0x787   :  { %v3032_v3 = vpack.c.bf16 %v3013_v62, %v3013_v62  ;;  %v3203_v62 = vunpack.c.h.b16 %v3025_v48 }
 0x788   :  { %v3211_v46 = vpack.c.b16 %v3205_v7, %v3204_v6 }
 0x789   :  { %v3308_v0 = vunpack.c.l.b16 %v3032_v3  ;;  %v8335_v3 = vld [vmem:[#allocation2 + $0x1b0] sm:$0xff] }
 0x78b   :  { %v2955_v20 = vpop.f32.mrf.mxu3 }
 0x78c   :  { %v3031_v25 = vpack.c.bf16 %v2984_v5, %v2955_v20  ;;  %v3077_v5 = vunpack.c.l.b16 %v3025_v48  ;;  %v3085_v20 = vpack.c.b16 %v3079_v40, %v3078_v17  ;;  %v3151_v48 = vpop.permute.xlu1 %3150 }
 0x78d   :  { %v2986_v12 = vpop.f32.mrf.mxu0 }
 0x78e   :  { %v3015_v24 = vpop.f32.mrf.mxu1  ;;  %v3080_v45 = vunpack.c.l.b16 %v3031_v25  ;;  %v3206_v15 = vunpack.c.h.b16 %v3031_v25 }
 0x78f   :  { %v3034_v10 = vpack.c.bf16 %v3015_v24, %v3015_v24  ;;  %v3084_v24 = vpack.c.b16 %v3077_v5, %v3076_v53 }
 0x791   :  { %v3309_v8 = vunpack.c.l.b16 %v3034_v10  ;;  %v3393_v10 = vld [vmem:[%s9707_s1 + $0x40] sm:$0xff] }
 0x793   :  { %v2957_v14 = vpop.f32.mrf.mxu3  ;;  %v3314_v52 = vpack.c.b16 %v3309_v8, %v3308_v0  ;;  %v8733_v8 = vmov 9   ;;  %v3394_v0 = vld [vmem:[%s9707_s1 + $0x48] sm:$0xff] }
 0x794   :  { %v3033_v60 = vpack.c.bf16 %v2986_v12, %v2957_v14  ;;  %v3210_v12 = vpack.c.b16 %v3203_v62, %v3202_v57  ;;  %v8329_v14 = vld [vmem:[#allocation2 + $0x180] sm:$0xff] }
 0x795   :  { %v2989_v31 = vpop.f32.mrf.mxu0 }
 0x796   :  { %v3018_v1 = vpop.f32.mrf.mxu1  ;;  %v3081_v59 = vunpack.c.l.b16 %v3033_v60  ;;  %v3207_v41 = vunpack.c.h.b16 %v3033_v60  ;;  %v8734_v60 = vmov 10  }
 0x797   :  { %v3036_v11 = vpack.c.bf16 %v3018_v1, %v3018_v1  ;;  %v8333_v1 = vld [vmem:[#allocation2 + $0x1a0] sm:$0xff] }
 0x798   :  { %v3086_v51 = vpack.c.b16 %v3081_v59, %v3080_v45  ;;  %v3212_v38 = vpack.c.b16 %v3207_v41, %v3206_v15  ;;  %v9380_v45 = vld [vmem:[%s9707_s1 + $0x18] sm:$0xff] }
 0x799   :  { %v3310_v42 = vunpack.c.l.b16 %v3036_v11  ;;  %v8732_v11 = vmov 3  }
 0x79a   :  { %8581 = vset.pattern.permute.xlu1 %v8732_v11  ;;  %8579 = vset.pattern.permute.xlu0 %v8732_v11 }
 0x79b   :  { %v2960_v47 = vpop.f32.mrf.mxu3  ;;  %3429 = vperm.xlu1 %8581, %v9293_v22   ;;  %8580 = vset.pattern.permute.xlu2 %v8732_v11 }
 0x79c   :  { %v3035_v58 = vpack.c.bf16 %v2989_v31, %v2960_v47  ;;  %v8338_v31 = vld [vmem:[#allocation2 + $0x1c8] sm:$0xff]  ;;  %3424 = vperm.xlu2 %8580, %v9336_v4  }
 0x79d   :  { %v2991_v13 = vpop.f32.mrf.mxu0  ;;  %v8334_v47 = vld [vmem:[#allocation2 + $0x1a8] sm:$0xff] }
 0x79e   :  { %v3020_v55 = vpop.f32.mrf.mxu1  ;;  %v3082_v18 = vunpack.c.l.b16 %v3035_v58  ;;  %v3208_v33 = vunpack.c.h.b16 %v3035_v58  ;;  %v8340_v58 = vld [vmem:[#allocation2 + $0x1d8] sm:$0xff] }
 0x79f   :  { %v3038_v63 = vpack.c.bf16 %v3020_v55, %v3020_v55  ;;  %v8339_v55 = vld [vmem:[#allocation2 + $0x1d0] sm:$0xff] }
 0x7a1   :  { %v3311_v2 = vunpack.c.l.b16 %v3038_v63  ;;  %v8331_v63 = vld [vmem:[#allocation2 + $0x190] sm:$0xff] }
 0x7a3   :  { %v3315_v39 = vpack.c.b16 %v3311_v2, %v3310_v42  ;;  %v2962_v23 = vpop.f32.mrf.mxu3  ;;  %3439 = vperm.xlu1 %8581, %v3393_v10   ;;  %v9306_v42 = vld [vmem:[%s9707_s1 + $0x20] sm:$0xff]  ;;  %v3396_v2 = vld [vmem:[%s9707_s1 + $0x58] sm:$0xff] }
 0x7a4   :  { %v3037_v29 = vpack.c.bf16 %v2991_v13, %v2962_v23  ;;  %3419 = vperm.xlu0 %8579, %v9306_v42   ;;  %v8332_v13 = vld [vmem:[#allocation2 + $0x198] sm:$0xff] }
 0x7a5   :  { %3336 = vmatpush.bf16.msra.mxu0 %v3315_v39  ;;  %v8336_v39 = vld [vmem:[#allocation2 + $0x1b8] sm:$0xff] }
 0x7a6   :  { %v3083_v30 = vunpack.c.l.b16 %v3037_v29  ;;  %v3209_v21 = vunpack.c.h.b16 %v3037_v29  ;;  %v9327_v23 = vld [vmem:[%s9707_s1 + $0x38] sm:$0xff]  ;;  %v9331_v29 = vpop.permute.xlu2 %3162 }
 0x7a7   :  { %3434 = vperm.xlu2 %8580, %v9327_v23  }
 0x7a8   :  { %v3087_v32 = vpack.c.b16 %v3083_v30, %v3082_v18  ;;  %v3213_v35 = vpack.c.b16 %v3209_v21, %v3208_v33  ;;  %v9348_v33 = vld [vmem:[%s9707_s1] sm:$0xff]  ;;  %v3395_v30 = vld [vmem:[%s9707_s1 + $0x50] sm:$0xff] }
 0x7a9   :  { %3337 = vmatpush.bf16.msra.mxu0 %v3314_v52 }
 0x7aa   :  { %3108 = vmatpush.bf16.msra.mxu2 %v3087_v32  ;;  %3234 = vmatpush.bf16.msrb.mxu3 %v3213_v35  ;;  %v9366_v35 = vld [vmem:[%s9707_s1 + $0x8] sm:$0xff] }
 0x7ab   :  { %3454 = vperm.xlu1 %8581, %v3396_v2  }
 0x7ac   :  { %3444 = vperm.xlu0 %8579, %v3394_v0  }
 0x7ad   :  { %3338 = vmatpush.bf16.msra.mxu0 %v3313_v44 }
 0x7ae   :  { %3109 = vmatpush.bf16.msra.mxu2 %v3086_v51  ;;  %3235 = vmatpush.bf16.msrb.mxu3 %v3212_v38  ;;  %v9343_v25 = vpop.permute.xlu2 %3154  ;;  %v8736_v51 = vmov 12   ;;  %v3143_v38 = vpop.permute.xlu1 %3142 }
 0x7af   :  { %3449 = vperm.xlu2 %8580, %v3395_v30  }
 0x7b1   :  { %3339 = vmatpush.bf16.msra.mxu0 %v3312_v9 }
 0x7b2   :  { %3110 = vmatpush.bf16.msra.mxu2 %v3085_v20  ;;  %3236 = vmatpush.bf16.msrb.mxu3 %v3211_v46 }
 0x7b3   :  { %8584 = vset.pattern.permute.xlu1 %v8733_v8 }
 0x7b4   :  { %7347 = vmatmul.msk.bf16.vlgmr.msra.gmra.mxu0 %vm667_vm10, %v8337_v36  ;;  %3953 = vperm.xlu1 %8584, %v9317_v43   ;;  %v3159_v36 = vpop.permute.xlu0 %3158 }
 0x7b5   :  { %8582 = vset.pattern.permute.xlu0 %v8733_v8 }
 0x7b6   :  { %3111 = vmatpush.bf16.msra.mxu2 %v3084_v24  ;;  %3237 = vmatpush.bf16.msrb.mxu3 %v3210_v12  ;;  %v3135_v21 = vpop.permute.xlu2 %3134  ;;  %v3139_v9 = vpop.permute.xlu1 %3138  ;;  %v8737_v24 = vmov 13  }
 0x7b7   :  { %3943 = vperm.xlu0 %8582, %v9348_v33   ;;  %8583 = vset.pattern.permute.xlu2 %v8733_v8 }
 0x7b8   :  { %3948 = vperm.xlu2 %8583, %v9366_v35  }
 0x7b9   :  { %7307 = vmatmul.msk.bf16.vlgmr.msra.gmra.mxu2 %vm667_vm10, %v8329_v14  ;;  %7327 = vmatmul.msk.bf16.vlgmr.msrb.gmra.mxu3 %vm667_vm10, %v8333_v1 }
 0x7bc   :  { %3963 = vperm.xlu1 %8584, %v9306_v42  }
 0x7bf   :  { %3968 = vperm.xlu0 %8582, %v9336_v4  }
 0x7c0   :  { %3958 = vperm.xlu2 %8583, %v9380_v45  }
 0x7c4   :  { %7348 = vmatmul.msk.bf16.gmra.mxu0 %vm667_vm10, %v8338_v31  ;;  %3978 = vperm.xlu1 %8584, %v9327_v23  }
 0x7c7   :  { %8585 = vset.pattern.permute.xlu0 %v8734_v60 }
 0x7c8   :  { %4556 = vperm.xlu0 %8585, %v9348_v33   ;;  %3973 = vperm.xlu2 %8583, %v9293_v22  }
 0x7c9   :  { %7308 = vmatmul.msk.bf16.gmra.mxu2 %vm667_vm10, %v8330_v16  ;;  %7328 = vmatmul.msk.bf16.gmra.mxu3 %vm667_vm10, %v8334_v47  ;;  %v3147_v16 = vpop.permute.xlu0 %3146 }
 0x7cc   :  { %8587 = vset.pattern.permute.xlu1 %v8734_v60 }
 0x7cd   :  { %4564 = vperm.xlu1 %8587, %v9317_v43  }
 0x7d0   :  { %4576 = vperm.xlu0 %8585, %v9336_v4   ;;  %8586 = vset.pattern.permute.xlu2 %v8734_v60 }
 0x7d1   :  { %4560 = vperm.xlu2 %8586, %v9366_v35  }
 0x7d4   :  { %7349 = vmatmul.msk.bf16.gmra.mxu0 %vm667_vm10, %v8339_v55 }
 0x7d5   :  { %4572 = vperm.xlu1 %8587, %v9306_v42  }
 0x7d8   :  { %8588 = vset.pattern.permute.xlu0 %v8735_v61 }
 0x7d9   :  { %7309 = vmatmul.msk.bf16.gmra.mxu2 %vm667_vm10, %v8331_v63  ;;  %7329 = vmatmul.msk.bf16.gmra.mxu3 %vm667_vm10, %v8335_v3 }
 0x7da   :  { %5162 = vperm.xlu0 %8588, %v9348_v33   ;;  %4568 = vperm.xlu2 %8586, %v9380_v45  }
 0x7dd   :  { %4584 = vperm.xlu1 %8587, %v9327_v23  }
 0x7e2   :  { %5182 = vperm.xlu0 %8588, %v9336_v4   ;;  %4580 = vperm.xlu2 %8586, %v9293_v22  }
 0x7e4   :  { %7350 = vmatmul.msk.bf16.gmra.mxu0 %vm667_vm10, %v8340_v58 }
 0x7e5   :  { %8590 = vset.pattern.permute.xlu1 %v8735_v61 }
 0x7e6   :  { %5170 = vperm.xlu1 %8590, %v9317_v43  }
 0x7e9   :  { %7310 = vmatmul.msk.bf16.gmra.mxu2 %vm667_vm10, %v8332_v13  ;;  %7330 = vmatmul.msk.bf16.gmra.mxu3 %vm667_vm10, %v8336_v39 }
 0x7ea   :  { %8591 = vset.pattern.permute.xlu0 %v8736_v51  ;;  %8589 = vset.pattern.permute.xlu2 %v8735_v61 }
 0x7eb   :  { %5768 = vperm.xlu0 %8591, %v9348_v33   ;;  %5166 = vperm.xlu2 %8589, %v9366_v35  }
 0x7ee   :  { %5178 = vperm.xlu1 %8590, %v9306_v42  }
 0x7f3   :  { %5788 = vperm.xlu0 %8591, %v9336_v4   ;;  %5174 = vperm.xlu2 %8589, %v9380_v45  }
 0x7f6   :  { %5190 = vperm.xlu1 %8590, %v9327_v23  }
 0x7fb   :  { %8594 = vset.pattern.permute.xlu0 %v8732_v11  ;;  %5186 = vperm.xlu2 %8589, %v9293_v22  }
 0x7fc   :  { %3409 = vperm.xlu0 %8594, %v9317_v43  }
 0x7fe   :  { %8593 = vset.pattern.permute.xlu1 %v8736_v51 }
 0x7ff   :  { %5776 = vperm.xlu1 %8593, %v9317_v43  }
 0x803   :  { %8592 = vset.pattern.permute.xlu2 %v8736_v51 }
 0x804   :  { %3404 = vperm.xlu0 %8594, %v9366_v35   ;;  %5772 = vperm.xlu2 %8592, %v9366_v35  }
 0x807   :  { %5784 = vperm.xlu1 %8593, %v9306_v42  }
 0x80c   :  { %5780 = vperm.xlu2 %8592, %v9380_v45  }
 0x80d   :  { %v9401_v46 = vpop.permute.xlu1 %3429 }
 0x80f   :  { %5796 = vperm.xlu1 %8593, %v9327_v23  }
 0x814   :  { %5792 = vperm.xlu2 %8592, %v9293_v22  }
 0x815   :  { %v9406_v1 = vpop.permute.xlu1 %3439 }
 0x817   :  { %8596 = vset.pattern.permute.xlu1 %v8737_v24 }
 0x818   :  { %6367 = vperm.xlu1 %8596, %v9348_v33  }
 0x81c   :  { %8595 = vset.pattern.permute.xlu2 %v8732_v11 }
 0x81d   :  { %3414 = vperm.xlu2 %8595, %v9380_v45  }
 0x820   :  { %8598 = vset.pattern.permute.xlu1 %v8732_v11  ;;  %v8344_v11 = vld [vmem:[%s9710_s4 + $0x18] sm:$0xff] }
 0x821   :  { %3399 = vperm.xlu1 %8598, %v9348_v33  }
 0x831   :  { %v3341_v18 = vpop.f32.mrf.mxu0 }
 0x839   :  { %v9356_v26 = vpop.f32.mrf.mxu0 }
 0x83c   :  { %v3113_v34 = vpop.f32.mrf.mxu2  ;;  %v3239_v52 = vpop.f32.mrf.mxu3 }
 0x83d   :  { %v3165_v59 = vadd.f32 %v3135_v21, %v3113_v34 }
 0x83f   :  { %v3259_v41 = vadd.f32 %v3239_v52, %v3165_v59 }
 0x841   :  { %v9361_v32 = vadd.f32 %v3341_v18, %v3259_v41  ;;  %v9375_v56 = vpop.f32.mrf.mxu0  ;;  %v9417_v18 = vpop.permute.xlu1 %3454 }
 0x844   :  { %v9369_v49 = vpop.f32.mrf.mxu2  ;;  %v9371_v28 = vpop.f32.mrf.mxu3 }
 0x849   :  { %v9387_v44 = vpop.f32.mrf.mxu0  ;;  %v9426_v41 = vpop.permute.xlu1 %3953 }
 0x84c   :  { %v3118_v15 = vpop.f32.mrf.mxu2  ;;  %v9383_v27 = vpop.f32.mrf.mxu3 }
 0x84d   :  { %v3167_v13 = vadd.f32 %v3143_v38, %v3118_v15  ;;  %v9433_v15 = vpop.permute.xlu2 %3424 }
 0x84f   :  { %v3261_v30 = vadd.f32 %v9383_v27, %v3167_v13 }
 0x851   :  { %v3351_v37 = vpop.f32.mrf.mxu0  ;;  %v3363_v34 = vadd.f32 %v9375_v56, %v3261_v30  ;;  %v8366_v30 = vld [vmem:[#allocation5 + $0x458] sm:$0xf0] }
 0x854   :  { %v3120_v40 = vpop.f32.mrf.mxu2  ;;  %v3246_v7 = vpop.f32.mrf.mxu3 }
 0x855   :  { %v3168_v42 = vadd.f32 %v3147_v16, %v3120_v40  ;;  %v9440_v56 = vpop.permute.xlu2 %3434 }
 0x857   :  { %v3262_v4 = vadd.f32 %v3246_v7, %v3168_v42  ;;  %v8343_v7 = vld [vmem:[%s9710_s4 + $0x10] sm:$0xff] }
 0x859   :  { %v3353_v5 = vpop.f32.mrf.mxu0  ;;  %v3364_v33 = vadd.f32 %v9387_v44, %v3262_v4  ;;  %v9452_v44 = vpop.permute.xlu0 %3419 }
 0x85b   :  { %v3370_v59 = vpack.c.bf16 %v3364_v33, %v3363_v34  ;;  %v7457_v33 = vld [vmem:[#allocation5 + $0x45c] sm:$0xf0]  ;;  %v8367_v34 = vld [vmem:[#allocation5 + $0x460] sm:$0xf0] }
 0x85c   :  { %v3123_v17 = vpop.f32.mrf.mxu2  ;;  %v3249_v6 = vpop.f32.mrf.mxu3 }
 0x85d   :  { %v3169_v55 = vadd.f32 %v3151_v48, %v3123_v17  ;;  %v9449_v48 = vpop.permute.xlu2 %3449 }
 0x85f   :  { %v3263_v39 = vadd.f32 %v3249_v6, %v3169_v55 }
 0x861   :  { %v3356_v12 = vpop.f32.mrf.mxu0  ;;  %v3365_v21 = vadd.f32 %v3351_v37, %v3263_v39  ;;  %v9463_v51 = vpop.permute.xlu0 %3444  ;;  %v7469_v39 = vld [vmem:[#allocation5 + $0x474] sm:$0xf0] }
 0x864   :  { %v3125_v62 = vpop.f32.mrf.mxu2  ;;  %v3251_v20 = vpop.f32.mrf.mxu3 }
 0x865   :  { %v3170_v31 = vadd.f32 %v9343_v25, %v3125_v62  ;;  %v9457_v40 = vpop.permute.xlu2 %3948  ;;  %v8345_v62 = vld [vmem:[%s9710_s4 + $0x20] sm:$0xff] }
 0x867   :  { %v3264_v2 = vadd.f32 %v3251_v20, %v3170_v31 }
 0x869   :  { %v3358_v8 = vpop.f32.mrf.mxu0  ;;  %v3366_v0 = vadd.f32 %v3353_v5, %v3264_v2  ;;  %v9470_v37 = vpop.permute.xlu0 %3943  ;;  %v7467_v2 = vld [vmem:[#allocation5 + $0x468] sm:$0xf] }
 0x86b   :  { %v3371_v61 = vpack.c.bf16 %v3366_v0, %v3365_v21  ;;  %v8365_v21 = vld [vmem:[#allocation5 + $0x454] sm:$0xf] }
 0x86c   :  { %v3128_v53 = vpop.f32.mrf.mxu2  ;;  %v3254_v57 = vpop.f32.mrf.mxu3 }
 0x86d   :  { %v3171_v14 = vadd.f32 %v3159_v36, %v3128_v53  ;;  %v9468_v22 = vpop.permute.xlu2 %3958 }
 0x86f   :  { %v3265_v10 = vadd.f32 %v3254_v57, %v3171_v14 }
 0x871   :  { %v3367_v23 = vadd.f32 %v3356_v12, %v3265_v10  ;;  %v9480_v6 = vpop.permute.xlu0 %3968  ;;  %v8346_v12 = vld [vmem:[%s9710_s4 + $0x28] sm:$0xff] }
 0x874   :  { %v3130_v47 = vpop.f32.mrf.mxu2  ;;  %v3256_v3 = vpop.f32.mrf.mxu3 }
 0x875   :  { %v3172_v63 = vadd.f32 %v9331_v29, %v3130_v47  ;;  %v3166_v29 = vadd.f32 %v3139_v9, %v9369_v49  ;;  %v9477_v45 = vpop.permute.xlu2 %3973 }
 0x877   :  { %v3266_v58 = vadd.f32 %v3256_v3, %v3172_v63  ;;  %v3260_v43 = vadd.f32 %v9371_v28, %v3166_v29  ;;  %v8341_v28 = vld [vmem:[%s9710_s4] sm:$0xff] }
 0x879   :  { %v3368_v60 = vadd.f32 %v3358_v8, %v3266_v58  ;;  %v3362_v52 = vadd.f32 %v9356_v26, %v3260_v43  ;;  %v9438_v26 = vpop.permute.xlu1 %3963  ;;  %v9489_v20 = vpop.permute.xlu0 %4556  ;;  %v8369_v58 = vld [vmem:[#allocation5 + $0x470] sm:$0xf0]  ;;  %v8368_v8 = vld [vmem:[#allocation5 + $0x46c] sm:$0xf] }
 0x87a   :  { %v7468_v13 = vor.u32 %v8369_v58, %v7467_v2  ;;  %v7472_v29 = vor.u32 %v8368_v8, %v7469_v39  ;;  %v7451_v2 = vld [vmem:[#allocation5 + $0x440] sm:$0xf]  ;;  %v8364_v58 = vld [vmem:[#allocation5 + $0x448] sm:$0xf0] }
 0x87b   :  { %v3372_v25 = vpack.c.bf16 %v3368_v60, %v3367_v23  ;;  %v3369_v49 = vpack.c.bf16 %v3362_v52, %v9361_v32  ;;  %v8342_v32 = vld [vmem:[%s9710_s4 + $0x8] sm:$0xff]  ;;  %v7475_v23 = vld [vmem:[#allocation5 + $0x470] sm:$0xf]  ;;  %v8370_v60 = vld [vmem:[#allocation5 + $0x478] sm:$0xf0] }
 0x87c   :  { %v7476_v4 = vor.u32 %v8370_v60, %v7475_v23  ;;  %3736 = vmatpush.bf16.msrb.mxu2 %v7468_v13  ;;  %3765 = vmatpush.bf16.msra.mxu3 %v7472_v29  ;;  %v7452_v13 = vor.u32 %v8364_v58, %v7451_v2  ;;  %v7431_v23 = vld [vmem:[#allocation5 + $0x420] sm:$0xf]  ;;  %v8360_v60 = vld [vmem:[#allocation5 + $0x428] sm:$0xf0]  ;;  %v8359_v29 = vld [vmem:[#allocation5 + $0x424] sm:$0xf] }
 0x87d   :  { %3509 = vmatpush.bf16.msrb.mxu1 %v3372_v25  ;;  %v9484_v5 = vpop.permute.xlu2 %4560  ;;  %v7455_v25 = vld [vmem:[#allocation5 + $0x450] sm:$0xf] }
 0x87e   :  { %3794 = vmatpush.bf16.msrb.mxu0 %v7476_v4  ;;  %v7456_v43 = vor.u32 %v8366_v30, %v7455_v25  ;;  %v7432_v4 = vor.u32 %v8360_v60, %v7431_v23  ;;  %v7433_v25 = vld [vmem:[#allocation5 + $0x42c] sm:$0xf0]  ;;  %v7439_v30 = vld [vmem:[#allocation5 + $0x428] sm:$0xf]  ;;  %v8354_v23 = vld [vmem:[#allocation5 + $0x3f8] sm:$0xf0] }
 0x87f   :  { %v8353_v60 = vld [vmem:[#allocation5 + $0x3f4] sm:$0xf] }
 0x880   :  { %3737 = vmatpush.bf16.msrb.mxu2 %v7456_v43  ;;  %v7436_v43 = vor.u32 %v8359_v29, %v7433_v25  ;;  %v7409_v25 = vld [vmem:[#allocation5 + $0x3fc] sm:$0xf0] }
 0x881   :  { %3510 = vmatpush.bf16.msrb.mxu1 %v3371_v61  ;;  %v9446_v27 = vpop.permute.xlu1 %3978  ;;  %v9496_v57 = vpop.permute.xlu0 %4576  ;;  %v7463_v61 = vld [vmem:[#allocation5 + $0x458] sm:$0xf] }
 0x885   :  { %3511 = vmatpush.bf16.msrb.mxu1 %v3370_v59  ;;  %v9494_v53 = vpop.permute.xlu2 %4568  ;;  %v7460_v59 = vor.u32 %v8365_v21, %v7457_v33  ;;  %v8361_v21 = vld [vmem:[#allocation5 + $0x430] sm:$0xf0] }
 0x886   :  { %v7440_v33 = vor.u32 %v8361_v21, %v7439_v30  ;;  %v7415_v30 = vld [vmem:[#allocation5 + $0x3f8] sm:$0xf]  ;;  %v8355_v21 = vld [vmem:[#allocation5 + $0x400] sm:$0xf0] }
 0x887   :  { %3766 = vmatpush.bf16.msra.mxu3 %v7460_v59  ;;  %v8357_v59 = vld [vmem:[#allocation5 + $0x410] sm:$0xf0] }
 0x889   :  { %3512 = vmatpush.bf16.msrb.mxu1 %v3369_v49  ;;  %v9454_v35 = vpop.permute.xlu1 %4564  ;;  %v9506_v31 = vpop.permute.xlu0 %5162  ;;  %v7464_v49 = vor.u32 %v8367_v34, %v7463_v61  ;;  %v7419_v34 = vld [vmem:[#allocation5 + $0x408] sm:$0xf] }
 0x88b   :  { %3795 = vmatpush.bf16.msrb.mxu0 %v7464_v49  ;;  %v8356_v49 = vld [vmem:[#allocation5 + $0x40c] sm:$0xf] }
 0x88c   :  { %7375 = vmatmul.msk.bf16.vlgmr.msrb.gmra.mxu1 %vm667_vm10, %v8341_v28 }
 0x88d   :  { %v9503_v14 = vpop.permute.xlu2 %4580 }
 0x88f   :  { %3796 = vmatpush.bf16.msrb.mxu0 %v7452_v13  ;;  %v7407_v13 = vld [vmem:[#allocation5 + $0x3f0] sm:$0xf] }
 0x891   :  { %v9466_v38 = vpop.permute.xlu1 %4572  ;;  %v9512_v55 = vpop.permute.xlu0 %5182 }
 0x893   :  { %3797 = vmatpush.bf16.msrb.mxu0 %v7440_v33  ;;  %v7412_v33 = vor.u32 %v8353_v60, %v7409_v25  ;;  %v8348_v60 = vld [vmem:[#allocation5 + $0x3c8] sm:$0xf0] }
 0x895   :  { %v9510_v47 = vpop.permute.xlu2 %5166 }
 0x899   :  { %v9472_v17 = vpop.permute.xlu1 %4584  ;;  %v9518_v3 = vpop.permute.xlu0 %5768 }
 0x89a   :  { %9720 = vst [vmem:[#allocation16_spill] sm:$0xff] %v9518_v3 }
 0x89c   :  { %7376 = vmatmul.msk.bf16.gmra.mxu1 %vm667_vm10, %v8342_v32  ;;  %v7443_v32 = vld [vmem:[#allocation5 + $0x438] sm:$0xf] }
 0x89d   :  { %v9516_v63 = vpop.permute.xlu2 %5174 }
 0x8a1   :  { %v9482_v9 = vpop.permute.xlu1 %5170  ;;  %v9524_v52 = vpop.permute.xlu0 %5788 }
 0x8a2   :  { %9722 = vst [vmem:[#allocation18_spill] sm:$0xff] %v9524_v52 }
 0x8a5   :  { %v9522_v0 = vpop.permute.xlu2 %5186 }
 0x8a9   :  { %v9491_v36 = vpop.permute.xlu1 %5178  ;;  %v9530_v61 = vpop.permute.xlu0 %3409 }
 0x8ac   :  { %7377 = vmatmul.msk.bf16.gmra.mxu1 %vm667_vm10, %v8343_v7  ;;  %v8363_v7 = vld [vmem:[#allocation5 + $0x440] sm:$0xf0] }
 0x8ad   :  { %v9528_v39 = vpop.permute.xlu2 %5772 }
 0x8ae   :  { %9724 = vst [vmem:[#allocation20_spill] sm:$0xff] %v9528_v39 }
 0x8b1   :  { %v9498_v24 = vpop.permute.xlu1 %5190 }
 0x8b9   :  { %v9508_v16 = vpop.permute.xlu1 %5776 }
 0x8ba   :  { %9718 = vst [vmem:[#allocation14_spill] sm:$0xff] %v9508_v16 }
 0x8bc   :  { %7378 = vmatmul.msk.bf16.gmra.mxu1 %vm667_vm10, %v8344_v11  ;;  %v8362_v11 = vld [vmem:[#allocation5 + $0x43c] sm:$0xf] }
 0x8c1   :  { %v9514_v10 = vpop.permute.xlu1 %5784 }
 0x8c2   :  { %9719 = vst [vmem:[#allocation15_spill] sm:$0xff] %v9514_v10 }
 0x8c9   :  { %v9520_v42 = vpop.permute.xlu1 %5796 }
 0x8ca   :  { %9721 = vst [vmem:[#allocation17_spill] sm:$0xff] %v9520_v42 }
 0x8cc   :  { %7379 = vmatmul.msk.bf16.gmra.mxu1 %vm667_vm10, %v8345_v62  ;;  %v7444_v62 = vor.u32 %v8363_v7, %v7443_v32  ;;  %v7420_v32 = vor.u32 %v8357_v59, %v7419_v34  ;;  %v7421_v7 = vld [vmem:[#allocation5 + $0x414] sm:$0xf0]  ;;  %v7416_v34 = vor.u32 %v8355_v21, %v7415_v30  ;;  %v7385_v30 = vld [vmem:[#allocation5 + $0x3cc] sm:$0xf0]  ;;  %v7391_v21 = vld [vmem:[#allocation5 + $0x3c8] sm:$0xf] }
 0x8cd   :  { %v7424_v2 = vor.u32 %v8356_v49, %v7421_v7  ;;  %v7395_v59 = vld [vmem:[#allocation5 + $0x3d8] sm:$0xf]  ;;  %v8351_v49 = vld [vmem:[#allocation5 + $0x3e0] sm:$0xf0] }
 0x8ce   :  { %3738 = vmatpush.bf16.msrb.mxu2 %v7444_v62  ;;  %v8358_v62 = vld [vmem:[#allocation5 + $0x418] sm:$0xf0]  ;;  %v7396_v7 = vor.u32 %v8351_v49, %v7395_v59 }
 0x8d1   :  { %v9526_v28 = vpop.permute.xlu1 %6367 }
 0x8d2   :  { %9723 = vst [vmem:[#allocation19_spill] sm:$0xff] %v9526_v28  ;;  %3739 = vmatpush.bf16.msrb.mxu2 %v7432_v4  ;;  %v7408_v4 = vor.u32 %v8354_v23, %v7407_v13  ;;  %v7383_v23 = vld [vmem:[#allocation5 + $0x3c0] sm:$0xf] }
 0x8d3   :  { %v7384_v25 = vor.u32 %v8348_v60, %v7383_v23 }
 0x8d6   :  { %3740 = vmatpush.bf16.msrb.mxu2 %v7420_v32  ;;  %v8350_v32 = vld [vmem:[#allocation5 + $0x3dc] sm:$0xf] }
 0x8da   :  { %3741 = vmatpush.bf16.msrb.mxu2 %v7408_v4 }
 0x8dc   :  { %7380 = vmatmul.msk.bf16.gmra.mxu1 %vm667_vm10, %v8346_v12  ;;  %v7445_v12 = vld [vmem:[#allocation5 + $0x444] sm:$0xf0] }
 0x8dd   :  { %v7448_v8 = vor.u32 %v8362_v11, %v7445_v12  ;;  %v7427_v11 = vld [vmem:[#allocation5 + $0x410] sm:$0xf]  ;;  %v3400_v12 = vpop.permute.xlu1 %3399 }
 0x8de   :  { %v7428_v58 = vor.u32 %v8358_v62, %v7427_v11  ;;  %v7397_v11 = vld [vmem:[#allocation5 + $0x3e4] sm:$0xf0]  ;;  %v7403_v62 = vld [vmem:[#allocation5 + $0x3e0] sm:$0xf]  ;;  %3742 = vmatpush.bf16.msrb.mxu2 %v7396_v7 }
 0x8df   :  { %3767 = vmatpush.bf16.msra.mxu3 %v7448_v8 }
 0x8e0   :  { %3798 = vmatpush.bf16.msrb.mxu0 %v7428_v58  ;;  %v7400_v58 = vor.u32 %v8350_v32, %v7397_v11 }
 0x8e2   :  { %3743 = vmatpush.bf16.msrb.mxu2 %v7384_v25 }
 0x8e3   :  { %3768 = vmatpush.bf16.msra.mxu3 %v7436_v43  ;;  %v9532_v43 = vpop.permute.xlu2 %5780 }
 0x8e4   :  { %9725 = vst [vmem:[#allocation21_spill] sm:$0xff] %v9532_v43  ;;  %3799 = vmatpush.bf16.msrb.mxu0 %v7416_v34 }
 0x8e7   :  { %3769 = vmatpush.bf16.msra.mxu3 %v7424_v2  ;;  %v3405_v2 = vpop.permute.xlu0 %3404 }
 0x8eb   :  { %3770 = vmatpush.bf16.msra.mxu3 %v7412_v33  ;;  %v8349_v33 = vld [vmem:[#allocation5 + $0x3d0] sm:$0xf0]  ;;  %v9542_v49 = vpop.permute.xlu2 %5792 }
 0x8ec   :  { %v7392_v59 = vor.u32 %v8349_v33, %v7391_v21  ;;  %9726 = vst [vmem:[#allocation22_spill] sm:$0xff] %v9542_v49 }
 0x8ef   :  { %3771 = vmatpush.bf16.msra.mxu3 %v7400_v58 }
 0x909   :  { %v3514_v8 = vpop.f32.mrf.mxu1 }
 0x90a   :  { %v3515_v29 = vadd.f32 %v3514_v8, %v3400_v12  ;;  %v8352_v12 = vld [vmem:[#allocation5 + $0x3e8] sm:$0xf0] }
 0x90b   :  { %v7404_v8 = vor.u32 %v8352_v12, %v7403_v62  ;;  %v3415_v12 = vpop.permute.xlu2 %3414 }
 0x90c   :  { %3563 = vst.msk [vmem:[%s9711_s5] sm:$0xff] %vm3562_vm11, %v3515_v29  ;;  %v8347_v29 = vld [vmem:[#allocation5 + $0x3c4] sm:$0xf] }
 0x90d   :  { %3800 = vmatpush.bf16.msrb.mxu0 %v7404_v8  ;;  %v7388_v34 = vor.u32 %v8347_v29, %v7385_v30 }
 0x90f   :  { %3772 = vmatpush.bf16.msra.mxu3 %v7388_v34 }
 0x911   :  { %v3516_v13 = vpop.f32.mrf.mxu1  ;;  %3801 = vmatpush.bf16.msrb.mxu0 %v7392_v59 }
 0x912   :  { %v3517_v4 = vadd.f32 %v3516_v13, %v3405_v2 }
 0x914   :  { %3564 = vst.msk [vmem:[%s9711_s5 + $0x8] sm:$0xff] %vm3562_vm11, %v3517_v4 }
 0x919   :  { %v3519_v32 = vpop.f32.mrf.mxu1 }
 0x91a   :  { %v3520_v7 = vadd.f32 %v3519_v32, %v9530_v61 }
 0x91c   :  { %v3546_v11 = vand.u32 2147483647, %v3520_v7  ;;  %v3544_v61 = vmax.f32 %v3520_v7, 0.0 }
 0x91e   :  { %v3548_v62 = vsub.f32 0.0, %v3546_v11 }
 0x920   :  { %v3550_v2 = vmul.f32 1.442695, %v3548_v62 }
 0x921   :  { %v3521_v58 = vpop.f32.mrf.mxu1 }
 0x922   :  { %8616 = vpow2.f32 %v3550_v2  ;;  %v3522_v8 = vadd.f32 %v3521_v58, %v3415_v12 }
 0x924   :  { %v3547_v13 = vand.u32 2147483647, %v3522_v8  ;;  %v3545_v7 = vmax.f32 %v3522_v8, 0.0 }
 0x926   :  { %v3549_v23 = vsub.f32 0.0, %v3547_v13 }
 0x928   :  { %v8617_v60 = vpop.eup %8616  ;;  %v3552_v29 = vmul.f32 1.442695, %v3549_v23 }
 0x929   :  { %v3554_v4 = vadd.f32 1.0, %v8617_v60  ;;  %v3524_v25 = vpop.f32.mrf.mxu1 }
 0x92a   :  { %8618 = vpow2.f32 %v3552_v29  ;;  %v3525_v32 = vadd.f32 %v3524_v25, %v9452_v44 }
 0x92b   :  { %8620 = vlog2.f32 %v3554_v4 }
 0x930   :  { %v8619_v30 = vpop.eup %8618 }
 0x931   :  { %v8621_v21 = vpop.eup %8620  ;;  %v3555_v33 = vadd.f32 1.0, %v8619_v30  ;;  %v3526_v34 = vpop.f32.mrf.mxu1 }
 0x932   :  { %v3557_v59 = vmul.f32 0.6931472, %v8621_v21  ;;  %v3527_v11 = vadd.f32 %v3526_v34, %v9433_v15 }
 0x933   :  { %8622 = vlog2.f32 %v3555_v33 }
 0x934   :  { %v3560_v62 = vadd.f32 %v3557_v59, %v3544_v61  ;;  %v3571_v12 = vpack.c.bf16 %v3527_v11, %v3525_v32 }
 0x936   :  { %v3565_v2 = vmax.f32 %v3560_v62, 1e-05  ;;  %3744 = vmatmul.bf16.vlgmr.msrb.gmra.mxu2 %v3571_v12  ;;  %3773 = vmatmul.bf16.vlgmr.msra.gmra.mxu3 %v3571_v12 }
 0x937   :  { %3802 = vmatmul.bf16.vlgmr.msrb.gmra.mxu0 %v3571_v12 }
 0x938   :  { %v3567_v58 = vmin.f32 %v3565_v2, 5.0 }
 0x939   :  { %v8623_v13 = vpop.eup %8622  ;;  %v3529_v23 = vpop.f32.mrf.mxu1 }
 0x93a   :  { %3569 = vst.msk [vmem:[%s9711_s5 + $0x10] sm:$0xff] %vm3562_vm11, %v3567_v58  ;;  %v3559_v60 = vmul.f32 0.6931472, %v8623_v13  ;;  %v3530_v25 = vadd.f32 %v3529_v23, %v9401_v46 }
 0x93c   :  { %v3561_v44 = vadd.f32 %v3559_v60, %v3545_v7 }
 0x93e   :  { %v3566_v29 = vmax.f32 %v3561_v44, 1e-05 }
 0x940   :  { %v3568_v15 = vmin.f32 %v3566_v29, 5.0 }
 0x941   :  { %v3531_v4 = vpop.f32.mrf.mxu1 }
 0x942   :  { %3570 = vst.msk [vmem:[%s9711_s5 + $0x18] sm:$0xff] %vm3562_vm11, %v3568_v15  ;;  %v3532_v30 = vadd.f32 %v3531_v4, %v9440_v56 }
 0x944   :  { %v3572_v21 = vpack.c.bf16 %v3532_v30, %v3530_v25 }
 0x946   :  { %3749 = vmatmul.bf16.gmra.mxu2 %v3572_v21  ;;  %3778 = vmatmul.bf16.gmra.mxu3 %v3572_v21 }
 0x947   :  { %3807 = vmatmul.bf16.gmra.mxu0 %v3572_v21 }
 0x949   :  { %v3534_v33 = vpop.f32.mrf.mxu1 }
 0x94a   :  { %v3535_v34 = vadd.f32 %v3534_v33, %v9406_v1 }
 0x951   :  { %v3536_v8 = vpop.f32.mrf.mxu1 }
 0x952   :  { %v3537_v61 = vadd.f32 %v3536_v8, %v9463_v51 }
 0x954   :  { %v3573_v59 = vpack.c.bf16 %v3537_v61, %v3535_v34 }
 0x956   :  { %3754 = vmatmul.bf16.gmra.mxu2 %v3573_v59  ;;  %3783 = vmatmul.bf16.gmra.mxu3 %v3573_v59 }
 0x957   :  { %3812 = vmatmul.bf16.gmra.mxu0 %v3573_v59 }
 0x959   :  { %v3539_v32 = vpop.f32.mrf.mxu1 }
 0x95a   :  { %v3540_v46 = vadd.f32 %v3539_v32, %v9449_v48 }
 0x961   :  { %v3541_v11 = vpop.f32.mrf.mxu1 }
 0x962   :  { %v3542_v56 = vadd.f32 %v3541_v11, %v9417_v18 }
 0x964   :  { %v3574_v62 = vpack.c.bf16 %v3542_v56, %v3540_v46 }
 0x966   :  { %3759 = vmatmul.bf16.gmra.mxu2 %v3574_v62  ;;  %3788 = vmatmul.bf16.gmra.mxu3 %v3574_v62 }
 0x967   :  { %3817 = vmatmul.bf16.gmra.mxu0 %v3574_v62 }
 0x9b4   :  { %v9561_v12 = vpop.f32.mrf.mxu0 }
 0x9b9   :  { %v3745_v2 = vpop.f32.mrf.mxu2  ;;  %v3774_v1 = vpop.f32.mrf.mxu3 }
 0x9ba   :  { %v9563_v58 = vpack.c.bf16 %v3774_v1, %v3745_v2 }
 0x9bc   :  { %v3805_v51 = vpop.f32.mrf.mxu0 }
 0x9c1   :  { %v3747_v13 = vpop.f32.mrf.mxu2  ;;  %v3776_v23 = vpop.f32.mrf.mxu3 }
 0x9c4   :  { %v3808_v7 = vpop.f32.mrf.mxu0 }
 0x9c5   :  { %v3828_v10 = vpack.c.bf16 %v3808_v7, %v3808_v7 }
 0x9c9   :  { %v3750_v60 = vpop.f32.mrf.mxu2  ;;  %v3779_v44 = vpop.f32.mrf.mxu3 }
 0x9cc   :  { %v3810_v29 = vpop.f32.mrf.mxu0 }
 0x9cd   :  { %v3830_v19 = vpack.c.bf16 %v3810_v29, %v3810_v29 }
 0x9d1   :  { %v3752_v48 = vpop.f32.mrf.mxu2  ;;  %v3781_v15 = vpop.f32.mrf.mxu3 }
 0x9d4   :  { %v3813_v18 = vpop.f32.mrf.mxu0 }
 0x9d5   :  { %v3832_v56 = vpack.c.bf16 %v3813_v18, %v3813_v18  ;;  %v4123_v18 = vunpack.c.l.b16 %v3830_v19 }
 0x9d7   :  { %v4124_v43 = vunpack.c.l.b16 %v3832_v56  ;;  %v8371_v56 = vld [vmem:[#allocation2 + $0x1e0] sm:$0xff] }
 0x9d9   :  { %v3755_v4 = vpop.f32.mrf.mxu2  ;;  %v3784_v25 = vpop.f32.mrf.mxu3 }
 0x9da   :  { %v3831_v16 = vpack.c.bf16 %v3784_v25, %v3755_v4 }
 0x9dc   :  { %v3815_v30 = vpop.f32.mrf.mxu0  ;;  %v3888_v7 = vunpack.c.l.b16 %v3831_v16 }
 0x9dd   :  { %v3834_v11 = vpack.c.bf16 %v3815_v30, %v3815_v30 }
 0x9df   :  { %v4125_v54 = vunpack.c.l.b16 %v3834_v11 }
 0x9e1   :  { %v3757_v21 = vpop.f32.mrf.mxu2  ;;  %v3786_v33 = vpop.f32.mrf.mxu3 }
 0x9e2   :  { %v3833_v49 = vpack.c.bf16 %v3786_v33, %v3757_v21  ;;  %v3824_v21 = vpack.c.bf16 %v9561_v12, %v9561_v12 }
 0x9e4   :  { %v3818_v8 = vpop.f32.mrf.mxu0  ;;  %v4023_v29 = vunpack.c.h.b16 %v3833_v49 }
 0x9e5   :  { %v3836_v59 = vpack.c.bf16 %v3818_v8, %v3818_v8 }
 0x9e7   :  { %v4126_v62 = vunpack.c.l.b16 %v3836_v59  ;;  %v3829_v59 = vpack.c.bf16 %v3781_v15, %v3752_v48  ;;  %v8379_v15 = vld [vmem:[#allocation2 + $0x220] sm:$0xff] }
 0x9e9   :  { %v3760_v34 = vpop.f32.mrf.mxu2  ;;  %v3789_v61 = vpop.f32.mrf.mxu3  ;;  %v3887_v19 = vunpack.c.l.b16 %v3829_v59  ;;  %v4021_v48 = vunpack.c.h.b16 %v3829_v59  ;;  %v7625_v59 = vld [vmem:[#allocation5 + $0x534] sm:$0xf0] }
 0x9ea   :  { %v3835_v1 = vpack.c.bf16 %v3789_v61, %v3760_v34  ;;  %v3889_v34 = vunpack.c.l.b16 %v3833_v49  ;;  %v4120_v49 = vunpack.c.l.b16 %v3824_v21  ;;  %v8402_v21 = vld [vmem:[#allocation5 + $0x518] sm:$0xf0] }
 0x9ec   :  { %v3820_v32 = vpop.f32.mrf.mxu0  ;;  %v3890_v39 = vunpack.c.l.b16 %v3835_v1  ;;  %v4024_v8 = vunpack.c.h.b16 %v3835_v1  ;;  %v8372_v1 = vld [vmem:[#allocation2 + $0x1e8] sm:$0xff] }
 0x9ed   :  { %v3838_v46 = vpack.c.bf16 %v3820_v32, %v3820_v32  ;;  %v3826_v32 = vpack.c.bf16 %v3805_v51, %v3805_v51 }
 0x9ef   :  { %v4127_v2 = vunpack.c.l.b16 %v3838_v46  ;;  %v4130_v46 = vpack.c.b16 %v4125_v54, %v4124_v43  ;;  %v4121_v4 = vunpack.c.l.b16 %v3826_v32  ;;  %v3894_v54 = vpack.c.b16 %v3889_v34, %v3888_v7  ;;  %v8404_v32 = vld [vmem:[#allocation5 + $0x52c] sm:$0xf]  ;;  %v8406_v34 = vld [vmem:[#allocation5 + $0x538] sm:$0xf0]  ;;  %v7613_v7 = vld [vmem:[#allocation5 + $0x51c] sm:$0xf0] }
 0x9f1   :  { %v4131_v50 = vpack.c.b16 %v4127_v2, %v4126_v62  ;;  %v3762_v28 = vpop.f32.mrf.mxu2  ;;  %v3791_v42 = vpop.f32.mrf.mxu3  ;;  %v8375_v62 = vld [vmem:[#allocation2 + $0x200] sm:$0xff]  ;;  %v8380_v2 = vld [vmem:[#allocation2 + $0x228] sm:$0xff] }
 0x9f2   :  { %v3837_v52 = vpack.c.bf16 %v3791_v42, %v3762_v28  ;;  %v4122_v42 = vunpack.c.l.b16 %v3828_v10  ;;  %v3827_v28 = vpack.c.bf16 %v3779_v44, %v3750_v60  ;;  %v4128_v10 = vpack.c.b16 %v4121_v4, %v4120_v49  ;;  %v8403_v4 = vld [vmem:[#allocation5 + $0x520] sm:$0xf0]  ;;  %v7607_v49 = vld [vmem:[#allocation5 + $0x500] sm:$0xf] }
 0x9f3   :  { %4152 = vmatpush.bf16.msrb.mxu3 %v4131_v50  ;;  %v4022_v50 = vunpack.c.h.b16 %v3831_v16 }
 0x9f4   :  { %v3891_v3 = vunpack.c.l.b16 %v3837_v52  ;;  %v4025_v30 = vunpack.c.h.b16 %v3837_v52  ;;  %v3825_v52 = vpack.c.bf16 %v3776_v23, %v3747_v13  ;;  %v4129_v51 = vpack.c.b16 %v4123_v18, %v4122_v42  ;;  %v8401_v42 = vld [vmem:[#allocation5 + $0x514] sm:$0xf] }
 0x9f5   :  { %v4028_v43 = vpack.c.b16 %v4023_v29, %v4022_v50  ;;  %v3884_v13 = vunpack.c.l.b16 %v9563_v58  ;;  %v4018_v23 = vunpack.c.h.b16 %v9563_v58  ;;  %v7623_v58 = vld [vmem:[#allocation5 + $0x528] sm:$0xf]  ;;  %v7628_v29 = vor.u32 %v8404_v32, %v7625_v59  ;;  %v7619_v50 = vld [vmem:[#allocation5 + $0x518] sm:$0xf]  ;;  %v8392_v59 = vld [vmem:[#allocation5 + $0x4cc] sm:$0xf] }
 0x9f6   :  { %v3895_v61 = vpack.c.b16 %v3891_v3, %v3890_v39  ;;  %v4029_v11 = vpack.c.b16 %v4025_v30, %v4024_v8  ;;  %v3886_v3 = vunpack.c.l.b16 %v3827_v28  ;;  %v4020_v39 = vunpack.c.h.b16 %v3827_v28  ;;  %v8376_v8 = vld [vmem:[#allocation2 + $0x208] sm:$0xff]  ;;  %v8405_v30 = vld [vmem:[#allocation5 + $0x530] sm:$0xf0] }
 0x9f7   :  { %4153 = vmatpush.bf16.msrb.mxu3 %v4130_v46  ;;  %v3885_v12 = vunpack.c.l.b16 %v3825_v52  ;;  %v4019_v60 = vunpack.c.h.b16 %v3825_v52  ;;  %v7624_v18 = vor.u32 %v8405_v30, %v7623_v58  ;;  %v7631_v46 = vld [vmem:[#allocation5 + $0x530] sm:$0xf]  ;;  %v7616_v52 = vor.u32 %v8401_v42, %v7613_v7  ;;  %v7575_v32 = vld [vmem:[#allocation5 + $0x4c8] sm:$0xf]  ;;  %v8389_v7 = vld [vmem:[#allocation5 + $0x4b4] sm:$0xf] }
 0x9f8   :  { %3916 = vmatpush.bf16.msra.mxu2 %v3895_v61  ;;  %4050 = vmatpush.bf16.msra.mxu1 %v4029_v11  ;;  %v3893_v44 = vpack.c.b16 %v3887_v19, %v3886_v3  ;;  %v4027_v16 = vpack.c.b16 %v4021_v48, %v4020_v39  ;;  %v7632_v61 = vor.u32 %v8406_v34, %v7631_v46  ;;  %v7611_v11 = vld [vmem:[#allocation5 + $0x510] sm:$0xf]  ;;  %v7599_v19 = vld [vmem:[#allocation5 + $0x4f8] sm:$0xf]  ;;  %v8399_v48 = vld [vmem:[#allocation5 + $0x500] sm:$0xf0] }
 0x9f9   :  { %v3892_v25 = vpack.c.b16 %v3885_v12, %v3884_v13  ;;  %v4026_v33 = vpack.c.b16 %v4019_v60, %v4018_v23  ;;  %4358 = vmatpush.bf16.msra.mxu0 %v7624_v18  ;;  %v7612_v28 = vor.u32 %v8402_v21, %v7611_v11  ;;  %v8400_v3 = vld [vmem:[#allocation5 + $0x508] sm:$0xf0]  ;;  %v8381_v39 = vld [vmem:[#allocation2 + $0x230] sm:$0xff]  ;;  %v8374_v13 = vld [vmem:[#allocation2 + $0x1f8] sm:$0xff] }
 0x9fa   :  { %v7608_v60 = vor.u32 %v8400_v3, %v7607_v49  ;;  %v8378_v23 = vld [vmem:[#allocation2 + $0x218] sm:$0xff]  ;;  %v8393_v18 = vld [vmem:[#allocation5 + $0x4d0] sm:$0xf0]  ;;  %v7563_v42 = vld [vmem:[#allocation5 + $0x4b0] sm:$0xf] }
 0x9fb   :  { %4154 = vmatpush.bf16.msrb.mxu3 %v4129_v51  ;;  %v7620_v51 = vor.u32 %v8403_v4, %v7619_v50  ;;  %v7576_v46 = vor.u32 %v8393_v18, %v7575_v32  ;;  %v7577_v34 = vld [vmem:[#allocation5 + $0x4d4] sm:$0xf0]  ;;  %v7565_v4 = vld [vmem:[#allocation5 + $0x4bc] sm:$0xf0]  ;;  %v8386_v49 = vld [vmem:[#allocation5 + $0x49c] sm:$0xf] }
 0x9fc   :  { %3917 = vmatpush.bf16.msra.mxu2 %v3894_v54  ;;  %4051 = vmatpush.bf16.msra.mxu1 %v4028_v43  ;;  %v8398_v54 = vld [vmem:[#allocation5 + $0x4fc] sm:$0xf]  ;;  %v7601_v43 = vld [vmem:[#allocation5 + $0x504] sm:$0xf0]  ;;  %v7580_v11 = vor.u32 %v8392_v59, %v7577_v34 }
 0x9fd   :  { %4359 = vmatpush.bf16.msra.mxu0 %v7612_v28  ;;  %v7604_v12 = vor.u32 %v8398_v54, %v7601_v43  ;;  %v8390_v28 = vld [vmem:[#allocation5 + $0x4b8] sm:$0xf0]  ;;  %v7551_v54 = vld [vmem:[#allocation5 + $0x498] sm:$0xf]  ;;  %v8387_v43 = vld [vmem:[#allocation5 + $0x4a0] sm:$0xf0] }
 0x9fe   :  { %v7564_v50 = vor.u32 %v8390_v28, %v7563_v42  ;;  %v7552_v3 = vor.u32 %v8387_v43, %v7551_v54 }
 0x9ff   :  { %4155 = vmatpush.bf16.msrb.mxu3 %v4128_v10  ;;  %v7600_v10 = vor.u32 %v8399_v48, %v7599_v19  ;;  %v7568_v19 = vor.u32 %v8389_v7, %v7565_v4 }
 0xa00   :  { %3918 = vmatpush.bf16.msra.mxu2 %v3893_v44  ;;  %4052 = vmatpush.bf16.msra.mxu1 %v4027_v16  ;;  %v8373_v44 = vld [vmem:[#allocation2 + $0x1f0] sm:$0xff] }
 0xa01   :  { %4360 = vmatpush.bf16.msra.mxu0 %v7600_v10  ;;  %v8377_v16 = vld [vmem:[#allocation2 + $0x210] sm:$0xff]  ;;  %v7559_v10 = vld [vmem:[#allocation5 + $0x4a0] sm:$0xf] }
 0xa02   :  { %7533 = vmatmul.msk.bf16.vlgmr.msrb.gmra.mxu3 %vm667_vm10, %v8379_v15  ;;  %v8382_v15 = vld [vmem:[#allocation2 + $0x238] sm:$0xff] }
 0xa04   :  { %3919 = vmatpush.bf16.msra.mxu2 %v3892_v25  ;;  %4053 = vmatpush.bf16.msra.mxu1 %v4026_v33  ;;  %v7587_v25 = vld [vmem:[#allocation5 + $0x4e0] sm:$0xf]  ;;  %v8396_v33 = vld [vmem:[#allocation5 + $0x4e8] sm:$0xf0] }
 0xa07   :  { %7493 = vmatmul.msk.bf16.vlgmr.msra.gmra.mxu2 %vm667_vm10, %v8371_v56  ;;  %7513 = vmatmul.msk.bf16.vlgmr.msra.gmra.mxu1 %vm667_vm10, %v8375_v62  ;;  %v8395_v56 = vld [vmem:[#allocation5 + $0x4e4] sm:$0xf]  ;;  %v7588_v62 = vor.u32 %v8396_v33, %v7587_v25  ;;  %v7541_v25 = vld [vmem:[#allocation5 + $0x48c] sm:$0xf0]  ;;  %v7547_v33 = vld [vmem:[#allocation5 + $0x488] sm:$0xf] }
 0xa08   :  { %4387 = vmatpush.bf16.msrb.mxu2 %v7628_v29  ;;  %4416 = vmatpush.bf16.msrb.mxu1 %v7632_v61  ;;  %v7583_v29 = vld [vmem:[#allocation5 + $0x4d0] sm:$0xf]  ;;  %v8394_v61 = vld [vmem:[#allocation5 + $0x4d8] sm:$0xf0] }
 0xa09   :  { %4361 = vmatpush.bf16.msra.mxu0 %v7588_v62  ;;  %v7584_v21 = vor.u32 %v8394_v61, %v7583_v29 }
 0xa0c   :  { %4388 = vmatpush.bf16.msrb.mxu2 %v7616_v52  ;;  %4417 = vmatpush.bf16.msrb.mxu1 %v7620_v51  ;;  %v7571_v52 = vld [vmem:[#allocation5 + $0x4b8] sm:$0xf]  ;;  %v8391_v51 = vld [vmem:[#allocation5 + $0x4c0] sm:$0xf0] }
 0xa0d   :  { %4362 = vmatpush.bf16.msra.mxu0 %v7576_v46  ;;  %v7572_v48 = vor.u32 %v8391_v51, %v7571_v52 }
 0xa10   :  { %4389 = vmatpush.bf16.msrb.mxu2 %v7604_v12  ;;  %4418 = vmatpush.bf16.msrb.mxu1 %v7608_v60  ;;  %v8388_v12 = vld [vmem:[#allocation5 + $0x4a8] sm:$0xf0] }
 0xa11   :  { %4363 = vmatpush.bf16.msra.mxu0 %v7564_v50 }
 0xa12   :  { %7534 = vmatmul.msk.bf16.gmra.mxu3 %vm667_vm10, %v8380_v2  ;;  %v7589_v2 = vld [vmem:[#allocation5 + $0x4ec] sm:$0xf0] }
 0xa13   :  { %v7592_v58 = vor.u32 %v8395_v56, %v7589_v2  ;;  %v8385_v56 = vld [vmem:[#allocation5 + $0x490] sm:$0xf0] }
 0xa14   :  { %v7548_v2 = vor.u32 %v8385_v56, %v7547_v33 }
 0xa15   :  { %4390 = vmatpush.bf16.msrb.mxu2 %v7592_v58  ;;  %4364 = vmatpush.bf16.msra.mxu0 %v7552_v3 }
 0xa17   :  { %7494 = vmatmul.msk.bf16.gmra.mxu2 %vm667_vm10, %v8372_v1  ;;  %7514 = vmatmul.msk.bf16.gmra.mxu1 %vm667_vm10, %v8376_v8  ;;  %v7595_v1 = vld [vmem:[#allocation5 + $0x4e8] sm:$0xf]  ;;  %v8397_v8 = vld [vmem:[#allocation5 + $0x4f0] sm:$0xf0] }
 0xa18   :  { %v7596_v30 = vor.u32 %v8397_v8, %v7595_v1 }
 0xa19   :  { %4391 = vmatpush.bf16.msrb.mxu2 %v7580_v11 }
 0xa1a   :  { %4419 = vmatpush.bf16.msrb.mxu1 %v7596_v30 }
 0xa1d   :  { %4392 = vmatpush.bf16.msrb.mxu2 %v7568_v19 }
 0xa1e   :  { %4420 = vmatpush.bf16.msrb.mxu1 %v7584_v21 }
 0xa22   :  { %7535 = vmatmul.msk.bf16.gmra.mxu3 %vm667_vm10, %v8381_v39  ;;  %4421 = vmatpush.bf16.msrb.mxu1 %v7572_v48  ;;  %v7553_v39 = vld [vmem:[#allocation5 + $0x4a4] sm:$0xf0] }
 0xa23   :  { %v7556_v60 = vor.u32 %v8386_v49, %v7553_v39 }
 0xa25   :  { %4393 = vmatpush.bf16.msrb.mxu2 %v7556_v60 }
 0xa27   :  { %7495 = vmatmul.msk.bf16.gmra.mxu2 %vm667_vm10, %v8373_v44  ;;  %7515 = vmatmul.msk.bf16.gmra.mxu1 %vm667_vm10, %v8377_v16  ;;  %v7560_v44 = vor.u32 %v8388_v12, %v7559_v10  ;;  %v7539_v16 = vld [vmem:[#allocation5 + $0x480] sm:$0xf] }
 0xa29   :  { %4422 = vmatpush.bf16.msrb.mxu1 %v7560_v44 }
 0xa2d   :  { %4423 = vmatpush.bf16.msrb.mxu1 %v7548_v2 }
 0xa32   :  { %7536 = vmatmul.msk.bf16.gmra.mxu3 %vm667_vm10, %v8382_v15  ;;  %v8384_v15 = vld [vmem:[#allocation5 + $0x488] sm:$0xf0] }
 0xa37   :  { %7496 = vmatmul.msk.bf16.gmra.mxu2 %vm667_vm10, %v8374_v13  ;;  %7516 = vmatmul.msk.bf16.gmra.mxu1 %vm667_vm10, %v8378_v23  ;;  %v8383_v13 = vld [vmem:[#allocation5 + $0x484] sm:$0xf]  ;;  %v7540_v23 = vor.u32 %v8384_v15, %v7539_v16 }
 0xa38   :  { %v7544_v62 = vor.u32 %v8383_v13, %v7541_v25 }
 0xa39   :  { %4365 = vmatpush.bf16.msra.mxu0 %v7540_v23 }
 0xa3a   :  { %4394 = vmatpush.bf16.msrb.mxu2 %v7544_v62 }
 0xa84   :  { %v4055_v1 = vpop.f32.mrf.mxu1 }
 0xa85   :  { %v4157_v8 = vpop.f32.mrf.mxu3 }
 0xa8a   :  { %v3921_v58 = vpop.f32.mrf.mxu2 }
 0xa8b   :  { %v3981_v32 = vadd.f32 %v9470_v37, %v3921_v58 }
 0xa8c   :  { %v4057_v30 = vpop.f32.mrf.mxu1 }
 0xa8d   :  { %v4159_v18 = vpop.f32.mrf.mxu3  ;;  %v4075_v59 = vadd.f32 %v4055_v1, %v3981_v32 }
 0xa8f   :  { %v4177_v61 = vadd.f32 %v4157_v8, %v4075_v59 }
 0xa91   :  { %v4185_v28 = vmax.f32 %v4177_v61, 0.0 }
 0xa92   :  { %v3923_v46 = vpop.f32.mrf.mxu2 }
 0xa93   :  { %v3982_v34 = vadd.f32 %v9457_v40, %v3923_v46 }
 0xa94   :  { %v4060_v29 = vpop.f32.mrf.mxu1 }
 0xa95   :  { %v4076_v11 = vadd.f32 %v4057_v30, %v3982_v34  ;;  %v4162_v21 = vpop.f32.mrf.mxu3 }
 0xa97   :  { %v4178_v42 = vadd.f32 %v4159_v18, %v4076_v11 }
 0xa99   :  { %v4186_v7 = vmax.f32 %v4178_v42, 0.0 }
 0xa9a   :  { %v3926_v50 = vpop.f32.mrf.mxu2 }
 0xa9b   :  { %v4193_v4 = vpack.c.bf16 %v4186_v7, %v4185_v28  ;;  %v3983_v51 = vadd.f32 %v9426_v41, %v3926_v50 }
 0xa9c   :  { %v4062_v52 = vpop.f32.mrf.mxu1 }
 0xa9d   :  { %4366 = vmatmul.bf16.vlgmr.msra.gmra.mxu0 %v4193_v4  ;;  %4395 = vmatmul.bf16.vlgmr.msrb.gmra.mxu2 %v4193_v4  ;;  %v4164_v37 = vpop.f32.mrf.mxu3  ;;  %v4077_v19 = vadd.f32 %v4060_v29, %v3983_v51 }
 0xa9e   :  { %4424 = vmatmul.bf16.vlgmr.msrb.gmra.mxu1 %v4193_v4 }
 0xa9f   :  { %v4179_v54 = vadd.f32 %v4162_v21, %v4077_v19 }
 0xaa1   :  { %v4187_v10 = vmax.f32 %v4179_v54, 0.0 }
 0xaa2   :  { %v3928_v48 = vpop.f32.mrf.mxu2 }
 0xaa3   :  { %v3984_v40 = vadd.f32 %v9468_v22, %v3928_v48 }
 0xaa4   :  { %v4065_v49 = vpop.f32.mrf.mxu1 }
 0xaa5   :  { %v4078_v43 = vadd.f32 %v4062_v52, %v3984_v40  ;;  %v4167_v39 = vpop.f32.mrf.mxu3 }
 0xaa7   :  { %v4180_v3 = vadd.f32 %v4164_v37, %v4078_v43 }
 0xaa9   :  { %v4188_v12 = vmax.f32 %v4180_v3, 0.0 }
 0xaaa   :  { %v3931_v60 = vpop.f32.mrf.mxu2 }
 0xaab   :  { %v4194_v44 = vpack.c.bf16 %v4188_v12, %v4187_v10  ;;  %v3985_v16 = vadd.f32 %v9438_v26, %v3931_v60 }
 0xaac   :  { %v4067_v41 = vpop.f32.mrf.mxu1 }
 0xaad   :  { %4371 = vmatmul.bf16.gmra.mxu0 %v4194_v44  ;;  %4400 = vmatmul.bf16.gmra.mxu2 %v4194_v44  ;;  %v4079_v15 = vadd.f32 %v4065_v49, %v3985_v16  ;;  %v4169_v23 = vpop.f32.mrf.mxu3 }
 0xaae   :  { %4429 = vmatmul.bf16.gmra.mxu1 %v4194_v44 }
 0xaaf   :  { %v4181_v25 = vadd.f32 %v4167_v39, %v4079_v15 }
 0xab1   :  { %v4189_v62 = vmax.f32 %v4181_v25, 0.0 }
 0xab2   :  { %v3933_v13 = vpop.f32.mrf.mxu2 }
 0xab3   :  { %v3986_v22 = vadd.f32 %v9480_v6, %v3933_v13 }
 0xab4   :  { %v4070_v8 = vpop.f32.mrf.mxu1 }
 0xab5   :  { %v4080_v33 = vadd.f32 %v4067_v41, %v3986_v22  ;;  %v4172_v30 = vpop.f32.mrf.mxu3 }
 0xab7   :  { %v4182_v56 = vadd.f32 %v4169_v23, %v4080_v33 }
 0xab9   :  { %v4190_v2 = vmax.f32 %v4182_v56, 0.0 }
 0xaba   :  { %v3936_v1 = vpop.f32.mrf.mxu2 }
 0xabb   :  { %v4195_v58 = vpack.c.bf16 %v4190_v2, %v4189_v62  ;;  %v3987_v26 = vadd.f32 %v9477_v45, %v3936_v1 }
 0xabc   :  { %v4072_v46 = vpop.f32.mrf.mxu1 }
 0xabd   :  { %4376 = vmatmul.bf16.gmra.mxu0 %v4195_v58  ;;  %4405 = vmatmul.bf16.gmra.mxu2 %v4195_v58  ;;  %v4081_v32 = vadd.f32 %v4070_v8, %v3987_v26  ;;  %v4174_v29 = vpop.f32.mrf.mxu3 }
 0xabe   :  { %4434 = vmatmul.bf16.gmra.mxu1 %v4195_v58 }
 0xabf   :  { %v4183_v6 = vadd.f32 %v4172_v30, %v4081_v32 }
 0xac1   :  { %v4191_v11 = vmax.f32 %v4183_v6, 0.0 }
 0xac2   :  { %v3938_v18 = vpop.f32.mrf.mxu2 }
 0xac3   :  { %v3988_v59 = vadd.f32 %v9446_v27, %v3938_v18 }
 0xac5   :  { %v4082_v34 = vadd.f32 %v4072_v46, %v3988_v59 }
 0xac7   :  { %v4184_v61 = vadd.f32 %v4174_v29, %v4082_v34 }
 0xac9   :  { %v4192_v21 = vmax.f32 %v4184_v61, 0.0 }
 0xacb   :  { %v4196_v42 = vpack.c.bf16 %v4192_v21, %v4191_v11 }
 0xacd   :  { %4381 = vmatmul.bf16.gmra.mxu0 %v4196_v42  ;;  %4410 = vmatmul.bf16.gmra.mxu2 %v4196_v42 }
 0xace   :  { %4439 = vmatmul.bf16.gmra.mxu1 %v4196_v42 }
 0xb1a   :  { %v4367_v28 = vpop.f32.mrf.mxu0 }
 0xb1b   :  { %v9589_v45 = vpop.f32.mrf.mxu1 }
 0xb20   :  { %v4396_v7 = vpop.f32.mrf.mxu2 }
 0xb21   :  { %v9591_v50 = vpack.c.bf16 %v4396_v7, %v4367_v28 }
 0xb22   :  { %v4369_v4 = vpop.f32.mrf.mxu0 }
 0xb23   :  { %v4427_v52 = vpop.f32.mrf.mxu1 }
 0xb24   :  { %v4448_v61 = vpack.c.bf16 %v4427_v52, %v4427_v52 }
 0xb28   :  { %v4398_v27 = vpop.f32.mrf.mxu2 }
 0xb2a   :  { %v4372_v51 = vpop.f32.mrf.mxu0 }
 0xb2b   :  { %v4430_v37 = vpop.f32.mrf.mxu1 }
 0xb2c   :  { %v4450_v32 = vpack.c.bf16 %v4430_v37, %v4430_v37 }
 0xb30   :  { %v4401_v19 = vpop.f32.mrf.mxu2 }
 0xb31   :  { %v4449_v37 = vpack.c.bf16 %v4401_v19, %v4372_v51 }
 0xb32   :  { %v4374_v48 = vpop.f32.mrf.mxu0 }
 0xb33   :  { %v4432_v40 = vpop.f32.mrf.mxu1 }
 0xb34   :  { %v4452_v62 = vpack.c.bf16 %v4432_v40, %v4432_v40 }
 0xb36   :  { %v4729_v11 = vunpack.c.l.b16 %v4452_v62  ;;  %v8407_v62 = vld [vmem:[#allocation2 + $0x240] sm:$0xff] }
 0xb38   :  { %v4403_v54 = vpop.f32.mrf.mxu2 }
 0xb39   :  { %v4451_v21 = vpack.c.bf16 %v4403_v54, %v4374_v48 }
 0xb3a   :  { %v4377_v43 = vpop.f32.mrf.mxu0 }
 0xb3b   :  { %v4435_v49 = vpop.f32.mrf.mxu1  ;;  %v4627_v48 = vunpack.c.h.b16 %v4451_v21 }
 0xb3c   :  { %v4454_v22 = vpack.c.bf16 %v4435_v49, %v4435_v49 }
 0xb3e   :  { %v4730_v18 = vunpack.c.l.b16 %v4454_v22 }
 0xb40   :  { %v4406_v3 = vpop.f32.mrf.mxu2 }
 0xb41   :  { %v4453_v59 = vpack.c.bf16 %v4406_v3, %v4377_v43 }
 0xb42   :  { %v4379_v10 = vpop.f32.mrf.mxu0 }
 0xb43   :  { %v4437_v39 = vpop.f32.mrf.mxu1  ;;  %v4502_v43 = vunpack.c.l.b16 %v4453_v59  ;;  %v4628_v3 = vunpack.c.h.b16 %v4453_v59  ;;  %v7787_v59 = vld [vmem:[#allocation5 + $0x5f0] sm:$0xf] }
 0xb44   :  { %v4456_v13 = vpack.c.bf16 %v4437_v39, %v4437_v39  ;;  %v4446_v39 = vpack.c.bf16 %v9589_v45, %v9589_v45 }
 0xb46   :  { %v4731_v2 = vunpack.c.l.b16 %v4456_v13  ;;  %v4626_v13 = vunpack.c.h.b16 %v4449_v37 }
 0xb48   :  { %v4408_v12 = vpop.f32.mrf.mxu2  ;;  %v4736_v42 = vpack.c.b16 %v4731_v2, %v4730_v18  ;;  %v4633_v22 = vpack.c.b16 %v4627_v48, %v4626_v13  ;;  %v8411_v2 = vld [vmem:[#allocation2 + $0x260] sm:$0xff]  ;;  %v7781_v18 = vld [vmem:[#allocation5 + $0x5f4] sm:$0xf0] }
 0xb49   :  { %v4455_v30 = vpack.c.bf16 %v4408_v12, %v4379_v10  ;;  %v4728_v10 = vunpack.c.l.b16 %v4450_v32  ;;  %v4727_v12 = vunpack.c.l.b16 %v4448_v61  ;;  %v8438_v61 = vld [vmem:[#allocation5 + $0x5d8] sm:$0xf0] }
 0xb4a   :  { %v4382_v44 = vpop.f32.mrf.mxu0  ;;  %v8414_v13 = vld [vmem:[#allocation2 + $0x278] sm:$0xff] }
 0xb4b   :  { %v4440_v60 = vpop.f32.mrf.mxu1  ;;  %v4503_v28 = vunpack.c.l.b16 %v4455_v30  ;;  %v4629_v7 = vunpack.c.h.b16 %v4455_v30  ;;  %v4735_v52 = vpack.c.b16 %v4729_v11, %v4728_v10  ;;  %v8441_v30 = vld [vmem:[#allocation5 + $0x5f0] sm:$0xf0]  ;;  %v8435_v10 = vld [vmem:[#allocation5 + $0x5c0] sm:$0xf0] }
 0xb4c   :  { %v4458_v41 = vpack.c.bf16 %v4440_v60, %v4440_v60  ;;  %v4447_v60 = vpack.c.bf16 %v4398_v27, %v4369_v4  ;;  %v4498_v4 = vunpack.c.l.b16 %v9591_v50  ;;  %v4624_v27 = vunpack.c.h.b16 %v9591_v50  ;;  %v7779_v50 = vld [vmem:[#allocation5 + $0x5e8] sm:$0xf]  ;;  %v8437_v11 = vld [vmem:[#allocation5 + $0x5d4] sm:$0xf] }
 0xb4d   :  { %v4508_v54 = vpack.c.b16 %v4503_v28, %v4502_v43  ;;  %v7780_v32 = vor.u32 %v8441_v30, %v7779_v50  ;;  %v7775_v28 = vld [vmem:[#allocation5 + $0x5d8] sm:$0xf]  ;;  %v7757_v43 = vld [vmem:[#allocation5 + $0x5c4] sm:$0xf0]  ;;  %v8430_v50 = vld [vmem:[#allocation5 + $0x598] sm:$0xf0] }
 0xb4e   :  { %v4732_v25 = vunpack.c.l.b16 %v4458_v41  ;;  %v4726_v41 = vunpack.c.l.b16 %v4446_v39  ;;  %v4625_v51 = vunpack.c.h.b16 %v4447_v60  ;;  %v7755_v39 = vld [vmem:[#allocation5 + $0x5b8] sm:$0xf] }
 0xb4f   :  { %4964 = vmatpush.bf16.msra.mxu1 %v7780_v32  ;;  %v7719_v32 = vld [vmem:[#allocation5 + $0x570] sm:$0xf] }
 0xb50   :  { %v4411_v16 = vpop.f32.mrf.mxu2  ;;  %v4734_v45 = vpack.c.b16 %v4727_v12, %v4726_v41  ;;  %v8436_v12 = vld [vmem:[#allocation5 + $0x5c8] sm:$0xf0]  ;;  %v8418_v41 = vld [vmem:[#allocation2 + $0x298] sm:$0xff] }
 0xb51   :  { %v4457_v56 = vpack.c.bf16 %v4411_v16, %v4382_v44  ;;  %v4501_v44 = vunpack.c.l.b16 %v4451_v21  ;;  %v4634_v16 = vpack.c.b16 %v4629_v7, %v4628_v3  ;;  %v8439_v7 = vld [vmem:[#allocation5 + $0x5e0] sm:$0xf0]  ;;  %v7763_v3 = vld [vmem:[#allocation5 + $0x5c0] sm:$0xf] }
 0xb52   :  { %v4384_v1 = vpop.f32.mrf.mxu0  ;;  %v7764_v48 = vor.u32 %v8436_v12, %v7763_v3  ;;  %v8420_v3 = vld [vmem:[#allocation5 + $0x548] sm:$0xf0]  ;;  %v8419_v12 = vld [vmem:[#allocation5 + $0x544] sm:$0xf] }
 0xb53   :  { %v4442_v15 = vpop.f32.mrf.mxu1  ;;  %v4504_v46 = vunpack.c.l.b16 %v4457_v56  ;;  %v4630_v6 = vunpack.c.h.b16 %v4457_v56  ;;  %v4632_v56 = vpack.c.b16 %v4625_v51, %v4624_v27  ;;  %v8431_v51 = vld [vmem:[#allocation5 + $0x5a4] sm:$0xf] }
 0xb54   :  { %v4460_v23 = vpack.c.bf16 %v4442_v15, %v4442_v15  ;;  %v4500_v15 = vunpack.c.l.b16 %v4449_v37  ;;  %v8434_v37 = vld [vmem:[#allocation5 + $0x5bc] sm:$0xf] }
 0xb56   :  { %v4733_v33 = vunpack.c.l.b16 %v4460_v23  ;;  %v4499_v23 = vunpack.c.l.b16 %v4447_v60  ;;  %v4507_v19 = vpack.c.b16 %v4501_v44, %v4500_v15  ;;  %v8417_v60 = vld [vmem:[#allocation2 + $0x290] sm:$0xff]  ;;  %v7760_v44 = vor.u32 %v8434_v37, %v7757_v43  ;;  %v8410_v15 = vld [vmem:[#allocation2 + $0x258] sm:$0xff]  ;;  %v7695_v43 = vld [vmem:[#allocation5 + $0x540] sm:$0xf] }
 0xb58   :  { %v4737_v8 = vpack.c.b16 %v4733_v33, %v4732_v25  ;;  %v4413_v58 = vpop.f32.mrf.mxu2  ;;  %v8415_v25 = vld [vmem:[#allocation2 + $0x280] sm:$0xff]  ;;  %v4506_v33 = vpack.c.b16 %v4499_v23, %v4498_v4  ;;  %v8432_v23 = vld [vmem:[#allocation5 + $0x5a8] sm:$0xf0]  ;;  %v8433_v4 = vld [vmem:[#allocation5 + $0x5b0] sm:$0xf0] }
 0xb59   :  { %v4459_v26 = vpack.c.bf16 %v4413_v58, %v4384_v1  ;;  %v8416_v1 = vld [vmem:[#allocation2 + $0x288] sm:$0xff] }
 0xb5a   :  { %4758 = vmatpush.bf16.msra.mxu2 %v4737_v8  ;;  %v8408_v8 = vld [vmem:[#allocation2 + $0x248] sm:$0xff] }
 0xb5b   :  { %v4505_v34 = vunpack.c.l.b16 %v4459_v26  ;;  %v4631_v29 = vunpack.c.h.b16 %v4459_v26  ;;  %v8412_v58 = vld [vmem:[#allocation2 + $0x268] sm:$0xff] }
 0xb5c   :  { %v8440_v26 = vld [vmem:[#allocation5 + $0x5ec] sm:$0xf] }
 0xb5d   :  { %v4509_v40 = vpack.c.b16 %v4505_v34, %v4504_v46  ;;  %v4635_v49 = vpack.c.b16 %v4631_v29, %v4630_v6  ;;  %v8442_v46 = vld [vmem:[#allocation5 + $0x5f8] sm:$0xf0]  ;;  %v7784_v6 = vor.u32 %v8440_v26, %v7781_v18  ;;  %v7767_v29 = vld [vmem:[#allocation5 + $0x5d0] sm:$0xf] }
 0xb5e   :  { %4759 = vmatpush.bf16.msra.mxu2 %v4736_v42  ;;  %v7788_v34 = vor.u32 %v8442_v46, %v7787_v59  ;;  %v7768_v21 = vor.u32 %v8438_v61, %v7767_v29  ;;  %v7769_v42 = vld [vmem:[#allocation5 + $0x5dc] sm:$0xf0]  ;;  %v8426_v18 = vld [vmem:[#allocation5 + $0x578] sm:$0xf0]  ;;  %v8425_v59 = vld [vmem:[#allocation5 + $0x574] sm:$0xf] }
 0xb5f   :  { %4530 = vmatpush.bf16.msra.mxu3 %v4509_v40  ;;  %4656 = vmatpush.bf16.msrb.mxu0 %v4635_v49  ;;  %v7772_v40 = vor.u32 %v8437_v11, %v7769_v42  ;;  %v7776_v49 = vor.u32 %v8439_v7, %v7775_v28  ;;  %v7720_v46 = vor.u32 %v8426_v18, %v7719_v32  ;;  %v8427_v29 = vld [vmem:[#allocation5 + $0x580] sm:$0xf0]  ;;  %v8422_v28 = vld [vmem:[#allocation5 + $0x55c] sm:$0xf] }
 0xb60   :  { %4965 = vmatpush.bf16.msra.mxu1 %v7768_v21  ;;  %v7707_v21 = vld [vmem:[#allocation5 + $0x558] sm:$0xf]  ;;  %v8423_v42 = vld [vmem:[#allocation5 + $0x560] sm:$0xf0] }
 0xb61   :  { %v7708_v7 = vor.u32 %v8423_v42, %v7707_v21 }
 0xb62   :  { %4760 = vmatpush.bf16.msra.mxu2 %v4735_v52  ;;  %v7756_v52 = vor.u32 %v8435_v10, %v7755_v39  ;;  %v8424_v39 = vld [vmem:[#allocation5 + $0x568] sm:$0xf0] }
 0xb63   :  { %4531 = vmatpush.bf16.msra.mxu3 %v4508_v54  ;;  %4657 = vmatpush.bf16.msrb.mxu0 %v4634_v16  ;;  %v8409_v54 = vld [vmem:[#allocation2 + $0x250] sm:$0xff] }
 0xb64   :  { %4966 = vmatpush.bf16.msra.mxu1 %v7756_v52  ;;  %v8413_v16 = vld [vmem:[#allocation2 + $0x270] sm:$0xff] }
 0xb65   :  { %v7697_v52 = vld [vmem:[#allocation5 + $0x54c] sm:$0xf0] }
 0xb66   :  { %4761 = vmatpush.bf16.msra.mxu2 %v4734_v45  ;;  %v7743_v45 = vld [vmem:[#allocation5 + $0x5a0] sm:$0xf] }
 0xb67   :  { %4532 = vmatpush.bf16.msra.mxu3 %v4507_v19  ;;  %4658 = vmatpush.bf16.msrb.mxu0 %v4633_v22  ;;  %v7744_v19 = vor.u32 %v8432_v23, %v7743_v45  ;;  %v7745_v22 = vld [vmem:[#allocation5 + $0x5ac] sm:$0xf0] }
 0xb68   :  { %v7748_v27 = vor.u32 %v8431_v51, %v7745_v22 }
 0xb69   :  { %7689 = vmatmul.msk.bf16.vlgmr.msra.gmra.mxu2 %vm667_vm10, %v8415_v25  ;;  %v7751_v25 = vld [vmem:[#allocation5 + $0x5a8] sm:$0xf]  ;;  %4967 = vmatpush.bf16.msra.mxu1 %v7744_v19 }
 0xb6b   :  { %4533 = vmatpush.bf16.msra.mxu3 %v4506_v33  ;;  %4659 = vmatpush.bf16.msrb.mxu0 %v4632_v56  ;;  %v7752_v33 = vor.u32 %v8433_v4, %v7751_v25  ;;  %v7731_v56 = vld [vmem:[#allocation5 + $0x588] sm:$0xf] }
 0xb6e   :  { %7649 = vmatmul.msk.bf16.vlgmr.msra.gmra.mxu3 %vm667_vm10, %v8407_v62  ;;  %7669 = vmatmul.msk.bf16.vlgmr.msrb.gmra.mxu0 %vm667_vm10, %v8411_v2  ;;  %v8429_v62 = vld [vmem:[#allocation5 + $0x590] sm:$0xf0]  ;;  %v8428_v2 = vld [vmem:[#allocation5 + $0x58c] sm:$0xf] }
 0xb6f   :  { %4993 = vmatpush.bf16.msrb.mxu3 %v7784_v6  ;;  %5022 = vmatpush.bf16.msra.mxu0 %v7788_v34  ;;  %v7721_v6 = vld [vmem:[#allocation5 + $0x57c] sm:$0xf0]  ;;  %v7727_v34 = vld [vmem:[#allocation5 + $0x578] sm:$0xf] }
 0xb70   :  { %v7724_v61 = vor.u32 %v8425_v59, %v7721_v6  ;;  %v7728_v11 = vor.u32 %v8427_v29, %v7727_v34 }
 0xb73   :  { %4994 = vmatpush.bf16.msrb.mxu3 %v7772_v40  ;;  %5023 = vmatpush.bf16.msra.mxu0 %v7776_v49  ;;  %v7709_v40 = vld [vmem:[#allocation5 + $0x564] sm:$0xf0]  ;;  %v7715_v49 = vld [vmem:[#allocation5 + $0x560] sm:$0xf] }
 0xb74   :  { %v7712_v10 = vor.u32 %v8422_v28, %v7709_v40  ;;  %v7716_v37 = vor.u32 %v8424_v39, %v7715_v49 }
 0xb77   :  { %4995 = vmatpush.bf16.msrb.mxu3 %v7760_v44  ;;  %5024 = vmatpush.bf16.msra.mxu0 %v7764_v48  ;;  %v7703_v44 = vld [vmem:[#allocation5 + $0x548] sm:$0xf]  ;;  %v8421_v48 = vld [vmem:[#allocation5 + $0x550] sm:$0xf0] }
 0xb79   :  { %7690 = vmatmul.msk.bf16.gmra.mxu2 %vm667_vm10, %v8416_v1  ;;  %v7732_v1 = vor.u32 %v8429_v62, %v7731_v56 }
 0xb7b   :  { %4996 = vmatpush.bf16.msrb.mxu3 %v7748_v27  ;;  %5025 = vmatpush.bf16.msra.mxu0 %v7752_v33 }
 0xb7c   :  { %4968 = vmatpush.bf16.msra.mxu1 %v7732_v1 }
 0xb7e   :  { %7650 = vmatmul.msk.bf16.gmra.mxu3 %vm667_vm10, %v8408_v8  ;;  %7670 = vmatmul.msk.bf16.gmra.mxu0 %vm667_vm10, %v8412_v58  ;;  %v7733_v8 = vld [vmem:[#allocation5 + $0x594] sm:$0xf0]  ;;  %v7739_v58 = vld [vmem:[#allocation5 + $0x590] sm:$0xf] }
 0xb7f   :  { %v7736_v30 = vor.u32 %v8428_v2, %v7733_v8  ;;  %v7740_v26 = vor.u32 %v8430_v50, %v7739_v58 }
 0xb80   :  { %4969 = vmatpush.bf16.msra.mxu1 %v7720_v46 }
 0xb81   :  { %4997 = vmatpush.bf16.msrb.mxu3 %v7736_v30  ;;  %5026 = vmatpush.bf16.msra.mxu0 %v7740_v26 }
 0xb84   :  { %4970 = vmatpush.bf16.msra.mxu1 %v7708_v7 }
 0xb85   :  { %4998 = vmatpush.bf16.msrb.mxu3 %v7724_v61  ;;  %5027 = vmatpush.bf16.msra.mxu0 %v7728_v11 }
 0xb89   :  { %7691 = vmatmul.msk.bf16.gmra.mxu2 %vm667_vm10, %v8417_v60  ;;  %4999 = vmatpush.bf16.msrb.mxu3 %v7712_v10  ;;  %v7696_v60 = vor.u32 %v8420_v3, %v7695_v43 }
 0xb8a   :  { %5028 = vmatpush.bf16.msra.mxu0 %v7716_v37 }
 0xb8b   :  { %4971 = vmatpush.bf16.msra.mxu1 %v7696_v60 }
 0xb8e   :  { %7651 = vmatmul.msk.bf16.gmra.mxu3 %vm667_vm10, %v8409_v54  ;;  %7671 = vmatmul.msk.bf16.gmra.mxu0 %vm667_vm10, %v8413_v16  ;;  %v7700_v54 = vor.u32 %v8419_v12, %v7697_v52  ;;  %v7704_v16 = vor.u32 %v8421_v48, %v7703_v44 }
 0xb90   :  { %5000 = vmatpush.bf16.msrb.mxu3 %v7700_v54  ;;  %5029 = vmatpush.bf16.msra.mxu0 %v7704_v16 }
 0xb99   :  { %7692 = vmatmul.msk.bf16.gmra.mxu2 %vm667_vm10, %v8418_v41 }
 0xb9e   :  { %7652 = vmatmul.msk.bf16.gmra.mxu3 %vm667_vm10, %v8410_v15  ;;  %7672 = vmatmul.msk.bf16.gmra.mxu0 %vm667_vm10, %v8414_v13 }
 0xbeb   :  { %v4661_v41 = vpop.f32.mrf.mxu0 }
 0xbec   :  { %v4763_v15 = vpop.f32.mrf.mxu2 }
 0xbf1   :  { %v4535_v13 = vpop.f32.mrf.mxu3 }
 0xbf2   :  { %v4587_v23 = vadd.f32 %v9489_v20, %v4535_v13 }
 0xbf3   :  { %v4663_v45 = vpop.f32.mrf.mxu0 }
 0xbf4   :  { %v4765_v51 = vpop.f32.mrf.mxu2  ;;  %v4681_v19 = vadd.f32 %v4661_v41, %v4587_v23 }
 0xbf6   :  { %v4783_v27 = vadd.f32 %v4763_v15, %v4681_v19 }
 0xbf8   :  { %v4791_v2 = vmax.f32 %v4783_v27, 0.0 }
 0xbf9   :  { %v4537_v22 = vpop.f32.mrf.mxu3 }
 0xbfa   :  { %v4588_v25 = vadd.f32 %v9484_v5, %v4537_v22 }
 0xbfb   :  { %v4666_v4 = vpop.f32.mrf.mxu0 }
 0xbfc   :  { %v4682_v33 = vadd.f32 %v4663_v45, %v4588_v25  ;;  %v4768_v56 = vpop.f32.mrf.mxu2 }
 0xbfe   :  { %v4784_v62 = vadd.f32 %v4765_v51, %v4682_v33 }
 0xc00   :  { %v4792_v1 = vmax.f32 %v4784_v62, 0.0 }
 0xc01   :  { %v4540_v8 = vpop.f32.mrf.mxu3 }
 0xc02   :  { %v4799_v58 = vpack.c.bf16 %v4792_v1, %v4791_v2  ;;  %v4589_v30 = vadd.f32 %v9454_v35, %v4540_v8 }
 0xc03   :  { %v4668_v50 = vpop.f32.mrf.mxu0 }
 0xc04   :  { %4972 = vmatmul.bf16.vlgmr.msra.gmra.mxu1 %v4799_v58  ;;  %5001 = vmatmul.bf16.vlgmr.msrb.gmra.mxu3 %v4799_v58  ;;  %v4770_v20 = vpop.f32.mrf.mxu2  ;;  %v4683_v26 = vadd.f32 %v4666_v4, %v4589_v30 }
 0xc05   :  { %5030 = vmatmul.bf16.vlgmr.msra.gmra.mxu0 %v4799_v58 }
 0xc06   :  { %v4785_v18 = vadd.f32 %v4768_v56, %v4683_v26 }
 0xc08   :  { %v4793_v29 = vmax.f32 %v4785_v18, 0.0 }
 0xc09   :  { %v4542_v32 = vpop.f32.mrf.mxu3 }
 0xc0a   :  { %v4590_v5 = vadd.f32 %v9494_v53, %v4542_v32 }
 0xc0b   :  { %v4671_v46 = vpop.f32.mrf.mxu0 }
 0xc0c   :  { %v4684_v59 = vadd.f32 %v4668_v50, %v4590_v5  ;;  %v4773_v34 = vpop.f32.mrf.mxu2 }
 0xc0e   :  { %v4786_v6 = vadd.f32 %v4770_v20, %v4684_v59 }
 0xc10   :  { %v4794_v61 = vmax.f32 %v4786_v6, 0.0 }
 0xc11   :  { %v4545_v11 = vpop.f32.mrf.mxu3 }
 0xc12   :  { %v4800_v21 = vpack.c.bf16 %v4794_v61, %v4793_v29  ;;  %v4591_v42 = vadd.f32 %v9466_v38, %v4545_v11 }
 0xc13   :  { %v4673_v35 = vpop.f32.mrf.mxu0 }
 0xc14   :  { %4977 = vmatmul.bf16.gmra.mxu1 %v4800_v21  ;;  %5006 = vmatmul.bf16.gmra.mxu3 %v4800_v21  ;;  %v4685_v28 = vadd.f32 %v4671_v46, %v4591_v42  ;;  %v4775_v40 = vpop.f32.mrf.mxu2 }
 0xc15   :  { %5035 = vmatmul.bf16.gmra.mxu0 %v4800_v21 }
 0xc16   :  { %v4787_v49 = vadd.f32 %v4773_v34, %v4685_v28 }
 0xc18   :  { %v4795_v37 = vmax.f32 %v4787_v49, 0.0 }
 0xc19   :  { %v4547_v7 = vpop.f32.mrf.mxu3 }
 0xc1a   :  { %v4592_v53 = vadd.f32 %v9496_v57, %v4547_v7 }
 0xc1b   :  { %v4676_v12 = vpop.f32.mrf.mxu0 }
 0xc1c   :  { %v4686_v39 = vadd.f32 %v4673_v35, %v4592_v53  ;;  %v4778_v52 = vpop.f32.mrf.mxu2 }
 0xc1e   :  { %v4788_v10 = vadd.f32 %v4775_v40, %v4686_v39 }
 0xc20   :  { %v4796_v43 = vmax.f32 %v4788_v10, 0.0 }
 0xc21   :  { %v4550_v3 = vpop.f32.mrf.mxu3 }
 0xc22   :  { %v4801_v60 = vpack.c.bf16 %v4796_v43, %v4795_v37  ;;  %v4593_v38 = vadd.f32 %v9503_v14, %v4550_v3 }
 0xc23   :  { %v4678_v16 = vpop.f32.mrf.mxu0 }
 0xc24   :  { %4982 = vmatmul.bf16.gmra.mxu1 %v4801_v60  ;;  %5011 = vmatmul.bf16.gmra.mxu3 %v4801_v60  ;;  %v4687_v44 = vadd.f32 %v4676_v12, %v4593_v38  ;;  %v4780_v15 = vpop.f32.mrf.mxu2 }
 0xc25   :  { %5040 = vmatmul.bf16.gmra.mxu0 %v4801_v60 }
 0xc26   :  { %v4789_v57 = vadd.f32 %v4778_v52, %v4687_v44 }
 0xc28   :  { %v4797_v45 = vmax.f32 %v4789_v57, 0.0 }
 0xc29   :  { %v4552_v48 = vpop.f32.mrf.mxu3 }
 0xc2a   :  { %v4594_v54 = vadd.f32 %v9472_v17, %v4552_v48 }
 0xc2c   :  { %v4688_v41 = vadd.f32 %v4678_v16, %v4594_v54 }
 0xc2e   :  { %v4790_v13 = vadd.f32 %v4780_v15, %v4688_v41 }
 0xc30   :  { %v4798_v23 = vmax.f32 %v4790_v13, 0.0 }
 0xc32   :  { %v4802_v51 = vpack.c.bf16 %v4798_v23, %v4797_v45 }
 0xc34   :  { %4987 = vmatmul.bf16.gmra.mxu1 %v4802_v51  ;;  %5016 = vmatmul.bf16.gmra.mxu3 %v4802_v51 }
 0xc35   :  { %5045 = vmatmul.bf16.gmra.mxu0 %v4802_v51 }
 0xc81   :  { %v4973_v19 = vpop.f32.mrf.mxu1 }
 0xc82   :  { %v9617_v14 = vpop.f32.mrf.mxu0 }
 0xc83   :  { %v5052_v13 = vpack.c.bf16 %v9617_v14, %v9617_v14 }
 0xc87   :  { %v5002_v22 = vpop.f32.mrf.mxu3 }
 0xc88   :  { %v9619_v25 = vpack.c.bf16 %v5002_v22, %v4973_v19 }
 0xc89   :  { %v4975_v4 = vpop.f32.mrf.mxu1 }
 0xc8a   :  { %v5033_v27 = vpop.f32.mrf.mxu0 }
 0xc8b   :  { %v5054_v38 = vpack.c.bf16 %v5033_v27, %v5033_v27 }
 0xc8d   :  { %v5333_v22 = vunpack.c.l.b16 %v5054_v38  ;;  %v7911_v38 = vld [vmem:[#allocation5 + $0x678] sm:$0xf] }
 0xc8f   :  { %v5004_v17 = vpop.f32.mrf.mxu3 }
 0xc91   :  { %v4978_v33 = vpop.f32.mrf.mxu1 }
 0xc92   :  { %v5036_v56 = vpop.f32.mrf.mxu0 }
 0xc93   :  { %v5056_v10 = vpack.c.bf16 %v5036_v56, %v5036_v56  ;;  %v5053_v56 = vpack.c.bf16 %v5004_v17, %v4975_v4  ;;  %v5104_v4 = vunpack.c.l.b16 %v9619_v25  ;;  %v5230_v17 = vunpack.c.h.b16 %v9619_v25  ;;  %v7935_v25 = vld [vmem:[#allocation5 + $0x6a8] sm:$0xf] }
 0xc95   :  { %v5334_v45 = vunpack.c.l.b16 %v5056_v10  ;;  %v8473_v10 = vld [vmem:[#allocation5 + $0x694] sm:$0xf] }
 0xc97   :  { %v5007_v62 = vpop.f32.mrf.mxu3 }
 0xc98   :  { %v5055_v23 = vpack.c.bf16 %v5007_v62, %v4978_v33  ;;  %v5231_v33 = vunpack.c.h.b16 %v5053_v56 }
 0xc99   :  { %v4980_v2 = vpop.f32.mrf.mxu1 }
 0xc9a   :  { %v5038_v1 = vpop.f32.mrf.mxu0 }
 0xc9b   :  { %v5058_v35 = vpack.c.bf16 %v5038_v1, %v5038_v1 }
 0xc9d   :  { %v5335_v44 = vunpack.c.l.b16 %v5058_v35  ;;  %v7937_v35 = vld [vmem:[#allocation5 + $0x6b4] sm:$0xf0] }
 0xc9f   :  { %v5009_v8 = vpop.f32.mrf.mxu3  ;;  %v5341_v27 = vpack.c.b16 %v5335_v44, %v5334_v45  ;;  %v8471_v44 = vld [vmem:[#allocation5 + $0x680] sm:$0xf0] }
 0xca0   :  { %v5057_v48 = vpack.c.bf16 %v5009_v8, %v4980_v2 }
 0xca1   :  { %v4983_v58 = vpop.f32.mrf.mxu1 }
 0xca2   :  { %v5041_v50 = vpop.f32.mrf.mxu0  ;;  %v5107_v1 = vunpack.c.l.b16 %v5057_v48  ;;  %v5233_v2 = vunpack.c.h.b16 %v5057_v48  ;;  %v8470_v48 = vld [vmem:[#allocation5 + $0x67c] sm:$0xf] }
 0xca3   :  { %v5060_v61 = vpack.c.bf16 %v5041_v50, %v5041_v50  ;;  %v5332_v50 = vunpack.c.l.b16 %v5052_v13 }
 0xca5   :  { %v5336_v37 = vunpack.c.l.b16 %v5060_v61  ;;  %v5340_v14 = vpack.c.b16 %v5333_v22, %v5332_v50  ;;  %v8448_v61 = vld [vmem:[#allocation2 + $0x2c8] sm:$0xff]  ;;  %v8446_v22 = vld [vmem:[#allocation2 + $0x2b8] sm:$0xff] }
 0xca6   :  { %v7907_v50 = vld [vmem:[#allocation5 + $0x668] sm:$0xf] }
 0xca7   :  { %v5012_v30 = vpop.f32.mrf.mxu3 }
 0xca8   :  { %v5059_v43 = vpack.c.bf16 %v5012_v30, %v4983_v58  ;;  %v5106_v30 = vunpack.c.l.b16 %v5055_v23 }
 0xca9   :  { %v4985_v26 = vpop.f32.mrf.mxu1 }
 0xcaa   :  { %v5043_v20 = vpop.f32.mrf.mxu0  ;;  %v5108_v51 = vunpack.c.l.b16 %v5059_v43  ;;  %v5234_v19 = vunpack.c.h.b16 %v5059_v43  ;;  %v5113_v62 = vpack.c.b16 %v5107_v1, %v5106_v30  ;;  %v7925_v43 = vld [vmem:[#allocation5 + $0x69c] sm:$0xf0]  ;;  %v8468_v1 = vld [vmem:[#allocation5 + $0x668] sm:$0xf0]  ;;  %v8469_v30 = vld [vmem:[#allocation5 + $0x670] sm:$0xf0] }
 0xcab   :  { %v5062_v34 = vpack.c.bf16 %v5043_v20, %v5043_v20  ;;  %v5232_v20 = vunpack.c.h.b16 %v5055_v23  ;;  %v8445_v23 = vld [vmem:[#allocation2 + $0x2b0] sm:$0xff] }
 0xcad   :  { %v5337_v28 = vunpack.c.l.b16 %v5062_v34  ;;  %v8452_v34 = vld [vmem:[#allocation2 + $0x2e8] sm:$0xff] }
 0xcaf   :  { %v5014_v32 = vpop.f32.mrf.mxu3  ;;  %v5342_v54 = vpack.c.b16 %v5337_v28, %v5336_v37  ;;  %v7943_v28 = vld [vmem:[#allocation5 + $0x6b0] sm:$0xf] }
 0xcb0   :  { %v5061_v49 = vpack.c.bf16 %v5014_v32, %v4985_v26  ;;  %v5105_v26 = vunpack.c.l.b16 %v5053_v56  ;;  %v5239_v32 = vpack.c.b16 %v5233_v2, %v5232_v20  ;;  %v8450_v56 = vld [vmem:[#allocation2 + $0x2d8] sm:$0xff]  ;;  %v8467_v2 = vld [vmem:[#allocation5 + $0x664] sm:$0xf] }
 0xcb1   :  { %v4988_v18 = vpop.f32.mrf.mxu1 }
 0xcb2   :  { %v5046_v5 = vpop.f32.mrf.mxu0  ;;  %v5109_v16 = vunpack.c.l.b16 %v5061_v49  ;;  %v5235_v57 = vunpack.c.h.b16 %v5061_v49  ;;  %v7923_v49 = vld [vmem:[#allocation5 + $0x690] sm:$0xf] }
 0xcb3   :  { %v5064_v46 = vpack.c.bf16 %v5046_v5, %v5046_v5  ;;  %v8451_v5 = vld [vmem:[#allocation2 + $0x2e0] sm:$0xff] }
 0xcb4   :  { %v5114_v8 = vpack.c.b16 %v5109_v16, %v5108_v51  ;;  %v5240_v58 = vpack.c.b16 %v5235_v57, %v5234_v19  ;;  %v7919_v16 = vld [vmem:[#allocation5 + $0x680] sm:$0xf]  ;;  %v8472_v57 = vld [vmem:[#allocation5 + $0x688] sm:$0xf0]  ;;  %v8449_v51 = vld [vmem:[#allocation2 + $0x2d0] sm:$0xff] }
 0xcb5   :  { %v5338_v11 = vunpack.c.l.b16 %v5064_v46  ;;  %v8443_v46 = vld [vmem:[#allocation2 + $0x2a0] sm:$0xff]  ;;  %v7920_v45 = vor.u32 %v8472_v57, %v7919_v16  ;;  %v8454_v19 = vld [vmem:[#allocation2 + $0x2f8] sm:$0xff] }
 0xcb7   :  { %v5017_v59 = vpop.f32.mrf.mxu3 }
 0xcb8   :  { %v5063_v42 = vpack.c.bf16 %v5017_v59, %v4988_v18  ;;  %v5112_v18 = vpack.c.b16 %v5105_v26, %v5104_v4  ;;  %v5238_v59 = vpack.c.b16 %v5231_v33, %v5230_v17  ;;  %v7887_v26 = vld [vmem:[#allocation5 + $0x648] sm:$0xf]  ;;  %v8465_v33 = vld [vmem:[#allocation5 + $0x650] sm:$0xf0]  ;;  %v7895_v4 = vld [vmem:[#allocation5 + $0x650] sm:$0xf] }
 0xcb9   :  { %v4990_v7 = vpop.f32.mrf.mxu1  ;;  %v8466_v17 = vld [vmem:[#allocation5 + $0x658] sm:$0xf0] }
 0xcba   :  { %v5048_v6 = vpop.f32.mrf.mxu0  ;;  %v5110_v3 = vunpack.c.l.b16 %v5063_v42  ;;  %v5236_v12 = vunpack.c.h.b16 %v5063_v42 }
 0xcbb   :  { %v5066_v29 = vpack.c.bf16 %v5048_v6, %v5048_v6  ;;  %v8447_v6 = vld [vmem:[#allocation2 + $0x2c0] sm:$0xff] }
 0xcbd   :  { %v5339_v21 = vunpack.c.l.b16 %v5066_v29  ;;  %v8444_v29 = vld [vmem:[#allocation2 + $0x2a8] sm:$0xff] }
 0xcbf   :  { %v5343_v40 = vpack.c.b16 %v5339_v21, %v5338_v11  ;;  %v5019_v53 = vpop.f32.mrf.mxu3  ;;  %v8477_v11 = vld [vmem:[#allocation5 + $0x6b0] sm:$0xf0]  ;;  %v8476_v21 = vld [vmem:[#allocation5 + $0x6ac] sm:$0xf] }
 0xcc0   :  { %v5065_v39 = vpack.c.bf16 %v5019_v53, %v4990_v7  ;;  %v7936_v42 = vor.u32 %v8477_v11, %v7935_v25  ;;  %v8478_v7 = vld [vmem:[#allocation5 + $0x6b8] sm:$0xf0]  ;;  %v7883_v25 = vld [vmem:[#allocation5 + $0x638] sm:$0xf]  ;;  %v8463_v11 = vld [vmem:[#allocation5 + $0x640] sm:$0xf0] }
 0xcc1   :  { %5364 = vmatpush.bf16.msra.mxu3 %v5343_v40  ;;  %v7940_v40 = vor.u32 %v8476_v21, %v7937_v35  ;;  %v7944_v53 = vor.u32 %v8478_v7, %v7943_v28  ;;  %v7863_v35 = vld [vmem:[#allocation5 + $0x618] sm:$0xf]  ;;  %v8459_v28 = vld [vmem:[#allocation5 + $0x620] sm:$0xf0]  ;;  %v8458_v7 = vld [vmem:[#allocation5 + $0x61c] sm:$0xf] }
 0xcc2   :  { %v5111_v60 = vunpack.c.l.b16 %v5065_v39  ;;  %v5237_v52 = vunpack.c.h.b16 %v5065_v39  ;;  %v8474_v39 = vld [vmem:[#allocation5 + $0x698] sm:$0xf0]  ;;  %5570 = vmatpush.bf16.msrb.mxu0 %v7936_v42  ;;  %v7884_v42 = vor.u32 %v8463_v11, %v7883_v25 }
 0xcc3   :  { %v7924_v37 = vor.u32 %v8474_v39, %v7923_v49  ;;  %v7871_v49 = vld [vmem:[#allocation5 + $0x620] sm:$0xf]  ;;  %v8460_v39 = vld [vmem:[#allocation5 + $0x628] sm:$0xf0] }
 0xcc4   :  { %v5115_v41 = vpack.c.b16 %v5111_v60, %v5110_v3  ;;  %v5241_v15 = vpack.c.b16 %v5237_v52, %v5236_v12  ;;  %v7931_v3 = vld [vmem:[#allocation5 + $0x698] sm:$0xf]  ;;  %v8475_v12 = vld [vmem:[#allocation5 + $0x6a0] sm:$0xf0]  ;;  %v7928_v60 = vor.u32 %v8473_v10, %v7925_v43  ;;  %v7851_v43 = vld [vmem:[#allocation5 + $0x600] sm:$0xf] }
 0xcc5   :  { %5365 = vmatpush.bf16.msra.mxu3 %v5342_v54  ;;  %v7932_v52 = vor.u32 %v8475_v12, %v7931_v3  ;;  %v7913_v54 = vld [vmem:[#allocation5 + $0x684] sm:$0xf0]  ;;  %v8456_v3 = vld [vmem:[#allocation5 + $0x608] sm:$0xf0]  ;;  %v8455_v12 = vld [vmem:[#allocation5 + $0x604] sm:$0xf] }
 0xcc6   :  { %5136 = vmatpush.bf16.msrb.mxu2 %v5115_v41  ;;  %5262 = vmatpush.bf16.msrb.mxu1 %v5241_v15  ;;  %v8453_v41 = vld [vmem:[#allocation2 + $0x2f0] sm:$0xff]  ;;  %v7912_v15 = vor.u32 %v8471_v44, %v7911_v38  ;;  %v7916_v13 = vor.u32 %v8470_v48, %v7913_v54  ;;  %v7859_v38 = vld [vmem:[#allocation5 + $0x608] sm:$0xf] }
 0xcc7   :  { %5571 = vmatpush.bf16.msrb.mxu0 %v7924_v37  ;;  %v7872_v37 = vor.u32 %v8460_v39, %v7871_v49  ;;  %v8457_v44 = vld [vmem:[#allocation5 + $0x610] sm:$0xf0] }
 0xcc8   :  { %v7860_v54 = vor.u32 %v8457_v44, %v7859_v38 }
 0xcc9   :  { %5366 = vmatpush.bf16.msra.mxu3 %v5341_v27  ;;  %v7899_v27 = vld [vmem:[#allocation5 + $0x660] sm:$0xf] }
 0xcca   :  { %5137 = vmatpush.bf16.msrb.mxu2 %v5114_v8  ;;  %5263 = vmatpush.bf16.msrb.mxu1 %v5240_v58  ;;  %v7900_v8 = vor.u32 %v8468_v1, %v7899_v27  ;;  %v7901_v58 = vld [vmem:[#allocation5 + $0x66c] sm:$0xf0] }
 0xccb   :  { %5572 = vmatpush.bf16.msrb.mxu0 %v7912_v15  ;;  %v7904_v20 = vor.u32 %v8467_v2, %v7901_v58 }
 0xccd   :  { %5367 = vmatpush.bf16.msra.mxu3 %v5340_v14  ;;  %v7908_v14 = vor.u32 %v8469_v30, %v7907_v50 }
 0xcce   :  { %5138 = vmatpush.bf16.msrb.mxu2 %v5113_v62  ;;  %5264 = vmatpush.bf16.msrb.mxu1 %v5239_v32  ;;  %v8464_v62 = vld [vmem:[#allocation5 + $0x64c] sm:$0xf]  ;;  %v7888_v32 = vor.u32 %v8465_v33, %v7887_v26 }
 0xccf   :  { %5573 = vmatpush.bf16.msrb.mxu0 %v7900_v8 }
 0xcd0   :  { %7845 = vmatmul.msk.bf16.vlgmr.msra.gmra.mxu3 %vm667_vm10, %v8451_v5  ;;  %v7889_v5 = vld [vmem:[#allocation5 + $0x654] sm:$0xf0] }
 0xcd2   :  { %5139 = vmatpush.bf16.msrb.mxu2 %v5112_v18  ;;  %5265 = vmatpush.bf16.msrb.mxu1 %v5238_v59  ;;  %v7892_v18 = vor.u32 %v8464_v62, %v7889_v5  ;;  %v7896_v59 = vor.u32 %v8466_v17, %v7895_v4 }
 0xcd3   :  { %5574 = vmatpush.bf16.msrb.mxu0 %v7888_v32 }
 0xcd5   :  { %7805 = vmatmul.msk.bf16.vlgmr.msrb.gmra.mxu2 %vm667_vm10, %v8443_v46  ;;  %7825 = vmatmul.msk.bf16.vlgmr.msrb.gmra.mxu1 %vm667_vm10, %v8447_v6  ;;  %v7875_v46 = vld [vmem:[#allocation5 + $0x630] sm:$0xf]  ;;  %v8462_v6 = vld [vmem:[#allocation5 + $0x638] sm:$0xf0] }
 0xcd6   :  { %5599 = vmatpush.bf16.msra.mxu2 %v7940_v40  ;;  %5628 = vmatpush.bf16.msra.mxu1 %v7944_v53  ;;  %v7864_v40 = vor.u32 %v8459_v28, %v7863_v35  ;;  %v7865_v53 = vld [vmem:[#allocation5 + $0x624] sm:$0xf0] }
 0xcd7   :  { %v7868_v10 = vor.u32 %v8458_v7, %v7865_v53 }
 0xcda   :  { %5600 = vmatpush.bf16.msra.mxu2 %v7928_v60  ;;  %5629 = vmatpush.bf16.msra.mxu1 %v7932_v52  ;;  %v7852_v60 = vor.u32 %v8456_v3, %v7851_v43  ;;  %v7853_v52 = vld [vmem:[#allocation5 + $0x60c] sm:$0xf0] }
 0xcdb   :  { %v7856_v48 = vor.u32 %v8455_v12, %v7853_v52 }
 0xcde   :  { %5601 = vmatpush.bf16.msra.mxu2 %v7916_v13  ;;  %5630 = vmatpush.bf16.msra.mxu1 %v7920_v45 }
 0xce0   :  { %7846 = vmatmul.msk.bf16.gmra.mxu3 %vm667_vm10, %v8452_v34  ;;  %v8461_v34 = vld [vmem:[#allocation5 + $0x634] sm:$0xf] }
 0xce2   :  { %5602 = vmatpush.bf16.msra.mxu2 %v7904_v20  ;;  %5631 = vmatpush.bf16.msra.mxu1 %v7908_v14 }
 0xce5   :  { %7806 = vmatmul.msk.bf16.gmra.mxu2 %vm667_vm10, %v8444_v29  ;;  %7826 = vmatmul.msk.bf16.gmra.mxu1 %vm667_vm10, %v8448_v61  ;;  %v7876_v29 = vor.u32 %v8462_v6, %v7875_v46  ;;  %v7877_v61 = vld [vmem:[#allocation5 + $0x63c] sm:$0xf0] }
 0xce6   :  { %5603 = vmatpush.bf16.msra.mxu2 %v7892_v18  ;;  %5632 = vmatpush.bf16.msra.mxu1 %v7896_v59  ;;  %v7880_v21 = vor.u32 %v8461_v34, %v7877_v61 }
 0xce7   :  { %5575 = vmatpush.bf16.msrb.mxu0 %v7876_v29 }
 0xcea   :  { %5604 = vmatpush.bf16.msra.mxu2 %v7880_v21  ;;  %5633 = vmatpush.bf16.msra.mxu1 %v7884_v42 }
 0xceb   :  { %5576 = vmatpush.bf16.msrb.mxu0 %v7864_v40 }
 0xcee   :  { %5605 = vmatpush.bf16.msra.mxu2 %v7868_v10  ;;  %5634 = vmatpush.bf16.msra.mxu1 %v7872_v37 }
 0xcef   :  { %5577 = vmatpush.bf16.msrb.mxu0 %v7852_v60 }
 0xcf0   :  { %7847 = vmatmul.msk.bf16.gmra.mxu3 %vm667_vm10, %v8453_v41 }
 0xcf2   :  { %5606 = vmatpush.bf16.msra.mxu2 %v7856_v48  ;;  %5635 = vmatpush.bf16.msra.mxu1 %v7860_v54 }
 0xcf5   :  { %7807 = vmatmul.msk.bf16.gmra.mxu2 %vm667_vm10, %v8445_v23  ;;  %7827 = vmatmul.msk.bf16.gmra.mxu1 %vm667_vm10, %v8449_v51 }
 0xd00   :  { %7848 = vmatmul.msk.bf16.gmra.mxu3 %vm667_vm10, %v8454_v19 }
 0xd05   :  { %7808 = vmatmul.msk.bf16.gmra.mxu2 %vm667_vm10, %v8446_v22  ;;  %7828 = vmatmul.msk.bf16.gmra.mxu1 %vm667_vm10, %v8450_v56 }
 0xd52   :  { %v5267_v16 = vpop.f32.mrf.mxu1 }
 0xd53   :  { %v5369_v57 = vpop.f32.mrf.mxu3 }
 0xd58   :  { %v5141_v41 = vpop.f32.mrf.mxu2 }
 0xd59   :  { %v5193_v13 = vadd.f32 %v9506_v31, %v5141_v41 }
 0xd5a   :  { %v5269_v15 = vpop.f32.mrf.mxu1 }
 0xd5b   :  { %v5371_v45 = vpop.f32.mrf.mxu3  ;;  %v5287_v23 = vadd.f32 %v5267_v16, %v5193_v13 }
 0xd5d   :  { %v5389_v56 = vadd.f32 %v5369_v57, %v5287_v23 }
 0xd5f   :  { %v5397_v8 = vmax.f32 %v5389_v56, 0.0 }
 0xd60   :  { %v5143_v51 = vpop.f32.mrf.mxu2 }
 0xd61   :  { %v5194_v19 = vadd.f32 %v9510_v47, %v5143_v51 }
 0xd62   :  { %v5272_v22 = vpop.f32.mrf.mxu1 }
 0xd63   :  { %v5288_v27 = vadd.f32 %v5269_v15, %v5194_v19  ;;  %v5374_v1 = vpop.f32.mrf.mxu3 }
 0xd65   :  { %v5390_v2 = vadd.f32 %v5371_v45, %v5288_v27 }
 0xd67   :  { %v5398_v58 = vmax.f32 %v5390_v2, 0.0 }
 0xd68   :  { %v5146_v50 = vpop.f32.mrf.mxu2 }
 0xd69   :  { %v5405_v30 = vpack.c.bf16 %v5398_v58, %v5397_v8  ;;  %v5195_v14 = vadd.f32 %v9482_v9, %v5146_v50 }
 0xd6a   :  { %v5274_v20 = vpop.f32.mrf.mxu1 }
 0xd6b   :  { %5578 = vmatmul.bf16.vlgmr.msrb.gmra.mxu0 %v5405_v30  ;;  %5607 = vmatmul.bf16.vlgmr.msra.gmra.mxu2 %v5405_v30  ;;  %v5376_v31 = vpop.f32.mrf.mxu3  ;;  %v5289_v26 = vadd.f32 %v5272_v22, %v5195_v14 }
 0xd6c   :  { %5636 = vmatmul.bf16.vlgmr.msra.gmra.mxu1 %v5405_v30 }
 0xd6d   :  { %v5391_v62 = vadd.f32 %v5374_v1, %v5289_v26 }
 0xd6f   :  { %v5399_v18 = vmax.f32 %v5391_v62, 0.0 }
 0xd70   :  { %v5148_v33 = vpop.f32.mrf.mxu2 }
 0xd71   :  { %v5196_v47 = vadd.f32 %v9516_v63, %v5148_v33 }
 0xd72   :  { %v5277_v5 = vpop.f32.mrf.mxu1 }
 0xd73   :  { %v5290_v32 = vadd.f32 %v5274_v20, %v5196_v47  ;;  %v5379_v17 = vpop.f32.mrf.mxu3 }
 0xd75   :  { %v5392_v4 = vadd.f32 %v5376_v31, %v5290_v32 }
 0xd77   :  { %v5400_v59 = vmax.f32 %v5392_v4, 0.0 }
 0xd78   :  { %v5151_v46 = vpop.f32.mrf.mxu2 }
 0xd79   :  { %v5406_v6 = vpack.c.bf16 %v5400_v59, %v5399_v18  ;;  %v5197_v34 = vadd.f32 %v9491_v36, %v5151_v46 }
 0xd7a   :  { %v5279_v9 = vpop.f32.mrf.mxu1 }
 0xd7b   :  { %5583 = vmatmul.bf16.gmra.mxu0 %v5406_v6  ;;  %5612 = vmatmul.bf16.gmra.mxu2 %v5406_v6  ;;  %v5291_v29 = vadd.f32 %v5277_v5, %v5197_v34  ;;  %v5381_v25 = vpop.f32.mrf.mxu3 }
 0xd7c   :  { %5641 = vmatmul.bf16.gmra.mxu1 %v5406_v6 }
 0xd7d   :  { %v5393_v11 = vadd.f32 %v5379_v17, %v5291_v29 }
 0xd7f   :  { %v5401_v35 = vmax.f32 %v5393_v11, 0.0 }
 0xd80   :  { %v5153_v61 = vpop.f32.mrf.mxu2 }
 0xd81   :  { %v5198_v63 = vadd.f32 %v9512_v55, %v5153_v61 }
 0xd82   :  { %v5282_v40 = vpop.f32.mrf.mxu1 }
 0xd83   :  { %v5292_v21 = vadd.f32 %v5279_v9, %v5198_v63  ;;  %v5384_v49 = vpop.f32.mrf.mxu3 }
 0xd85   :  { %v5394_v42 = vadd.f32 %v5381_v25, %v5292_v21 }
 0xd87   :  { %v5402_v28 = vmax.f32 %v5394_v42, 0.0 }
 0xd88   :  { %v5156_v7 = vpop.f32.mrf.mxu2 }
 0xd89   :  { %v5407_v53 = vpack.c.bf16 %v5402_v28, %v5401_v35  ;;  %v5199_v36 = vadd.f32 %v9522_v0, %v5156_v7 }
 0xd8a   :  { %v5284_v43 = vpop.f32.mrf.mxu1 }
 0xd8b   :  { %5588 = vmatmul.bf16.gmra.mxu0 %v5407_v53  ;;  %5617 = vmatmul.bf16.gmra.mxu2 %v5407_v53  ;;  %v5293_v39 = vadd.f32 %v5282_v40, %v5199_v36  ;;  %v5386_v12 = vpop.f32.mrf.mxu3 }
 0xd8c   :  { %5646 = vmatmul.bf16.gmra.mxu1 %v5407_v53 }
 0xd8d   :  { %v5395_v55 = vadd.f32 %v5384_v49, %v5293_v39 }
 0xd8f   :  { %v5403_v52 = vmax.f32 %v5395_v55, 0.0 }
 0xd90   :  { %v5158_v10 = vpop.f32.mrf.mxu2 }
 0xd91   :  { %v5200_v37 = vadd.f32 %v9498_v24, %v5158_v10 }
 0xd93   :  { %v5294_v3 = vadd.f32 %v5284_v43, %v5200_v37 }
 0xd95   :  { %v5396_v60 = vadd.f32 %v5386_v12, %v5294_v3 }
 0xd97   :  { %v5404_v38 = vmax.f32 %v5396_v60, 0.0 }
 0xd99   :  { %v5408_v44 = vpack.c.bf16 %v5404_v38, %v5403_v52 }
 0xd9b   :  { %5593 = vmatmul.bf16.gmra.mxu0 %v5408_v44  ;;  %5622 = vmatmul.bf16.gmra.mxu2 %v5408_v44 }
 0xd9c   :  { %5651 = vmatmul.bf16.gmra.mxu1 %v5408_v44 }
 0xde8   :  { %v5579_v48 = vpop.f32.mrf.mxu0 }
 0xde9   :  { %v9645_v0 = vpop.f32.mrf.mxu1 }
 0xdea   :  { %v5658_v36 = vpack.c.bf16 %v9645_v0, %v9645_v0 }
 0xdee   :  { %v5608_v54 = vpop.f32.mrf.mxu2 }
 0xdef   :  { %v9647_v16 = vpack.c.bf16 %v5608_v54, %v5579_v48  ;;  %v5938_v48 = vunpack.c.l.b16 %v5658_v36  ;;  %v8504_v36 = vld [vmem:[#allocation5 + $0x728] sm:$0xf0] }
 0xdf0   :  { %v5581_v57 = vpop.f32.mrf.mxu0 }
 0xdf1   :  { %v5639_v41 = vpop.f32.mrf.mxu1 }
 0xdf2   :  { %v5660_v21 = vpack.c.bf16 %v5639_v41, %v5639_v41 }
 0xdf4   :  { %v5939_v55 = vunpack.c.l.b16 %v5660_v21 }
 0xdf6   :  { %v5610_v24 = vpop.f32.mrf.mxu2  ;;  %v5946_v0 = vpack.c.b16 %v5939_v55, %v5938_v48  ;;  %v8505_v55 = vld [vmem:[#allocation5 + $0x730] sm:$0xf0]  ;;  %v8045_v48 = vld [vmem:[#allocation5 + $0x714] sm:$0xf0] }
 0xdf7   :  { %v5659_v3 = vpack.c.bf16 %v5610_v24, %v5581_v57  ;;  %v5710_v57 = vunpack.c.l.b16 %v9647_v16  ;;  %v5836_v24 = vunpack.c.h.b16 %v9647_v16  ;;  %v8091_v16 = vld [vmem:[#allocation5 + $0x768] sm:$0xf] }
 0xdf8   :  { %v5584_v15 = vpop.f32.mrf.mxu0 }
 0xdf9   :  { %v5642_v13 = vpop.f32.mrf.mxu1 }
 0xdfa   :  { %v5662_v34 = vpack.c.bf16 %v5642_v13, %v5642_v13  ;;  %v5711_v13 = vunpack.c.l.b16 %v5659_v3 }
 0xdfc   :  { %v5940_v39 = vunpack.c.l.b16 %v5662_v34  ;;  %v8507_v34 = vld [vmem:[#allocation5 + $0x740] sm:$0xf0] }
 0xdfe   :  { %v5613_v45 = vpop.f32.mrf.mxu2 }
 0xdff   :  { %v5661_v10 = vpack.c.bf16 %v5613_v45, %v5584_v15  ;;  %v5837_v15 = vunpack.c.h.b16 %v5659_v3 }
 0xe00   :  { %v5586_v23 = vpop.f32.mrf.mxu0 }
 0xe01   :  { %v5644_v51 = vpop.f32.mrf.mxu1  ;;  %v5712_v54 = vunpack.c.l.b16 %v5661_v10  ;;  %v5838_v41 = vunpack.c.h.b16 %v5661_v10 }
 0xe02   :  { %v5664_v5 = vpack.c.bf16 %v5644_v51, %v5644_v51  ;;  %v8487_v51 = vld [vmem:[#allocation2 + $0x340] sm:$0xff] }
 0xe04   :  { %v5941_v42 = vunpack.c.l.b16 %v5664_v5 }
 0xe06   :  { %v5615_v19 = vpop.f32.mrf.mxu2  ;;  %v5947_v12 = vpack.c.b16 %v5941_v42, %v5940_v39  ;;  %v8503_v39 = vld [vmem:[#allocation5 + $0x724] sm:$0xf] }
 0xe07   :  { %v5663_v35 = vpack.c.bf16 %v5615_v19, %v5586_v23  ;;  %v5718_v19 = vpack.c.b16 %v5711_v13, %v5710_v57  ;;  %v8033_v57 = vld [vmem:[#allocation5 + $0x6fc] sm:$0xf0] }
 0xe08   :  { %v5589_v22 = vpop.f32.mrf.mxu0 }
 0xe09   :  { %v5647_v56 = vpop.f32.mrf.mxu1  ;;  %v5713_v60 = vunpack.c.l.b16 %v5663_v35  ;;  %v5839_v52 = vunpack.c.h.b16 %v5663_v35  ;;  %v8481_v35 = vld [vmem:[#allocation2 + $0x310] sm:$0xff] }
 0xe0a   :  { %v5666_v33 = vpack.c.bf16 %v5647_v56, %v5647_v56  ;;  %v8479_v56 = vld [vmem:[#allocation2 + $0x300] sm:$0xff] }
 0xe0b   :  { %v5719_v45 = vpack.c.b16 %v5713_v60, %v5712_v54  ;;  %v5845_v23 = vpack.c.b16 %v5839_v52, %v5838_v41  ;;  %v8043_v60 = vld [vmem:[#allocation5 + $0x708] sm:$0xf]  ;;  %v8501_v52 = vld [vmem:[#allocation5 + $0x710] sm:$0xf0]  ;;  %v8051_v54 = vld [vmem:[#allocation5 + $0x710] sm:$0xf] }
 0xe0c   :  { %v5942_v9 = vunpack.c.l.b16 %v5666_v33  ;;  %v8502_v41 = vld [vmem:[#allocation5 + $0x718] sm:$0xf0] }
 0xe0d   :  { %v8052_v13 = vor.u32 %v8502_v41, %v8051_v54 }
 0xe0e   :  { %v5618_v27 = vpop.f32.mrf.mxu2 }
 0xe0f   :  { %v5665_v29 = vpack.c.bf16 %v5618_v27, %v5589_v22  ;;  %v5844_v22 = vpack.c.b16 %v5837_v15, %v5836_v24  ;;  %v8483_v27 = vld [vmem:[#allocation2 + $0x320] sm:$0xff]  ;;  %v8031_v15 = vld [vmem:[#allocation5 + $0x6f0] sm:$0xf]  ;;  %v8039_v24 = vld [vmem:[#allocation5 + $0x6f8] sm:$0xf] }
 0xe10   :  { %v5591_v2 = vpop.f32.mrf.mxu0 }
 0xe11   :  { %v5649_v1 = vpop.f32.mrf.mxu1  ;;  %v5714_v37 = vunpack.c.l.b16 %v5665_v29  ;;  %v5840_v43 = vunpack.c.h.b16 %v5665_v29  ;;  %v8069_v29 = vld [vmem:[#allocation5 + $0x744] sm:$0xf0] }
 0xe12   :  { %v5668_v31 = vpack.c.bf16 %v5649_v1, %v5649_v1  ;;  %v8488_v1 = vld [vmem:[#allocation2 + $0x348] sm:$0xff] }
 0xe14   :  { %v5943_v4 = vunpack.c.l.b16 %v5668_v31  ;;  %v8514_v31 = vld [vmem:[#allocation5 + $0x778] sm:$0xf0] }
 0xe16   :  { %v5620_v8 = vpop.f32.mrf.mxu2  ;;  %v5948_v28 = vpack.c.b16 %v5943_v4, %v5942_v9  ;;  %v8081_v4 = vld [vmem:[#allocation5 + $0x75c] sm:$0xf0]  ;;  %v8506_v9 = vld [vmem:[#allocation5 + $0x73c] sm:$0xf] }
 0xe17   :  { %v5667_v46 = vpack.c.bf16 %v5620_v8, %v5591_v2  ;;  %v8480_v2 = vld [vmem:[#allocation2 + $0x308] sm:$0xff]  ;;  %v8072_v21 = vor.u32 %v8506_v9, %v8069_v29 }
 0xe18   :  { %v5594_v50 = vpop.f32.mrf.mxu0  ;;  %v8484_v8 = vld [vmem:[#allocation2 + $0x328] sm:$0xff] }
 0xe19   :  { %v5652_v58 = vpop.f32.mrf.mxu1  ;;  %v5715_v7 = vunpack.c.l.b16 %v5667_v46  ;;  %v5841_v40 = vunpack.c.h.b16 %v5667_v46 }
 0xe1a   :  { %v5670_v20 = vpack.c.bf16 %v5652_v58, %v5652_v58  ;;  %v8513_v58 = vld [vmem:[#allocation5 + $0x770] sm:$0xf0] }
 0xe1b   :  { %v5720_v38 = vpack.c.b16 %v5715_v7, %v5714_v37  ;;  %v5846_v44 = vpack.c.b16 %v5841_v40, %v5840_v43  ;;  %v8490_v7 = vld [vmem:[#allocation2 + $0x358] sm:$0xff]  ;;  %v8057_v37 = vld [vmem:[#allocation5 + $0x72c] sm:$0xf0]  ;;  %v8063_v43 = vld [vmem:[#allocation5 + $0x728] sm:$0xf] }
 0xe1c   :  { %v5944_v47 = vunpack.c.l.b16 %v5670_v20  ;;  %v8093_v20 = vld [vmem:[#allocation5 + $0x774] sm:$0xf0]  ;;  %v8060_v3 = vor.u32 %v8503_v39, %v8057_v37  ;;  %v9729_v39 = vld [vmem:[#allocation14_spill] sm:$0xff] }
 0xe1d   :  { %v8482_v40 = vld [vmem:[#allocation2 + $0x318] sm:$0xff] }
 0xe1e   :  { %v5623_v30 = vpop.f32.mrf.mxu2 }
 0xe1f   :  { %v5669_v32 = vpack.c.bf16 %v5623_v30, %v5594_v50  ;;  %v8512_v50 = vld [vmem:[#allocation5 + $0x76c] sm:$0xf]  ;;  %v8092_v30 = vor.u32 %v8513_v58, %v8091_v16  ;;  %v8021_v16 = vld [vmem:[#allocation5 + $0x6e4] sm:$0xf0]  ;;  %v8027_v58 = vld [vmem:[#allocation5 + $0x6e0] sm:$0xf] }
 0xe20   :  { %v5596_v17 = vpop.f32.mrf.mxu0 }
 0xe21   :  { %v5654_v14 = vpop.f32.mrf.mxu1  ;;  %v5716_v61 = vunpack.c.l.b16 %v5669_v32  ;;  %v5842_v25 = vunpack.c.h.b16 %v5669_v32  ;;  %v8509_v32 = vld [vmem:[#allocation5 + $0x754] sm:$0xf]  ;;  %6176 = vmatpush.bf16.msrb.mxu1 %v8092_v30 }
 0xe22   :  { %v5672_v26 = vpack.c.bf16 %v5654_v14, %v5654_v14  ;;  %v8099_v14 = vld [vmem:[#allocation5 + $0x770] sm:$0xf] }
 0xe23   :  { %v8100_v33 = vor.u32 %v8514_v31, %v8099_v14  ;;  %v8007_v14 = vld [vmem:[#allocation5 + $0x6c0] sm:$0xf]  ;;  %v8492_v31 = vld [vmem:[#allocation5 + $0x6c8] sm:$0xf0] }
 0xe24   :  { %v5945_v62 = vunpack.c.l.b16 %v5672_v26  ;;  %v8096_v26 = vor.u32 %v8512_v50, %v8093_v20  ;;  %v8496_v50 = vld [vmem:[#allocation5 + $0x6e8] sm:$0xf0] }
 0xe25   :  { %v8028_v20 = vor.u32 %v8496_v50, %v8027_v58 }
 0xe26   :  { %v5949_v18 = vpack.c.b16 %v5945_v62, %v5944_v47  ;;  %v5625_v59 = vpop.f32.mrf.mxu2  ;;  %v8079_v47 = vld [vmem:[#allocation5 + $0x750] sm:$0xf]  ;;  %v8510_v62 = vld [vmem:[#allocation5 + $0x758] sm:$0xf0] }
 0xe27   :  { %v5671_v6 = vpack.c.bf16 %v5625_v59, %v5596_v17  ;;  %v8080_v5 = vor.u32 %v8510_v62, %v8079_v47  ;;  %v8087_v17 = vld [vmem:[#allocation5 + $0x758] sm:$0xf]  ;;  %v8084_v59 = vor.u32 %v8509_v32, %v8081_v4  ;;  %v8009_v47 = vld [vmem:[#allocation5 + $0x6cc] sm:$0xf0]  ;;  %v8015_v62 = vld [vmem:[#allocation5 + $0x6c8] sm:$0xf] }
 0xe28   :  { %5970 = vmatpush.bf16.msrb.mxu2 %v5949_v18  ;;  %v8511_v18 = vld [vmem:[#allocation5 + $0x760] sm:$0xf0]  ;;  %v8493_v32 = vld [vmem:[#allocation5 + $0x6d0] sm:$0xf0] }
 0xe29   :  { %v5717_v63 = vunpack.c.l.b16 %v5671_v6  ;;  %v5843_v11 = vunpack.c.h.b16 %v5671_v6  ;;  %v8088_v46 = vor.u32 %v8511_v18, %v8087_v17  ;;  %v8067_v6 = vld [vmem:[#allocation5 + $0x738] sm:$0xf]  ;;  %6177 = vmatpush.bf16.msrb.mxu1 %v8080_v5  ;;  %v8016_v4 = vor.u32 %v8493_v32, %v8015_v62 }
 0xe2b   :  { %v5721_v53 = vpack.c.b16 %v5717_v63, %v5716_v61  ;;  %v5847_v49 = vpack.c.b16 %v5843_v11, %v5842_v25  ;;  %v8075_v61 = vld [vmem:[#allocation5 + $0x740] sm:$0xf]  ;;  %v8508_v25 = vld [vmem:[#allocation5 + $0x748] sm:$0xf0]  ;;  %v8489_v63 = vld [vmem:[#allocation2 + $0x350] sm:$0xff]  ;;  %v8068_v11 = vor.u32 %v8507_v34, %v8067_v6 }
 0xe2c   :  { %5971 = vmatpush.bf16.msrb.mxu2 %v5948_v28  ;;  %v8076_v42 = vor.u32 %v8508_v25, %v8075_v61  ;;  %v8485_v28 = vld [vmem:[#allocation2 + $0x330] sm:$0xff] }
 0xe2d   :  { %5742 = vmatpush.bf16.msrb.mxu3 %v5721_v53  ;;  %5868 = vmatpush.bf16.msra.mxu0 %v5847_v49  ;;  %v8486_v53 = vld [vmem:[#allocation2 + $0x338] sm:$0xff]  ;;  %v8055_v49 = vld [vmem:[#allocation5 + $0x720] sm:$0xf]  ;;  %v9727_v6 = vld [vmem:[#allocation16_spill] sm:$0xff] }
 0xe2e   :  { %6178 = vmatpush.bf16.msrb.mxu1 %v8068_v11  ;;  %v8056_v10 = vor.u32 %v8504_v36, %v8055_v49  ;;  %v9728_v25 = vld [vmem:[#allocation20_spill] sm:$0xff] }
 0xe30   :  { %5972 = vmatpush.bf16.msrb.mxu2 %v5947_v12  ;;  %v8064_v12 = vor.u32 %v8505_v55, %v8063_v43 }
 0xe31   :  { %5743 = vmatpush.bf16.msrb.mxu3 %v5720_v38  ;;  %5869 = vmatpush.bf16.msra.mxu0 %v5846_v44  ;;  %v8500_v38 = vld [vmem:[#allocation5 + $0x70c] sm:$0xf]  ;;  %v8044_v44 = vor.u32 %v8501_v52, %v8043_v60 }
 0xe32   :  { %6179 = vmatpush.bf16.msrb.mxu1 %v8056_v10 }
 0xe34   :  { %5973 = vmatpush.bf16.msrb.mxu2 %v5946_v0  ;;  %v8048_v0 = vor.u32 %v8500_v38, %v8045_v48 }
 0xe35   :  { %5744 = vmatpush.bf16.msrb.mxu3 %v5719_v45  ;;  %5870 = vmatpush.bf16.msra.mxu0 %v5845_v23  ;;  %v8498_v45 = vld [vmem:[#allocation5 + $0x6f8] sm:$0xf0]  ;;  %v8497_v23 = vld [vmem:[#allocation5 + $0x6f4] sm:$0xf] }
 0xe36   :  { %6180 = vmatpush.bf16.msrb.mxu1 %v8044_v44 }
 0xe37   :  { %8001 = vmatmul.msk.bf16.vlgmr.msrb.gmra.mxu2 %vm667_vm10, %v8487_v51  ;;  %v8032_v51 = vor.u32 %v8498_v45, %v8031_v15  ;;  %v9731_v15 = vld [vmem:[#allocation15_spill] sm:$0xff] }
 0xe39   :  { %5745 = vmatpush.bf16.msrb.mxu3 %v5718_v19  ;;  %5871 = vmatpush.bf16.msra.mxu0 %v5844_v22  ;;  %v8499_v19 = vld [vmem:[#allocation5 + $0x700] sm:$0xf0]  ;;  %v8036_v22 = vor.u32 %v8497_v23, %v8033_v57 }
 0xe3a   :  { %6181 = vmatpush.bf16.msrb.mxu1 %v8032_v51 }
 0xe3c   :  { %7961 = vmatmul.msk.bf16.vlgmr.msrb.gmra.mxu3 %vm667_vm10, %v8479_v56  ;;  %7981 = vmatmul.msk.bf16.vlgmr.msra.gmra.mxu0 %vm667_vm10, %v8483_v27  ;;  %v8040_v56 = vor.u32 %v8499_v19, %v8039_v24  ;;  %v8019_v27 = vld [vmem:[#allocation5 + $0x6d8] sm:$0xf]  ;;  %v9732_v19 = vld [vmem:[#allocation18_spill] sm:$0xff] }
 0xe3d   :  { %6205 = vmatpush.bf16.msra.mxu3 %v8096_v26  ;;  %6234 = vmatpush.bf16.msrb.mxu0 %v8100_v33  ;;  %v8491_v26 = vld [vmem:[#allocation5 + $0x6c4] sm:$0xf]  ;;  %v8008_v33 = vor.u32 %v8492_v31, %v8007_v14 }
 0xe3e   :  { %v8012_v5 = vor.u32 %v8491_v26, %v8009_v47 }
 0xe41   :  { %6206 = vmatpush.bf16.msra.mxu3 %v8084_v59  ;;  %6235 = vmatpush.bf16.msrb.mxu0 %v8088_v46 }
 0xe45   :  { %6207 = vmatpush.bf16.msra.mxu3 %v8072_v21  ;;  %6236 = vmatpush.bf16.msrb.mxu0 %v8076_v42 }
 0xe47   :  { %8002 = vmatmul.msk.bf16.gmra.mxu2 %vm667_vm10, %v8488_v1  ;;  %v8495_v1 = vld [vmem:[#allocation5 + $0x6e0] sm:$0xf0] }
 0xe49   :  { %6208 = vmatpush.bf16.msra.mxu3 %v8060_v3  ;;  %6237 = vmatpush.bf16.msrb.mxu0 %v8064_v12  ;;  %v9730_v3 = vld [vmem:[#allocation21_spill] sm:$0xff] }
 0xe4c   :  { %7962 = vmatmul.msk.bf16.gmra.mxu3 %vm667_vm10, %v8480_v2  ;;  %7982 = vmatmul.msk.bf16.gmra.mxu0 %vm667_vm10, %v8484_v8  ;;  %v8494_v2 = vld [vmem:[#allocation5 + $0x6dc] sm:$0xf]  ;;  %v8020_v8 = vor.u32 %v8495_v1, %v8019_v27 }
 0xe4d   :  { %6209 = vmatpush.bf16.msra.mxu3 %v8048_v0  ;;  %6238 = vmatpush.bf16.msrb.mxu0 %v8052_v13  ;;  %v8024_v30 = vor.u32 %v8494_v2, %v8021_v16 }
 0xe4e   :  { %6182 = vmatpush.bf16.msrb.mxu1 %v8020_v8 }
 0xe51   :  { %6210 = vmatpush.bf16.msra.mxu3 %v8036_v22  ;;  %6239 = vmatpush.bf16.msrb.mxu0 %v8040_v56 }
 0xe52   :  { %6183 = vmatpush.bf16.msrb.mxu1 %v8008_v33  ;;  %v9734_v33 = vld [vmem:[#allocation17_spill] sm:$0xff] }
 0xe55   :  { %6211 = vmatpush.bf16.msra.mxu3 %v8024_v30  ;;  %6240 = vmatpush.bf16.msrb.mxu0 %v8028_v20  ;;  %v9733_v20 = vld [vmem:[#allocation22_spill] sm:$0xff] }
 0xe57   :  { %8003 = vmatmul.msk.bf16.gmra.mxu2 %vm667_vm10, %v8489_v63 }
 0xe59   :  { %6212 = vmatpush.bf16.msra.mxu3 %v8012_v5  ;;  %6241 = vmatpush.bf16.msrb.mxu0 %v8016_v4 }
 0xe5c   :  { %7963 = vmatmul.msk.bf16.gmra.mxu3 %vm667_vm10, %v8481_v35  ;;  %7983 = vmatmul.msk.bf16.gmra.mxu0 %vm667_vm10, %v8485_v28 }
 0xe67   :  { %8004 = vmatmul.msk.bf16.gmra.mxu2 %vm667_vm10, %v8490_v7 }
 0xe6c   :  { %7964 = vmatmul.msk.bf16.gmra.mxu3 %vm667_vm10, %v8482_v40  ;;  %7984 = vmatmul.msk.bf16.gmra.mxu0 %vm667_vm10, %v8486_v53 }
 0xeb9   :  { %v5873_v17 = vpop.f32.mrf.mxu0 }
 0xeba   :  { %v5975_v18 = vpop.f32.mrf.mxu2 }
 0xebf   :  { %v5747_v59 = vpop.f32.mrf.mxu3 }
 0xec0   :  { %v5799_v34 = vadd.f32 %v9727_v6, %v5747_v59 }
 0xec1   :  { %v5875_v46 = vpop.f32.mrf.mxu0 }
 0xec2   :  { %v5977_v9 = vpop.f32.mrf.mxu2  ;;  %v5893_v29 = vadd.f32 %v5873_v17, %v5799_v34 }
 0xec4   :  { %v5995_v21 = vadd.f32 %v5975_v18, %v5893_v29 }
 0xec6   :  { %v6003_v7 = vmax.f32 %v5995_v21, 0.0 }
 0xec7   :  { %v5749_v61 = vpop.f32.mrf.mxu3 }
 0xec8   :  { %v5800_v63 = vadd.f32 %v9728_v25, %v5749_v61 }
 0xec9   :  { %v5878_v11 = vpop.f32.mrf.mxu0 }
 0xeca   :  { %v5894_v42 = vadd.f32 %v5875_v46, %v5800_v63  ;;  %v5980_v35 = vpop.f32.mrf.mxu2 }
 0xecc   :  { %v5996_v28 = vadd.f32 %v5977_v9, %v5894_v42 }
 0xece   :  { %v6004_v40 = vmax.f32 %v5996_v28, 0.0 }
 0xecf   :  { %v5752_v53 = vpop.f32.mrf.mxu3 }
 0xed0   :  { %v6011_v49 = vpack.c.bf16 %v6004_v40, %v6003_v7  ;;  %v5801_v10 = vadd.f32 %v9729_v39, %v5752_v53 }
 0xed1   :  { %v5880_v36 = vpop.f32.mrf.mxu0 }
 0xed2   :  { %6184 = vmatmul.bf16.vlgmr.msrb.gmra.mxu1 %v6011_v49  ;;  %6213 = vmatmul.bf16.vlgmr.msra.gmra.mxu3 %v6011_v49  ;;  %v5982_v37 = vpop.f32.mrf.mxu2  ;;  %v5895_v43 = vadd.f32 %v5878_v11, %v5801_v10 }
 0xed3   :  { %6242 = vmatmul.bf16.vlgmr.msrb.gmra.mxu0 %v6011_v49 }
 0xed4   :  { %v5997_v60 = vadd.f32 %v5980_v35, %v5895_v43 }
 0xed6   :  { %v6005_v54 = vmax.f32 %v5997_v60, 0.0 }
 0xed7   :  { %v5754_v55 = vpop.f32.mrf.mxu3 }
 0xed8   :  { %v5802_v12 = vadd.f32 %v9730_v3, %v5754_v55  ;;  %v8738_v55 = vmov 2  }
 0xed9   :  { %v5883_v38 = vpop.f32.mrf.mxu0  ;;  %8597 = vset.pattern.permute.xlu2 %v8738_v55  ;;  %8599 = vset.pattern.permute.xlu0 %v8738_v55  ;;  %v8517_v55 = vld [vmem:[#allocation2 + $0x370] sm:$0xff] }
 0xeda   :  { %v5896_v52 = vadd.f32 %v5880_v36, %v5802_v12  ;;  %v5985_v48 = vpop.f32.mrf.mxu2  ;;  %v8640_v12 = vld [vmem:[%s9707_s1] sm:$0xff]  ;;  %s8739_s1 = smov [#allocation7]  }
 0xedb   :  { %6541 = vperm.xlu2 %8597, %v8640_v12   ;;  %v8526_v12 = vld [vmem:[#allocation2 + $0x3b8] sm:$0xff]  ;;  %s6556_s2 = sshll.u32 %s8739_s1, 4  ;;  %s6557_s2 = int_to_ptr.vmem [resolvable:$true] %s6556_s2 }
 0xedc   :  { %v5998_v44 = vadd.f32 %v5982_v37, %v5896_v52 }
 0xede   :  { %v6006_v41 = vmax.f32 %v5998_v44, 0.0 }
 0xedf   :  { %v5757_v0 = vpop.f32.mrf.mxu3 }
 0xee0   :  { %v6012_v13 = vpack.c.bf16 %v6006_v41, %v6005_v54  ;;  %v5803_v45 = vadd.f32 %v9731_v15, %v5757_v0 }
 0xee1   :  { %v5885_v23 = vpop.f32.mrf.mxu0 }
 0xee2   :  { %6189 = vmatmul.bf16.gmra.mxu1 %v6012_v13  ;;  %6218 = vmatmul.bf16.gmra.mxu3 %v6012_v13  ;;  %v5897_v51 = vadd.f32 %v5883_v38, %v5803_v45  ;;  %v5987_v24 = vpop.f32.mrf.mxu2 }
 0xee3   :  { %6247 = vmatmul.bf16.gmra.mxu0 %v6012_v13 }
 0xee4   :  { %v5999_v56 = vadd.f32 %v5985_v48, %v5897_v51 }
 0xee6   :  { %v6007_v2 = vmax.f32 %v5999_v56, 0.0 }
 0xee7   :  { %v5759_v57 = vpop.f32.mrf.mxu3 }
 0xee8   :  { %v5804_v22 = vadd.f32 %v9732_v19, %v5759_v57 }
 0xee9   :  { %v5888_v58 = vpop.f32.mrf.mxu0 }
 0xeea   :  { %v5898_v27 = vadd.f32 %v5885_v23, %v5804_v22  ;;  %v5990_v30 = vpop.f32.mrf.mxu2 }
 0xeec   :  { %v6000_v1 = vadd.f32 %v5987_v24, %v5898_v27 }
 0xeee   :  { %v6008_v8 = vmax.f32 %v6000_v1, 0.0 }
 0xeef   :  { %v5762_v16 = vpop.f32.mrf.mxu3 }
 0xef0   :  { %v6013_v50 = vpack.c.bf16 %v6008_v8, %v6007_v2  ;;  %v5805_v14 = vadd.f32 %v9733_v20, %v5762_v16 }
 0xef1   :  { %v5890_v62 = vpop.f32.mrf.mxu0 }
 0xef2   :  { %6194 = vmatmul.bf16.gmra.mxu1 %v6013_v50  ;;  %6223 = vmatmul.bf16.gmra.mxu3 %v6013_v50  ;;  %v5899_v31 = vadd.f32 %v5888_v58, %v5805_v14  ;;  %v5992_v4 = vpop.f32.mrf.mxu2 }
 0xef3   :  { %6252 = vmatmul.bf16.gmra.mxu0 %v6013_v50 }
 0xef4   :  { %v6001_v32 = vadd.f32 %v5990_v30, %v5899_v31 }
 0xef6   :  { %v6009_v18 = vmax.f32 %v6001_v32, 0.0 }
 0xef7   :  { %v5764_v26 = vpop.f32.mrf.mxu3 }
 0xef8   :  { %v5806_v47 = vadd.f32 %v9734_v33, %v5764_v26 }
 0xefa   :  { %v5900_v5 = vadd.f32 %v5890_v62, %v5806_v47 }
 0xefc   :  { %v6002_v17 = vadd.f32 %v5992_v4, %v5900_v5 }
 0xefe   :  { %v6010_v59 = vmax.f32 %v6002_v17, 0.0 }
 0xf00   :  { %v6014_v46 = vpack.c.bf16 %v6010_v59, %v6009_v18 }
 0xf02   :  { %6199 = vmatmul.bf16.gmra.mxu1 %v6014_v46  ;;  %6228 = vmatmul.bf16.gmra.mxu3 %v6014_v46 }
 0xf03   :  { %6257 = vmatmul.bf16.gmra.mxu0 %v6014_v46 }
 0xf4f   :  { %v6185_v6 = vpop.f32.mrf.mxu1 }
 0xf50   :  { %v9673_v34 = vpop.f32.mrf.mxu0 }
 0xf51   :  { %v6264_v33 = vpack.c.bf16 %v9673_v34, %v9673_v34 }
 0xf55   :  { %v6214_v9 = vpop.f32.mrf.mxu3 }
 0xf56   :  { %v9675_v29 = vpack.c.bf16 %v6214_v9, %v6185_v6 }
 0xf57   :  { %v9677_v61 = vpop.f32.mrf.mxu1 }
 0xf58   :  { %v6245_v25 = vpop.f32.mrf.mxu0 }
 0xf59   :  { %v6266_v16 = vpack.c.bf16 %v6245_v25, %v6245_v25  ;;  %v6488_v25 = vunpack.c.l.b16 %v6264_v33 }
 0xf5b   :  { %v6489_v4 = vunpack.c.l.b16 %v6266_v16 }
 0xf5d   :  { %v6216_v63 = vpop.f32.mrf.mxu3  ;;  %v6496_v34 = vpack.c.b16 %v6489_v4, %v6488_v25 }
 0xf5e   :  { %v6265_v17 = vpack.c.bf16 %v6216_v63, %v9677_v61  ;;  %v6316_v61 = vunpack.c.l.b16 %v9675_v29  ;;  %v6400_v63 = vunpack.c.h.b16 %v9675_v29  ;;  %v8525_v29 = vld [vmem:[#allocation2 + $0x3b0] sm:$0xff] }
 0xf5f   :  { %v6190_v11 = vpop.f32.mrf.mxu1 }
 0xf60   :  { %v6248_v21 = vpop.f32.mrf.mxu0 }
 0xf61   :  { %v6268_v19 = vpack.c.bf16 %v6248_v21, %v6248_v21 }
 0xf63   :  { %v6490_v47 = vunpack.c.l.b16 %v6268_v19 }
 0xf65   :  { %v6219_v42 = vpop.f32.mrf.mxu3 }
 0xf66   :  { %v6267_v62 = vpack.c.bf16 %v6219_v42, %v6190_v11  ;;  %v6317_v11 = vunpack.c.l.b16 %v6265_v17  ;;  %v6401_v42 = vunpack.c.h.b16 %v6265_v17 }
 0xf67   :  { %v6192_v35 = vpop.f32.mrf.mxu1 }
 0xf68   :  { %v6250_v28 = vpop.f32.mrf.mxu0  ;;  %v6318_v21 = vunpack.c.l.b16 %v6267_v62 }
 0xf69   :  { %v6270_v13 = vpack.c.bf16 %v6250_v28, %v6250_v28 }
 0xf6b   :  { %v6491_v58 = vunpack.c.l.b16 %v6270_v13 }
 0xf6d   :  { %v6221_v7 = vpop.f32.mrf.mxu3  ;;  %v6497_v18 = vpack.c.b16 %v6491_v58, %v6490_v47 }
 0xf6e   :  { %v6269_v50 = vpack.c.bf16 %v6221_v7, %v6192_v35  ;;  %v6402_v35 = vunpack.c.h.b16 %v6267_v62 }
 0xf6f   :  { %v6195_v40 = vpop.f32.mrf.mxu1 }
 0xf70   :  { %v6253_v53 = vpop.f32.mrf.mxu0  ;;  %v6319_v59 = vunpack.c.l.b16 %v6269_v50  ;;  %v6403_v46 = vunpack.c.h.b16 %v6269_v50 }
 0xf71   :  { %v6272_v48 = vpack.c.bf16 %v6253_v53, %v6253_v53  ;;  %v6324_v53 = vpack.c.b16 %v6317_v11, %v6316_v61 }
 0xf72   :  { %v6325_v28 = vpack.c.b16 %v6319_v59, %v6318_v21  ;;  %v6409_v7 = vpack.c.b16 %v6403_v46, %v6402_v35 }
 0xf73   :  { %v6492_v22 = vunpack.c.l.b16 %v6272_v48 }
 0xf75   :  { %v6224_v49 = vpop.f32.mrf.mxu3 }
 0xf76   :  { %v6271_v56 = vpack.c.bf16 %v6224_v49, %v6195_v40  ;;  %v8523_v40 = vld [vmem:[#allocation2 + $0x3a0] sm:$0xff]  ;;  %v6408_v49 = vpack.c.b16 %v6401_v42, %v6400_v63 }
 0xf77   :  { %v6197_v39 = vpop.f32.mrf.mxu1 }
 0xf78   :  { %v6255_v36 = vpop.f32.mrf.mxu0  ;;  %v6320_v32 = vunpack.c.l.b16 %v6271_v56  ;;  %v6404_v5 = vunpack.c.h.b16 %v6271_v56  ;;  %v9737_v56 = vld [vmem:[#allocation12_spill] sm:$0xff] }
 0xf79   :  { %v6274_v38 = vpack.c.bf16 %v6255_v36, %v6255_v36  ;;  %v8515_v36 = vld [vmem:[#allocation2 + $0x360] sm:$0xff] }
 0xf7b   :  { %v6493_v15 = vunpack.c.l.b16 %v6274_v38 }
 0xf7d   :  { %v6226_v10 = vpop.f32.mrf.mxu3  ;;  %v6498_v30 = vpack.c.b16 %v6493_v15, %v6492_v22 }
 0xf7e   :  { %v6273_v57 = vpack.c.bf16 %v6226_v10, %v6197_v39  ;;  %v8519_v39 = vld [vmem:[#allocation2 + $0x380] sm:$0xff]  ;;  %v8524_v10 = vld [vmem:[#allocation2 + $0x3a8] sm:$0xff] }
 0xf7f   :  { %v6200_v43 = vpop.f32.mrf.mxu1 }
 0xf80   :  { %v6258_v37 = vpop.f32.mrf.mxu0  ;;  %v6321_v20 = vunpack.c.l.b16 %v6273_v57  ;;  %v6405_v14 = vunpack.c.h.b16 %v6273_v57 }
 0xf81   :  { %v6276_v60 = vpack.c.bf16 %v6258_v37, %v6258_v37  ;;  %v8516_v37 = vld [vmem:[#allocation2 + $0x368] sm:$0xff] }
 0xf82   :  { %v6326_v6 = vpack.c.b16 %v6321_v20, %v6320_v32  ;;  %v6410_v9 = vpack.c.b16 %v6405_v14, %v6404_v5 }
 0xf83   :  { %v6494_v54 = vunpack.c.l.b16 %v6276_v60  ;;  %v8518_v60 = vld [vmem:[#allocation2 + $0x378] sm:$0xff] }
 0xf85   :  { %v6229_v3 = vpop.f32.mrf.mxu3 }
 0xf86   :  { %v6275_v0 = vpack.c.bf16 %v6229_v3, %v6200_v43  ;;  %v8520_v43 = vld [vmem:[#allocation2 + $0x388] sm:$0xff]  ;;  %v8521_v3 = vld [vmem:[#allocation2 + $0x390] sm:$0xff] }
 0xf87   :  { %v6202_v45 = vpop.f32.mrf.mxu1 }
 0xf88   :  { %v6260_v52 = vpop.f32.mrf.mxu0  ;;  %v6322_v27 = vunpack.c.l.b16 %v6275_v0  ;;  %v6406_v1 = vunpack.c.h.b16 %v6275_v0 }
 0xf89   :  { %v6278_v44 = vpack.c.bf16 %v6260_v52, %v6260_v52  ;;  %v8522_v52 = vld [vmem:[#allocation2 + $0x398] sm:$0xff] }
 0xf8b   :  { %v6495_v41 = vunpack.c.l.b16 %v6278_v44 }
 0xf8d   :  { %v6499_v23 = vpack.c.b16 %v6495_v41, %v6494_v54  ;;  %v6231_v51 = vpop.f32.mrf.mxu3  ;;  %v9735_v54 = vld [vmem:[#allocation19_spill] sm:$0xff] }
 0xf8e   :  { %v6277_v24 = vpack.c.bf16 %v6231_v51, %v6202_v45  ;;  %v9736_v51 = vld [vmem:[#allocation13_spill] sm:$0xff] }
 0xf8f   :  { %6520 = vmatpush.bf16.msrb.mxu3 %v6499_v23  ;;  %v6542_v23 = vpop.permute.xlu2 %6541 }
 0xf90   :  { %v6323_v2 = vunpack.c.l.b16 %v6277_v24  ;;  %v6407_v8 = vunpack.c.h.b16 %v6277_v24 }
 0xf92   :  { %v6327_v31 = vpack.c.b16 %v6323_v2, %v6322_v27  ;;  %v6411_v26 = vpack.c.b16 %v6407_v8, %v6406_v1  ;;  %v9738_v2 = vld [vmem:[#allocation11_spill] sm:$0xff] }
 0xf93   :  { %6521 = vmatpush.bf16.msrb.mxu3 %v6498_v30 }
 0xf94   :  { %6348 = vmatpush.bf16.msra.mxu2 %v6327_v31  ;;  %6432 = vmatpush.bf16.msra.mxu1 %v6411_v26 }
 0xf97   :  { %6522 = vmatpush.bf16.msrb.mxu3 %v6497_v18 }
 0xf98   :  { %6349 = vmatpush.bf16.msra.mxu2 %v6326_v6  ;;  %6433 = vmatpush.bf16.msra.mxu1 %v6410_v9 }
 0xf9b   :  { %6523 = vmatpush.bf16.msrb.mxu3 %v6496_v34 }
 0xf9c   :  { %6350 = vmatpush.bf16.msra.mxu2 %v6325_v28  ;;  %6434 = vmatpush.bf16.msra.mxu1 %v6409_v7 }
 0xf9e   :  { %8157 = vmatmul.msk.bf16.vlgmr.msrb.gmra.mxu3 %vm667_vm10, %v8523_v40 }
 0xfa0   :  { %6351 = vmatpush.bf16.msra.mxu2 %v6324_v53  ;;  %6435 = vmatpush.bf16.msra.mxu1 %v6408_v49 }
 0xfa3   :  { %8117 = vmatmul.msk.bf16.vlgmr.msra.gmra.mxu2 %vm667_vm10, %v8515_v36  ;;  %8137 = vmatmul.msk.bf16.vlgmr.msra.gmra.mxu1 %vm667_vm10, %v8519_v39 }
 0xfae   :  { %8158 = vmatmul.msk.bf16.gmra.mxu3 %vm667_vm10, %v8524_v10 }
 0xfb3   :  { %8118 = vmatmul.msk.bf16.gmra.mxu2 %vm667_vm10, %v8516_v37  ;;  %8138 = vmatmul.msk.bf16.gmra.mxu1 %vm667_vm10, %v8520_v43 }
 0xfbe   :  { %8159 = vmatmul.msk.bf16.gmra.mxu3 %vm667_vm10, %v8525_v29 }
 0xfc3   :  { %8119 = vmatmul.msk.bf16.gmra.mxu2 %vm667_vm10, %v8517_v55  ;;  %8139 = vmatmul.msk.bf16.gmra.mxu1 %vm667_vm10, %v8521_v3 }
 0xfce   :  { %8160 = vmatmul.msk.bf16.gmra.mxu3 %vm667_vm10, %v8526_v12 }
 0xfd3   :  { %8120 = vmatmul.msk.bf16.gmra.mxu2 %vm667_vm10, %v8518_v60  ;;  %8140 = vmatmul.msk.bf16.gmra.mxu1 %vm667_vm10, %v8522_v52 }
0x1020   :  { %v6437_v38 = vpop.f32.mrf.mxu1 }
0x1021   :  { %v6525_v44 = vpop.f32.mrf.mxu3 }
0x1026   :  { %v6353_v48 = vpop.f32.mrf.mxu2 }
0x1027   :  { %v6370_v41 = vadd.f32 %v9735_v54, %v6353_v48 }
0x1028   :  { %v6439_v0 = vpop.f32.mrf.mxu1 }
0x1029   :  { %v6450_v13 = vadd.f32 %v6437_v38, %v6370_v41  ;;  %v6527_v15 = vpop.f32.mrf.mxu3 }
0x102b   :  { %v6538_v45 = vadd.f32 %v6525_v44, %v6450_v13 }
0x102d   :  { %v6539_v57 = vsub.f32 %v6538_v45, %v9736_v51 }
0x102e   :  { %v6355_v24 = vpop.f32.mrf.mxu2 }
0x102f   :  { %v6544_v19 = vmul.f32 %v6542_v23, %v6539_v57 }
0x1030   :  { %v6441_v22 = vpop.f32.mrf.mxu1 }
0x1031   :  { %v6545_v27 = vmul.f32 %v6544_v19, %v9737_v56  ;;  %v6529_v1 = vpop.f32.mrf.mxu3 }
0x1033   :  { %v6546_v8 = vadd.f32 %v6545_v27, %v9738_v2 }
0x1035   :  { %6548 = vst.msk [vmem:[#allocation7] sm:$0xff] %vm6547_vm12, %v6546_v8 }
0x1036   :  { %v6357_v16 = vpop.f32.mrf.mxu2  ;;  %6561 = dma.vmem_to_hbm [thread:$0]  %s6557_s2, 128, %s6559_s12, [#allocation4]  }
0x1038   :  { %v6442_v58 = vpop.f32.mrf.mxu1 }
0x1039   :  { %v6530_v50 = vpop.f32.mrf.mxu3 }
0x103e   :  { %v6358_v30 = vpop.f32.mrf.mxu2 }
0x1040   :  { %v6444_v20 = vpop.f32.mrf.mxu1 }
0x1041   :  { %v6532_v14 = vpop.f32.mrf.mxu3 }
0x1046   :  { %v6360_v31 = vpop.f32.mrf.mxu2 }
0x1048   :  { %v6445_v26 = vpop.f32.mrf.mxu1 }
0x1049   :  { %v6533_v33 = vpop.f32.mrf.mxu3 }
0x104e   :  { %v6361_v47 = vpop.f32.mrf.mxu2 }
0x1050   :  { %v6447_v62 = vpop.f32.mrf.mxu1 }
0x1051   :  { %v6535_v32 = vpop.f32.mrf.mxu3 }
0x1056   :  { %v6363_v5 = vpop.f32.mrf.mxu2 }
0x1058   :  { %v6448_v4 = vpop.f32.mrf.mxu1 }
0x1059   :  { %v6536_v17 = vpop.f32.mrf.mxu3 }
0x105e   :  { %v6364_v18 = vpop.f32.mrf.mxu2 }
0x105f   :  { %8717 = dma.done.wait [#allocation4], 128  }
0x1060   :  { %8718 = vsyncadd [#allocation4], 4294967168 }
0x1061   :  { %6568 = vsyncpa [#allocation3], 1 }
0x1062   :  { %6569 = vsyncpa [#allocation6], 1 }
0x1063   :  { %6570 = vsyncpa [#allocation4], 1 }

</bundles_post_ra>
